<compile_context>
chip_gen: v7x
topology: tpu7x:2x2x1
jax: 0.10.0
libtpu: 0.0.40
codegen_flags: <defaults>
</compile_context>

<pallas_src>
import functools
import math

import jax
import jax.numpy as jnp
from jax import lax
from jax.experimental import pallas as pl
from jax.experimental.pallas import tpu as pltpu

HALO = 8              # vertical halo rows per side (>= 6-row receptive field)
AUX_ROWS = 2 * HALO   # sublane-aligned extra rows fetched below each band

_PARAM_ORDER = [
    "conv1_w", "conv1_b", "prelu",
    "conv2_w", "conv2_b",
    "ca_w1", "ca_b1", "ca_w2", "ca_b2", "ca_w3", "ca_b3",
    "conv3_w", "conv3_b",
]


def init_params(key):
    ks = jax.random.split(key, 12)

    def w(k, shape, scale=0.1):
        return scale * jax.random.normal(k, shape, jnp.float32)

    return {
        "conv1_w": w(ks[0], (1, 2, 3, 3)),
        "conv1_b": w(ks[1], (1,)),
        "prelu": jnp.array([0.25], jnp.float32),   # nn.PReLU() default init
        "conv2_w": w(ks[2], (1, 1, 3, 3)),
        "conv2_b": w(ks[3], (1,)),
        "ca_w1": w(ks[4], (1, 1, 5, 5)),
        "ca_b1": w(ks[5], (1,)),
        "ca_w2": w(ks[6], (1, 1, 3, 3)),
        "ca_b2": w(ks[7], (1,)),
        "ca_w3": w(ks[8], (3, 1, 1, 1)),
        "ca_b3": w(ks[9], (3,)),
        "conv3_w": w(ks[10], (1, 1, 3, 3)),
        "conv3_b": w(ks[11], (1,)),
    }


def flatten_params(p):
    flat = jnp.concatenate([p[k].reshape(-1) for k in _PARAM_ORDER])
    offs, o = {}, 0
    for k in _PARAM_ORDER:
        offs[k] = o
        o += int(p[k].size)
    return flat.astype(jnp.float32), offs


def _round_up(a, m):
    return ((a + m - 1) // m) * m


def _cdiv(a, b):
    return -(-a // b)


# ---------------------------------------------------------------------------
# Pallas kernel: conv1 -> PReLU -> conv2 -> Curved_state_space_model -> conv3
# -> fused (+ x_f) residual.  One grid step = one lane-packed batch chunk
# x one row band (with an 8-row halo on each side).
# ---------------------------------------------------------------------------
def cfm_kernel(xm_ref, xh_ref, wpos_ref, params_ref, out_ref, *,
               offs, H, W, TH, L):
    T = TH + AUX_ROWS                      # rows in the working window
    row0 = pl.program_id(1) * TH - HALO    # global image row of window row 0

    wpos = wpos_ref[...]                                        # (1, L) int32
    grow = row0 + lax.broadcasted_iota(jnp.int32, (T, 1), 0)    # (T, 1) int32

    col_masks, row_masks = {}, {}

    def col_mask(d):                       # (1, L) f32 0/1, built lazily
        if d not in col_masks:
            col_masks[d] = ((wpos + d >= 0) & (wpos + d < W)).astype(jnp.float32)
        return col_masks[d]

    def row_mask(d):                       # (T, 1) f32 0/1, built lazily
        if d not in row_masks:
            row_masks[d] = ((grow + d >= 0) & (grow + d < H)).astype(jnp.float32)
        return row_masks[d]

    # NOTE: pltpu.roll follows the jnp.roll convention (positive shift moves
    # data toward higher indices), so result[i] = x[i - shift].
    def col_shift(x, dj):
        """result[t, l] = x[t, l+dj] within the packed image, else 0."""
        if dj == 0:
            return x
        return col_mask(dj) * pltpu.roll(x, (-dj) % L, axis=1)   # XLU lane rot

    def row_shift(x, di):
        """result[t, l] = x[t+di, l] if the source row is a real image row."""
        if di == 0:
            return x
        return row_mask(di) * pltpu.roll(x, (-di) % T, axis=0)   # XLU sublane

    def conv3x3(chans, w_off, b_off):
        """3x3 'same' conv (Cin=len(chans) -> 1), multi-accumulator form."""
        taps = [[col_shift(c, dj) for dj in (-1, 0, 1)] for c in chans]
        acc = None
        for di in (-1, 0, 1):
            part = None
            for ci, per_dj in enumerate(taps):
                for jj, dj in enumerate((-1, 0, 1)):
                    wv = params_ref[w_off + (ci * 3 + (di + 1)) * 3 + (dj + 1)]
                    term = wv * per_dj[jj]
                    part = term if part is None else part + term
            part = row_shift(part, di)
            acc = part if acc is None else acc + part
        return acc + params_ref[b_off]          # scalar bias added once

    def conv5x5(x, w_off, b_off):
        """5x5 'same' conv, low vreg-pressure form (di outermost, 2-3 live)."""
        acc = None
        for di in range(-2, 3):
            xs = row_shift(x, di)               # one row-shifted copy per di
            for dj in range(-2, 3):
                wv = params_ref[w_off + (di + 2) * 5 + (dj + 2)]
                term = wv * col_shift(xs, dj)
                acc = term if acc is None else acc + term
        return acc + params_ref[b_off]

    def fast_sigmoid(z):
        zc = jnp.clip(z, -60.0, 60.0)
        d = 1.0 + jnp.exp(-zc)                  # EUP exp
        r = pl.reciprocal(d, approx=True)       # EUP reciprocal (free slot)
        return r * (2.0 - d * r)                # one Newton step -> ~f32 exact

    # ---- band-with-halo input planes (real / imag FFT channels) ------------
    xr = jnp.concatenate([xm_ref[0, 0, :, :], xh_ref[0, 0, :, :]], axis=0)
    xi = jnp.concatenate([xm_ref[0, 1, :, :], xh_ref[0, 1, :, :]], axis=0)

    # ---- conv1 (2 -> 1, k=3) + PReLU ---------------------------------------
    y = conv3x3([xr, xi], offs["conv1_w"], offs["conv1_b"])
    alpha = params_ref[offs["prelu"]]
    y = jnp.where(y >= 0.0, y, alpha * y)

    # ---- conv2 (1 -> 1, k=3) -----------------------------------------------
    y = conv3x3([y], offs["conv2_w"], offs["conv2_b"])

    # ---- Curved_state_space_model ------------------------------------------
    t = jnp.maximum(conv5x5(y, offs["ca_w1"], offs["ca_b1"]), 0.0)
    t = jnp.maximum(conv3x3([t], offs["ca_w2"], offs["ca_b2"]), 0.0)

    xc = jnp.clip(y, 0.0, 1.0)                  # relu(x) - relu(x-1)
    for k3 in range(3):
        a_k = fast_sigmoid(params_ref[offs["ca_w3"] + k3] * t
                           + params_ref[offs["ca_b3"] + k3])
        xc = xc + a_k * xc * (1.0 - xc)

    # ---- conv3 (1 -> 1, k=3) + fused (+ x_f) residual -----------------------
    y3 = conv3x3([xc], offs["conv3_w"], offs["conv3_b"])
    out_ref[0, 0, :, :] = y3[HALO:HALO + TH, :] + xr[HALO:HALO + TH, :]
    out_ref[0, 1, :, :] = y3[HALO:HALO + TH, :] + xi[HALO:HALO + TH, :]


# ---------------------------------------------------------------------------
# Host-side wrapper: lane packing, row banding, pallas_call, unpack
# ---------------------------------------------------------------------------
def _choose_bb(B, W, lane_target):
    """Images packed per lane group so bb*W is 128-aligned when possible."""
    if W % 128 == 0:
        return max(1, min(B, max(1, lane_target // W)))
    if W >= lane_target:
        return 1
    g = math.lcm(W, 128) // W                    # images per 128-aligned group
    if B >= g:
        reps = max(1, min(B // g, max(1, lane_target // (g * W))))
        return g * reps
    return max(1, B)


def cfm_spatial_pipeline(x_f, flat_params, offs, *, band_h=None,
                         lane_target=512):
    """x_f: (B, 2, H, W) f32 -> (B, 2, H, W) f32  (== conv pipeline + x_f)."""
    B, C2, H, W = x_f.shape
    assert C2 == 2

    # --- lane packing: bb images per step, lane width padded to x128 --------
    bb = _choose_bb(B, W, lane_target)
    L_real = bb * W
    L = _round_up(L_real, 128)

    # --- row banding: band height multiple of 16, capped by a VMEM budget ---
    if band_h is None:
        band_h = min(_round_up(max(H, 1), 16), 128)
        budget = 8 * 1024 * 1024                 # ~12 live (band+halo, L) f32
        while band_h > 16 and (band_h + AUX_ROWS) * L * 4 * 12 > budget:
            band_h -= 16
    else:
        band_h = max(16, _round_up(band_h, 16))
    n_bands = _cdiv(H, band_h)

    nb = _cdiv(B, bb)
    # --- keep both v7x TensorCores busy: >= 2 independent grid steps --------
    if nb * n_bands < 2 and B >= 2:
        bb = _cdiv(B, 2)
        nb = _cdiv(B, bb)
        L_real = bb * W
        L = _round_up(L_real, 128)

    Bp = nb * bb
    H_band = n_bands * band_h
    H_pad = H_band + AUX_ROWS                    # 8 rows above, >=8 below

    # --- host-side pack: (B,2,H,W) -> (nb, 2, H_pad, L) ---------------------
    if Bp != B:
        x_f = jnp.pad(x_f, ((0, Bp - B), (0, 0), (0, 0), (0, 0)))
    xp = (x_f.reshape(nb, bb, 2, H, W)
              .transpose(0, 2, 3, 1, 4)
              .reshape(nb, 2, H, L_real))
    xp = jnp.pad(xp, ((0, 0), (0, 0), (HALO, H_pad - HALO - H),
                      (0, L - L_real)))

    # per-lane column index within its packed image (host-built, (1, L))
    wpos = (jnp.arange(L, dtype=jnp.int32) % W)[None, :]

    kern = functools.partial(cfm_kernel, offs=offs, H=H, W=W, TH=band_h, L=L)
    th16 = band_h // 16                          # aux (16-row) block stride

    out = pl.pallas_call(
        kern,
        out_shape=jax.ShapeDtypeStruct((nb, 2, H_band, L), jnp.float32),
        grid_spec=pltpu.PrefetchScalarGridSpec(
            num_scalar_prefetch=0,
            grid=(nb, n_bands),
            in_specs=[
                # band rows [j*TH, (j+1)*TH) of the halo-padded plane
                pl.BlockSpec((1, 2, band_h, L), lambda b, j: (b, 0, j, 0)),
                # 16 extra rows just below the band (bottom halo)
                pl.BlockSpec((1, 2, AUX_ROWS, L),
                             lambda b, j: (b, 0, (j + 1) * th16, 0)),
                pl.BlockSpec((1, L), lambda b, j: (0, 0)),
                pl.BlockSpec(memory_space=pltpu.MemorySpace.SMEM),
            ],
            out_specs=pl.BlockSpec((1, 2, band_h, L), lambda b, j: (b, 0, j, 0)),
        ),
        compiler_params=pltpu.CompilerParams(
            dimension_semantics=("parallel", "parallel"),
            vmem_limit_bytes=32 * 1024 * 1024),
    )(xp, xp, wpos, flat_params)

    y = (out[:, :, :H, :L_real]
            .reshape(nb, 2, H, bb, W)
            .transpose(0, 3, 1, 2, 4)
            .reshape(Bp, 2, H, W)[:B])
    return y


# ---------------------------------------------------------------------------
# Full forward (FFT glue in JAX, spatial pipeline + residual in Pallas)
# ---------------------------------------------------------------------------
def causal_frequency_mamba_forward(x, flat_params, offs, *, band_h=None):
    # x: (B, 1, H, W) float32
    x_input = x
    Xc = jnp.fft.fft2(x_input, axes=(-2, -1))                    # complex64
    # view_as_real + permute + view  ->  (B, 2*C, H, W) with C == 1
    x_f = jnp.concatenate([jnp.real(Xc), jnp.imag(Xc)], axis=1).astype(jnp.float32)

    # conv pipeline + curve model + conv3 + (+ x_f) residual, fully fused
    y = cfm_spatial_pipeline(x_f, flat_params, offs, band_h=band_h)

    # TODO(synk): PatchEmbed -> VSSBlock -> PatchUnEmbed not provided; identity.

    comp = y[:, 0:1] + 1j * y[:, 1:2]                            # view_as_complex
    out = jnp.real(jnp.fft.ifft2(comp, axes=(-2, -1)))
    return out + x_input


# ---------------------------------------------------------------------------
# Pure-JAX reference (same math via lax.conv) for validation
# ---------------------------------------------------------------------------
def ref_forward(x, p):
    def conv(u, wt, b, pad):
        out = lax.conv_general_dilated(
            u, wt, (1, 1), [(pad, pad), (pad, pad)],
            dimension_numbers=("NCHW", "OIHW", "NCHW"))
        return out + b.reshape(1, -1, 1, 1)

    Xc = jnp.fft.fft2(x, axes=(-2, -1))
    x_f = jnp.concatenate([jnp.real(Xc), jnp.imag(Xc)], axis=1).astype(jnp.float32)

    y = conv(x_f, p["conv1_w"], p["conv1_b"], 1)
    a = p["prelu"][0]
    y = jnp.where(y >= 0, y, a * y)
    y = conv(y, p["conv2_w"], p["conv2_b"], 1)

    t = jax.nn.relu(conv(y, p["ca_w1"], p["ca_b1"], 2))
    t = jax.nn.relu(conv(t, p["ca_w2"], p["ca_b2"], 1))
    amap = jax.nn.sigmoid(conv(t, p["ca_w3"], p["ca_b3"], 0))    # (B,3,H,W)

    xc = jax.nn.relu(y) - jax.nn.relu(y - 1.0)
    for i in range(3):
        xc = xc + amap[:, i:i + 1] * xc * (1.0 - xc)

    y = conv(xc, p["conv3_w"], p["conv3_b"], 1)
    y = y + x_f
    comp = y[:, 0:1] + 1j * y[:, 1:2]
    out = jnp.real(jnp.fft.ifft2(comp, axes=(-2, -1)))
    return out + x


if __name__ == "__main__":
    key = jax.random.PRNGKey(0)
    kx, kp = jax.random.split(key)

    B, C, H, W = 2, 1, 32, 32          # in_channels=1 => conv1 expects 2 fft channels
    x = jax.random.normal(kx, (B, C, H, W), jnp.float32)

    params = init_params(kp)
    flat, offs = flatten_params(params)

    ref = ref_forward(x, params)

    # config A: force 2 row bands -> exercises the halo / banding path
    out_a = jax.block_until_ready(
        causal_frequency_mamba_forward(x, flat, offs, band_h=16))
    # config B: default heuristics -> single band, batch split across 2 steps
    out_b = jax.block_until_ready(
        causal_frequency_mamba_forward(x, flat, offs))

    for out in (out_a, out_b):
        assert out.shape == (B, C, H, W)
        assert bool(jnp.all(jnp.isfinite(out)))
        err = float(jnp.max(jnp.abs(out - ref)))
        assert err < 1e-3, f"mismatch vs reference: {err}"

    print("KERNEL_OK")
</pallas_src>

<mosaic_0001>
module attributes {stable_mosaic.version = 11 : i64} {
  func.func @cfm_kernel(%arg0: i32, %arg1: i32, %arg2: memref<1x2x16x128xf32, #tpu.memory_space<vmem>>, %arg3: memref<1x2x16x128xf32, #tpu.memory_space<vmem>>, %arg4: memref<1x128xi32, #tpu.memory_space<vmem>>, %arg5: memref<82xf32, #tpu.memory_space<smem>>, %arg6: memref<1x2x16x128xf32, #tpu.memory_space<vmem>>) attributes {dimension_semantics = [#tpu.dimension_semantics<parallel>, #tpu.dimension_semantics<parallel>], iteration_bounds = array<i64: 1, 2>, scalar_prefetch = 0 : i64, scratch_operands = 0 : i64, tpu.core_type = #tpu.core_type<tc>, window_params = [{transform_indices = @transform_0, window_bounds = array<i64: 1, 2, 16, 128>}, {transform_indices = @transform_1, window_bounds = array<i64: 1, 2, 16, 128>}, {pipeline_mode = #tpu.pipeline_mode<synchronous>, transform_indices = @transform_2, window_bounds = array<i64: 1, 128>}, {transform_indices = @transform_3, window_bounds = array<i64: 82>}, {transform_indices = @transform_4, window_bounds = array<i64: 1, 2, 16, 128>}]} {
    %c16_i32 = arith.constant 16 : i32
    %0 = arith.muli %arg1, %c16_i32 : i32
    %c8_i32 = arith.constant 8 : i32
    %1 = arith.subi %0, %c8_i32 : i32
    %c0 = arith.constant 0 : index
    %c0_0 = arith.constant 0 : index
    %2 = vector.load %arg4[%c0, %c0_0] : memref<1x128xi32, #tpu.memory_space<vmem>>, vector<1x128xi32>
    %3 = tpu.iota {dimensions = array<i32: 0>} : vector<32x1xi32>
    %4 = vector.broadcast %1 : i32 to vector<32x1xi32>
    %5 = arith.addi %4, %3 : vector<32x1xi32>
    %c0_1 = arith.constant 0 : index
    %c0_2 = arith.constant 0 : index
    %c0_3 = arith.constant 0 : index
    %c0_4 = arith.constant 0 : index
    %6 = vector.load %arg2[%c0_1, %c0_2, %c0_3, %c0_4] : memref<1x2x16x128xf32, #tpu.memory_space<vmem>>, vector<1x1x16x128xf32>
    %7 = vector.shape_cast %6 : vector<1x1x16x128xf32> to vector<16x128xf32>
    %c0_5 = arith.constant 0 : index
    %c0_6 = arith.constant 0 : index
    %c0_7 = arith.constant 0 : index
    %c0_8 = arith.constant 0 : index
    %8 = vector.load %arg3[%c0_5, %c0_6, %c0_7, %c0_8] : memref<1x2x16x128xf32, #tpu.memory_space<vmem>>, vector<1x1x16x128xf32>
    %9 = vector.shape_cast %8 : vector<1x1x16x128xf32> to vector<16x128xf32>
    %10 = tpu.concatenate %7, %9 in 0 : vector<16x128xf32>, vector<16x128xf32> -> vector<32x128xf32>
    %c0_9 = arith.constant 0 : index
    %c1 = arith.constant 1 : index
    %c0_10 = arith.constant 0 : index
    %c0_11 = arith.constant 0 : index
    %11 = vector.load %arg2[%c0_9, %c1, %c0_10, %c0_11] : memref<1x2x16x128xf32, #tpu.memory_space<vmem>>, vector<1x1x16x128xf32>
    %12 = vector.shape_cast %11 : vector<1x1x16x128xf32> to vector<16x128xf32>
    %c0_12 = arith.constant 0 : index
    %c1_13 = arith.constant 1 : index
    %c0_14 = arith.constant 0 : index
    %c0_15 = arith.constant 0 : index
    %13 = vector.load %arg3[%c0_12, %c1_13, %c0_14, %c0_15] : memref<1x2x16x128xf32, #tpu.memory_space<vmem>>, vector<1x1x16x128xf32>
    %14 = vector.shape_cast %13 : vector<1x1x16x128xf32> to vector<16x128xf32>
    %15 = tpu.concatenate %12, %14 in 0 : vector<16x128xf32>, vector<16x128xf32> -> vector<32x128xf32>
    %c-1_i32 = arith.constant -1 : i32
    %16 = vector.broadcast %c-1_i32 : i32 to vector<1x128xi32>
    %17 = arith.addi %2, %16 : vector<1x128xi32>
    %c0_i32 = arith.constant 0 : i32
    %18 = vector.broadcast %c0_i32 : i32 to vector<1x128xi32>
    %19 = arith.cmpi sge, %17, %18 : vector<1x128xi32>
    %c-1_i32_16 = arith.constant -1 : i32
    %20 = vector.broadcast %c-1_i32_16 : i32 to vector<1x128xi32>
    %21 = arith.addi %2, %20 : vector<1x128xi32>
    %c32_i32 = arith.constant 32 : i32
    %22 = vector.broadcast %c32_i32 : i32 to vector<1x128xi32>
    %23 = arith.cmpi slt, %21, %22 : vector<1x128xi32>
    %24 = arith.andi %19, %23 : vector<1x128xi1>
    %25 = arith.extui %24 : vector<1x128xi1> to vector<1x128xi32>
    %26 = arith.sitofp %25 : vector<1x128xi32> to vector<1x128xf32>
    %c1_i32 = arith.constant 1 : i32
    %27 = tpu.dynamic_rotate %10 by %c1_i32 dim 1 : vector<32x128xf32>, i32 -> vector<32x128xf32>
    %28 = vector.broadcast %26 : vector<1x128xf32> to vector<32x128xf32>
    %29 = arith.mulf %28, %27 : vector<32x128xf32>
    %c1_i32_17 = arith.constant 1 : i32
    %30 = vector.broadcast %c1_i32_17 : i32 to vector<1x128xi32>
    %31 = arith.addi %2, %30 : vector<1x128xi32>
    %c0_i32_18 = arith.constant 0 : i32
    %32 = vector.broadcast %c0_i32_18 : i32 to vector<1x128xi32>
    %33 = arith.cmpi sge, %31, %32 : vector<1x128xi32>
    %c1_i32_19 = arith.constant 1 : i32
    %34 = vector.broadcast %c1_i32_19 : i32 to vector<1x128xi32>
    %35 = arith.addi %2, %34 : vector<1x128xi32>
    %c32_i32_20 = arith.constant 32 : i32
    %36 = vector.broadcast %c32_i32_20 : i32 to vector<1x128xi32>
    %37 = arith.cmpi slt, %35, %36 : vector<1x128xi32>
    %38 = arith.andi %33, %37 : vector<1x128xi1>
    %39 = arith.extui %38 : vector<1x128xi1> to vector<1x128xi32>
    %40 = arith.sitofp %39 : vector<1x128xi32> to vector<1x128xf32>
    %c127_i32 = arith.constant 127 : i32
    %41 = tpu.dynamic_rotate %10 by %c127_i32 dim 1 : vector<32x128xf32>, i32 -> vector<32x128xf32>
    %42 = vector.broadcast %40 : vector<1x128xf32> to vector<32x128xf32>
    %43 = arith.mulf %42, %41 : vector<32x128xf32>
    %c1_i32_21 = arith.constant 1 : i32
    %44 = tpu.dynamic_rotate %15 by %c1_i32_21 dim 1 : vector<32x128xf32>, i32 -> vector<32x128xf32>
    %45 = vector.broadcast %26 : vector<1x128xf32> to vector<32x128xf32>
    %46 = arith.mulf %45, %44 : vector<32x128xf32>
    %c127_i32_22 = arith.constant 127 : i32
    %47 = tpu.dynamic_rotate %15 by %c127_i32_22 dim 1 : vector<32x128xf32>, i32 -> vector<32x128xf32>
    %48 = vector.broadcast %40 : vector<1x128xf32> to vector<32x128xf32>
    %49 = arith.mulf %48, %47 : vector<32x128xf32>
    %c0_23 = arith.constant 0 : index
    %50 = memref.load %arg5[%c0_23] : memref<82xf32, #tpu.memory_space<smem>>
    %51 = vector.broadcast %50 : f32 to vector<32x128xf32>
    %52 = arith.mulf %51, %29 : vector<32x128xf32>
    %c1_24 = arith.constant 1 : index
    %53 = memref.load %arg5[%c1_24] : memref<82xf32, #tpu.memory_space<smem>>
    %54 = vector.broadcast %53 : f32 to vector<32x128xf32>
    %55 = arith.mulf %54, %10 : vector<32x128xf32>
    %56 = arith.addf %52, %55 : vector<32x128xf32>
    %c2 = arith.constant 2 : index
    %57 = memref.load %arg5[%c2] : memref<82xf32, #tpu.memory_space<smem>>
    %58 = vector.broadcast %57 : f32 to vector<32x128xf32>
    %59 = arith.mulf %58, %43 : vector<32x128xf32>
    %60 = arith.addf %56, %59 : vector<32x128xf32>
    %c9 = arith.constant 9 : index
    %61 = memref.load %arg5[%c9] : memref<82xf32, #tpu.memory_space<smem>>
    %62 = vector.broadcast %61 : f32 to vector<32x128xf32>
    %63 = arith.mulf %62, %46 : vector<32x128xf32>
    %64 = arith.addf %60, %63 : vector<32x128xf32>
    %c10 = arith.constant 10 : index
    %65 = memref.load %arg5[%c10] : memref<82xf32, #tpu.memory_space<smem>>
    %66 = vector.broadcast %65 : f32 to vector<32x128xf32>
    %67 = arith.mulf %66, %15 : vector<32x128xf32>
    %68 = arith.addf %64, %67 : vector<32x128xf32>
    %c11 = arith.constant 11 : index
    %69 = memref.load %arg5[%c11] : memref<82xf32, #tpu.memory_space<smem>>
    %70 = vector.broadcast %69 : f32 to vector<32x128xf32>
    %71 = arith.mulf %70, %49 : vector<32x128xf32>
    %72 = arith.addf %68, %71 : vector<32x128xf32>
    %c-1_i32_25 = arith.constant -1 : i32
    %73 = vector.broadcast %c-1_i32_25 : i32 to vector<32x1xi32>
    %74 = arith.addi %5, %73 : vector<32x1xi32>
    %c0_i32_26 = arith.constant 0 : i32
    %75 = vector.broadcast %c0_i32_26 : i32 to vector<32x1xi32>
    %76 = arith.cmpi sge, %74, %75 : vector<32x1xi32>
    %c-1_i32_27 = arith.constant -1 : i32
    %77 = vector.broadcast %c-1_i32_27 : i32 to vector<32x1xi32>
    %78 = arith.addi %5, %77 : vector<32x1xi32>
    %c32_i32_28 = arith.constant 32 : i32
    %79 = vector.broadcast %c32_i32_28 : i32 to vector<32x1xi32>
    %80 = arith.cmpi slt, %78, %79 : vector<32x1xi32>
    %81 = arith.andi %76, %80 : vector<32x1xi1>
    %82 = arith.extui %81 : vector<32x1xi1> to vector<32x1xi32>
    %83 = arith.sitofp %82 : vector<32x1xi32> to vector<32x1xf32>
    %c1_i32_29 = arith.constant 1 : i32
    %84 = tpu.dynamic_rotate %72 by %c1_i32_29 dim 0 : vector<32x128xf32>, i32 -> vector<32x128xf32>
    %85 = vector.broadcast %83 : vector<32x1xf32> to vector<32x128xf32>
    %86 = arith.mulf %85, %84 : vector<32x128xf32>
    %c3 = arith.constant 3 : index
    %87 = memref.load %arg5[%c3] : memref<82xf32, #tpu.memory_space<smem>>
    %88 = vector.broadcast %87 : f32 to vector<32x128xf32>
    %89 = arith.mulf %88, %29 : vector<32x128xf32>
    %c4 = arith.constant 4 : index
    %90 = memref.load %arg5[%c4] : memref<82xf32, #tpu.memory_space<smem>>
    %91 = vector.broadcast %90 : f32 to vector<32x128xf32>
    %92 = arith.mulf %91, %10 : vector<32x128xf32>
    %93 = arith.addf %89, %92 : vector<32x128xf32>
    %c5 = arith.constant 5 : index
    %94 = memref.load %arg5[%c5] : memref<82xf32, #tpu.memory_space<smem>>
    %95 = vector.broadcast %94 : f32 to vector<32x128xf32>
    %96 = arith.mulf %95, %43 : vector<32x128xf32>
    %97 = arith.addf %93, %96 : vector<32x128xf32>
    %c12 = arith.constant 12 : index
    %98 = memref.load %arg5[%c12] : memref<82xf32, #tpu.memory_space<smem>>
    %99 = vector.broadcast %98 : f32 to vector<32x128xf32>
    %100 = arith.mulf %99, %46 : vector<32x128xf32>
    %101 = arith.addf %97, %100 : vector<32x128xf32>
    %c13 = arith.constant 13 : index
    %102 = memref.load %arg5[%c13] : memref<82xf32, #tpu.memory_space<smem>>
    %103 = vector.broadcast %102 : f32 to vector<32x128xf32>
    %104 = arith.mulf %103, %15 : vector<32x128xf32>
    %105 = arith.addf %101, %104 : vector<32x128xf32>
    %c14 = arith.constant 14 : index
    %106 = memref.load %arg5[%c14] : memref<82xf32, #tpu.memory_space<smem>>
    %107 = vector.broadcast %106 : f32 to vector<32x128xf32>
    %108 = arith.mulf %107, %49 : vector<32x128xf32>
    %109 = arith.addf %105, %108 : vector<32x128xf32>
    %110 = arith.addf %86, %109 : vector<32x128xf32>
    %c6 = arith.constant 6 : index
    %111 = memref.load %arg5[%c6] : memref<82xf32, #tpu.memory_space<smem>>
    %112 = vector.broadcast %111 : f32 to vector<32x128xf32>
    %113 = arith.mulf %112, %29 : vector<32x128xf32>
    %c7 = arith.constant 7 : index
    %114 = memref.load %arg5[%c7] : memref<82xf32, #tpu.memory_space<smem>>
    %115 = vector.broadcast %114 : f32 to vector<32x128xf32>
    %116 = arith.mulf %115, %10 : vector<32x128xf32>
    %117 = arith.addf %113, %116 : vector<32x128xf32>
    %c8 = arith.constant 8 : index
    %118 = memref.load %arg5[%c8] : memref<82xf32, #tpu.memory_space<smem>>
    %119 = vector.broadcast %118 : f32 to vector<32x128xf32>
    %120 = arith.mulf %119, %43 : vector<32x128xf32>
    %121 = arith.addf %117, %120 : vector<32x128xf32>
    %c15 = arith.constant 15 : index
    %122 = memref.load %arg5[%c15] : memref<82xf32, #tpu.memory_space<smem>>
    %123 = vector.broadcast %122 : f32 to vector<32x128xf32>
    %124 = arith.mulf %123, %46 : vector<32x128xf32>
    %125 = arith.addf %121, %124 : vector<32x128xf32>
    %c16 = arith.constant 16 : index
    %126 = memref.load %arg5[%c16] : memref<82xf32, #tpu.memory_space<smem>>
    %127 = vector.broadcast %126 : f32 to vector<32x128xf32>
    %128 = arith.mulf %127, %15 : vector<32x128xf32>
    %129 = arith.addf %125, %128 : vector<32x128xf32>
    %c17 = arith.constant 17 : index
    %130 = memref.load %arg5[%c17] : memref<82xf32, #tpu.memory_space<smem>>
    %131 = vector.broadcast %130 : f32 to vector<32x128xf32>
    %132 = arith.mulf %131, %49 : vector<32x128xf32>
    %133 = arith.addf %129, %132 : vector<32x128xf32>
    %c1_i32_30 = arith.constant 1 : i32
    %134 = vector.broadcast %c1_i32_30 : i32 to vector<32x1xi32>
    %135 = arith.addi %5, %134 : vector<32x1xi32>
    %c0_i32_31 = arith.constant 0 : i32
    %136 = vector.broadcast %c0_i32_31 : i32 to vector<32x1xi32>
    %137 = arith.cmpi sge, %135, %136 : vector<32x1xi32>
    %c1_i32_32 = arith.constant 1 : i32
    %138 = vector.broadcast %c1_i32_32 : i32 to vector<32x1xi32>
    %139 = arith.addi %5, %138 : vector<32x1xi32>
    %c32_i32_33 = arith.constant 32 : i32
    %140 = vector.broadcast %c32_i32_33 : i32 to vector<32x1xi32>
    %141 = arith.cmpi slt, %139, %140 : vector<32x1xi32>
    %142 = arith.andi %137, %141 : vector<32x1xi1>
    %143 = arith.extui %142 : vector<32x1xi1> to vector<32x1xi32>
    %144 = arith.sitofp %143 : vector<32x1xi32> to vector<32x1xf32>
    %c31_i32 = arith.constant 31 : i32
    %145 = tpu.dynamic_rotate %133 by %c31_i32 dim 0 : vector<32x128xf32>, i32 -> vector<32x128xf32>
    %146 = vector.broadcast %144 : vector<32x1xf32> to vector<32x128xf32>
    %147 = arith.mulf %146, %145 : vector<32x128xf32>
    %148 = arith.addf %110, %147 : vector<32x128xf32>
    %c18 = arith.constant 18 : index
    %149 = memref.load %arg5[%c18] : memref<82xf32, #tpu.memory_space<smem>>
    %150 = vector.broadcast %149 : f32 to vector<32x128xf32>
    %151 = arith.addf %148, %150 : vector<32x128xf32>
    %c19 = arith.constant 19 : index
    %152 = memref.load %arg5[%c19] : memref<82xf32, #tpu.memory_space<smem>>
    %cst = arith.constant 0.000000e+00 : f32
    %153 = vector.broadcast %cst : f32 to vector<32x128xf32>
    %154 = arith.cmpf oge, %151, %153 : vector<32x128xf32>
    %155 = vector.broadcast %152 : f32 to vector<32x128xf32>
    %156 = arith.mulf %155, %151 : vector<32x128xf32>
    %157 = arith.select %154, %151, %156 : vector<32x128xi1>, vector<32x128xf32>
    %c1_i32_34 = arith.constant 1 : i32
    %158 = tpu.dynamic_rotate %157 by %c1_i32_34 dim 1 : vector<32x128xf32>, i32 -> vector<32x128xf32>
    %159 = vector.broadcast %26 : vector<1x128xf32> to vector<32x128xf32>
    %160 = arith.mulf %159, %158 : vector<32x128xf32>
    %c127_i32_35 = arith.constant 127 : i32
    %161 = tpu.dynamic_rotate %157 by %c127_i32_35 dim 1 : vector<32x128xf32>, i32 -> vector<32x128xf32>
    %162 = vector.broadcast %40 : vector<1x128xf32> to vector<32x128xf32>
    %163 = arith.mulf %162, %161 : vector<32x128xf32>
    %c20 = arith.constant 20 : index
    %164 = memref.load %arg5[%c20] : memref<82xf32, #tpu.memory_space<smem>>
    %165 = vector.broadcast %164 : f32 to vector<32x128xf32>
    %166 = arith.mulf %165, %160 : vector<32x128xf32>
    %c21 = arith.constant 21 : index
    %167 = memref.load %arg5[%c21] : memref<82xf32, #tpu.memory_space<smem>>
    %168 = vector.broadcast %167 : f32 to vector<32x128xf32>
    %169 = arith.mulf %168, %157 : vector<32x128xf32>
    %170 = arith.addf %166, %169 : vector<32x128xf32>
    %c22 = arith.constant 22 : index
    %171 = memref.load %arg5[%c22] : memref<82xf32, #tpu.memory_space<smem>>
    %172 = vector.broadcast %171 : f32 to vector<32x128xf32>
    %173 = arith.mulf %172, %163 : vector<32x128xf32>
    %174 = arith.addf %170, %173 : vector<32x128xf32>
    %c1_i32_36 = arith.constant 1 : i32
    %175 = tpu.dynamic_rotate %174 by %c1_i32_36 dim 0 : vector<32x128xf32>, i32 -> vector<32x128xf32>
    %176 = vector.broadcast %83 : vector<32x1xf32> to vector<32x128xf32>
    %177 = arith.mulf %176, %175 : vector<32x128xf32>
    %c23 = arith.constant 23 : index
    %178 = memref.load %arg5[%c23] : memref<82xf32, #tpu.memory_space<smem>>
    %179 = vector.broadcast %178 : f32 to vector<32x128xf32>
    %180 = arith.mulf %179, %160 : vector<32x128xf32>
    %c24 = arith.constant 24 : index
    %181 = memref.load %arg5[%c24] : memref<82xf32, #tpu.memory_space<smem>>
    %182 = vector.broadcast %181 : f32 to vector<32x128xf32>
    %183 = arith.mulf %182, %157 : vector<32x128xf32>
    %184 = arith.addf %180, %183 : vector<32x128xf32>
    %c25 = arith.constant 25 : index
    %185 = memref.load %arg5[%c25] : memref<82xf32, #tpu.memory_space<smem>>
    %186 = vector.broadcast %185 : f32 to vector<32x128xf32>
    %187 = arith.mulf %186, %163 : vector<32x128xf32>
    %188 = arith.addf %184, %187 : vector<32x128xf32>
    %189 = arith.addf %177, %188 : vector<32x128xf32>
    %c26 = arith.constant 26 : index
    %190 = memref.load %arg5[%c26] : memref<82xf32, #tpu.memory_space<smem>>
    %191 = vector.broadcast %190 : f32 to vector<32x128xf32>
    %192 = arith.mulf %191, %160 : vector<32x128xf32>
    %c27 = arith.constant 27 : index
    %193 = memref.load %arg5[%c27] : memref<82xf32, #tpu.memory_space<smem>>
    %194 = vector.broadcast %193 : f32 to vector<32x128xf32>
    %195 = arith.mulf %194, %157 : vector<32x128xf32>
    %196 = arith.addf %192, %195 : vector<32x128xf32>
    %c28 = arith.constant 28 : index
    %197 = memref.load %arg5[%c28] : memref<82xf32, #tpu.memory_space<smem>>
    %198 = vector.broadcast %197 : f32 to vector<32x128xf32>
    %199 = arith.mulf %198, %163 : vector<32x128xf32>
    %200 = arith.addf %196, %199 : vector<32x128xf32>
    %c31_i32_37 = arith.constant 31 : i32
    %201 = tpu.dynamic_rotate %200 by %c31_i32_37 dim 0 : vector<32x128xf32>, i32 -> vector<32x128xf32>
    %202 = vector.broadcast %144 : vector<32x1xf32> to vector<32x128xf32>
    %203 = arith.mulf %202, %201 : vector<32x128xf32>
    %204 = arith.addf %189, %203 : vector<32x128xf32>
    %c29 = arith.constant 29 : index
    %205 = memref.load %arg5[%c29] : memref<82xf32, #tpu.memory_space<smem>>
    %206 = vector.broadcast %205 : f32 to vector<32x128xf32>
    %207 = arith.addf %204, %206 : vector<32x128xf32>
    %c-2_i32 = arith.constant -2 : i32
    %208 = vector.broadcast %c-2_i32 : i32 to vector<32x1xi32>
    %209 = arith.addi %5, %208 : vector<32x1xi32>
    %c0_i32_38 = arith.constant 0 : i32
    %210 = vector.broadcast %c0_i32_38 : i32 to vector<32x1xi32>
    %211 = arith.cmpi sge, %209, %210 : vector<32x1xi32>
    %c-2_i32_39 = arith.constant -2 : i32
    %212 = vector.broadcast %c-2_i32_39 : i32 to vector<32x1xi32>
    %213 = arith.addi %5, %212 : vector<32x1xi32>
    %c32_i32_40 = arith.constant 32 : i32
    %214 = vector.broadcast %c32_i32_40 : i32 to vector<32x1xi32>
    %215 = arith.cmpi slt, %213, %214 : vector<32x1xi32>
    %216 = arith.andi %211, %215 : vector<32x1xi1>
    %217 = arith.extui %216 : vector<32x1xi1> to vector<32x1xi32>
    %218 = arith.sitofp %217 : vector<32x1xi32> to vector<32x1xf32>
    %c2_i32 = arith.constant 2 : i32
    %219 = tpu.dynamic_rotate %207 by %c2_i32 dim 0 : vector<32x128xf32>, i32 -> vector<32x128xf32>
    %220 = vector.broadcast %218 : vector<32x1xf32> to vector<32x128xf32>
    %221 = arith.mulf %220, %219 : vector<32x128xf32>
    %c30 = arith.constant 30 : index
    %222 = memref.load %arg5[%c30] : memref<82xf32, #tpu.memory_space<smem>>
    %c-2_i32_41 = arith.constant -2 : i32
    %223 = vector.broadcast %c-2_i32_41 : i32 to vector<1x128xi32>
    %224 = arith.addi %2, %223 : vector<1x128xi32>
    %c0_i32_42 = arith.constant 0 : i32
    %225 = vector.broadcast %c0_i32_42 : i32 to vector<1x128xi32>
    %226 = arith.cmpi sge, %224, %225 : vector<1x128xi32>
    %c-2_i32_43 = arith.constant -2 : i32
    %227 = vector.broadcast %c-2_i32_43 : i32 to vector<1x128xi32>
    %228 = arith.addi %2, %227 : vector<1x128xi32>
    %c32_i32_44 = arith.constant 32 : i32
    %229 = vector.broadcast %c32_i32_44 : i32 to vector<1x128xi32>
    %230 = arith.cmpi slt, %228, %229 : vector<1x128xi32>
    %231 = arith.andi %226, %230 : vector<1x128xi1>
    %232 = arith.extui %231 : vector<1x128xi1> to vector<1x128xi32>
    %233 = arith.sitofp %232 : vector<1x128xi32> to vector<1x128xf32>
    %c2_i32_45 = arith.constant 2 : i32
    %234 = tpu.dynamic_rotate %221 by %c2_i32_45 dim 1 : vector<32x128xf32>, i32 -> vector<32x128xf32>
    %235 = vector.broadcast %233 : vector<1x128xf32> to vector<32x128xf32>
    %236 = arith.mulf %235, %234 : vector<32x128xf32>
    %237 = vector.broadcast %222 : f32 to vector<32x128xf32>
    %238 = arith.mulf %237, %236 : vector<32x128xf32>
    %c31 = arith.constant 31 : index
    %239 = memref.load %arg5[%c31] : memref<82xf32, #tpu.memory_space<smem>>
    %c1_i32_46 = arith.constant 1 : i32
    %240 = tpu.dynamic_rotate %221 by %c1_i32_46 dim 1 : vector<32x128xf32>, i32 -> vector<32x128xf32>
    %241 = vector.broadcast %26 : vector<1x128xf32> to vector<32x128xf32>
    %242 = arith.mulf %241, %240 : vector<32x128xf32>
    %243 = vector.broadcast %239 : f32 to vector<32x128xf32>
    %244 = arith.mulf %243, %242 : vector<32x128xf32>
    %245 = arith.addf %238, %244 : vector<32x128xf32>
    %c32 = arith.constant 32 : index
    %246 = memref.load %arg5[%c32] : memref<82xf32, #tpu.memory_space<smem>>
    %247 = vector.broadcast %246 : f32 to vector<32x128xf32>
    %248 = arith.mulf %247, %221 : vector<32x128xf32>
    %249 = arith.addf %245, %248 : vector<32x128xf32>
    %c33 = arith.constant 33 : index
    %250 = memref.load %arg5[%c33] : memref<82xf32, #tpu.memory_space<smem>>
    %c127_i32_47 = arith.constant 127 : i32
    %251 = tpu.dynamic_rotate %221 by %c127_i32_47 dim 1 : vector<32x128xf32>, i32 -> vector<32x128xf32>
    %252 = vector.broadcast %40 : vector<1x128xf32> to vector<32x128xf32>
    %253 = arith.mulf %252, %251 : vector<32x128xf32>
    %254 = vector.broadcast %250 : f32 to vector<32x128xf32>
    %255 = arith.mulf %254, %253 : vector<32x128xf32>
    %256 = arith.addf %249, %255 : vector<32x128xf32>
    %c34 = arith.constant 34 : index
    %257 = memref.load %arg5[%c34] : memref<82xf32, #tpu.memory_space<smem>>
    %c2_i32_48 = arith.constant 2 : i32
    %258 = vector.broadcast %c2_i32_48 : i32 to vector<1x128xi32>
    %259 = arith.addi %2, %258 : vector<1x128xi32>
    %c0_i32_49 = arith.constant 0 : i32
    %260 = vector.broadcast %c0_i32_49 : i32 to vector<1x128xi32>
    %261 = arith.cmpi sge, %259, %260 : vector<1x128xi32>
    %c2_i32_50 = arith.constant 2 : i32
    %262 = vector.broadcast %c2_i32_50 : i32 to vector<1x128xi32>
    %263 = arith.addi %2, %262 : vector<1x128xi32>
    %c32_i32_51 = arith.constant 32 : i32
    %264 = vector.broadcast %c32_i32_51 : i32 to vector<1x128xi32>
    %265 = arith.cmpi slt, %263, %264 : vector<1x128xi32>
    %266 = arith.andi %261, %265 : vector<1x128xi1>
    %267 = arith.extui %266 : vector<1x128xi1> to vector<1x128xi32>
    %268 = arith.sitofp %267 : vector<1x128xi32> to vector<1x128xf32>
    %c126_i32 = arith.constant 126 : i32
    %269 = tpu.dynamic_rotate %221 by %c126_i32 dim 1 : vector<32x128xf32>, i32 -> vector<32x128xf32>
    %270 = vector.broadcast %268 : vector<1x128xf32> to vector<32x128xf32>
    %271 = arith.mulf %270, %269 : vector<32x128xf32>
    %272 = vector.broadcast %257 : f32 to vector<32x128xf32>
    %273 = arith.mulf %272, %271 : vector<32x128xf32>
    %274 = arith.addf %256, %273 : vector<32x128xf32>
    %c1_i32_52 = arith.constant 1 : i32
    %275 = tpu.dynamic_rotate %207 by %c1_i32_52 dim 0 : vector<32x128xf32>, i32 -> vector<32x128xf32>
    %276 = vector.broadcast %83 : vector<32x1xf32> to vector<32x128xf32>
    %277 = arith.mulf %276, %275 : vector<32x128xf32>
    %c35 = arith.constant 35 : index
    %278 = memref.load %arg5[%c35] : memref<82xf32, #tpu.memory_space<smem>>
    %c2_i32_53 = arith.constant 2 : i32
    %279 = tpu.dynamic_rotate %277 by %c2_i32_53 dim 1 : vector<32x128xf32>, i32 -> vector<32x128xf32>
    %280 = vector.broadcast %233 : vector<1x128xf32> to vector<32x128xf32>
    %281 = arith.mulf %280, %279 : vector<32x128xf32>
    %282 = vector.broadcast %278 : f32 to vector<32x128xf32>
    %283 = arith.mulf %282, %281 : vector<32x128xf32>
    %284 = arith.addf %274, %283 : vector<32x128xf32>
    %c36 = arith.constant 36 : index
    %285 = memref.load %arg5[%c36] : memref<82xf32, #tpu.memory_space<smem>>
    %c1_i32_54 = arith.constant 1 : i32
    %286 = tpu.dynamic_rotate %277 by %c1_i32_54 dim 1 : vector<32x128xf32>, i32 -> vector<32x128xf32>
    %287 = vector.broadcast %26 : vector<1x128xf32> to vector<32x128xf32>
    %288 = arith.mulf %287, %286 : vector<32x128xf32>
    %289 = vector.broadcast %285 : f32 to vector<32x128xf32>
    %290 = arith.mulf %289, %288 : vector<32x128xf32>
    %291 = arith.addf %284, %290 : vector<32x128xf32>
    %c37 = arith.constant 37 : index
    %292 = memref.load %arg5[%c37] : memref<82xf32, #tpu.memory_space<smem>>
    %293 = vector.broadcast %292 : f32 to vector<32x128xf32>
    %294 = arith.mulf %293, %277 : vector<32x128xf32>
    %295 = arith.addf %291, %294 : vector<32x128xf32>
    %c38 = arith.constant 38 : index
    %296 = memref.load %arg5[%c38] : memref<82xf32, #tpu.memory_space<smem>>
    %c127_i32_55 = arith.constant 127 : i32
    %297 = tpu.dynamic_rotate %277 by %c127_i32_55 dim 1 : vector<32x128xf32>, i32 -> vector<32x128xf32>
    %298 = vector.broadcast %40 : vector<1x128xf32> to vector<32x128xf32>
    %299 = arith.mulf %298, %297 : vector<32x128xf32>
    %300 = vector.broadcast %296 : f32 to vector<32x128xf32>
    %301 = arith.mulf %300, %299 : vector<32x128xf32>
    %302 = arith.addf %295, %301 : vector<32x128xf32>
    %c39 = arith.constant 39 : index
    %303 = memref.load %arg5[%c39] : memref<82xf32, #tpu.memory_space<smem>>
    %c126_i32_56 = arith.constant 126 : i32
    %304 = tpu.dynamic_rotate %277 by %c126_i32_56 dim 1 : vector<32x128xf32>, i32 -> vector<32x128xf32>
    %305 = vector.broadcast %268 : vector<1x128xf32> to vector<32x128xf32>
    %306 = arith.mulf %305, %304 : vector<32x128xf32>
    %307 = vector.broadcast %303 : f32 to vector<32x128xf32>
    %308 = arith.mulf %307, %306 : vector<32x128xf32>
    %309 = arith.addf %302, %308 : vector<32x128xf32>
    %c40 = arith.constant 40 : index
    %310 = memref.load %arg5[%c40] : memref<82xf32, #tpu.memory_space<smem>>
    %c2_i32_57 = arith.constant 2 : i32
    %311 = tpu.dynamic_rotate %207 by %c2_i32_57 dim 1 : vector<32x128xf32>, i32 -> vector<32x128xf32>
    %312 = vector.broadcast %233 : vector<1x128xf32> to vector<32x128xf32>
    %313 = arith.mulf %312, %311 : vector<32x128xf32>
    %314 = vector.broadcast %310 : f32 to vector<32x128xf32>
    %315 = arith.mulf %314, %313 : vector<32x128xf32>
    %316 = arith.addf %309, %315 : vector<32x128xf32>
    %c41 = arith.constant 41 : index
    %317 = memref.load %arg5[%c41] : memref<82xf32, #tpu.memory_space<smem>>
    %c1_i32_58 = arith.constant 1 : i32
    %318 = tpu.dynamic_rotate %207 by %c1_i32_58 dim 1 : vector<32x128xf32>, i32 -> vector<32x128xf32>
    %319 = vector.broadcast %26 : vector<1x128xf32> to vector<32x128xf32>
    %320 = arith.mulf %319, %318 : vector<32x128xf32>
    %321 = vector.broadcast %317 : f32 to vector<32x128xf32>
    %322 = arith.mulf %321, %320 : vector<32x128xf32>
    %323 = arith.addf %316, %322 : vector<32x128xf32>
    %c42 = arith.constant 42 : index
    %324 = memref.load %arg5[%c42] : memref<82xf32, #tpu.memory_space<smem>>
    %325 = vector.broadcast %324 : f32 to vector<32x128xf32>
    %326 = arith.mulf %325, %207 : vector<32x128xf32>
    %327 = arith.addf %323, %326 : vector<32x128xf32>
    %c43 = arith.constant 43 : index
    %328 = memref.load %arg5[%c43] : memref<82xf32, #tpu.memory_space<smem>>
    %c127_i32_59 = arith.constant 127 : i32
    %329 = tpu.dynamic_rotate %207 by %c127_i32_59 dim 1 : vector<32x128xf32>, i32 -> vector<32x128xf32>
    %330 = vector.broadcast %40 : vector<1x128xf32> to vector<32x128xf32>
    %331 = arith.mulf %330, %329 : vector<32x128xf32>
    %332 = vector.broadcast %328 : f32 to vector<32x128xf32>
    %333 = arith.mulf %332, %331 : vector<32x128xf32>
    %334 = arith.addf %327, %333 : vector<32x128xf32>
    %c44 = arith.constant 44 : index
    %335 = memref.load %arg5[%c44] : memref<82xf32, #tpu.memory_space<smem>>
    %c126_i32_60 = arith.constant 126 : i32
    %336 = tpu.dynamic_rotate %207 by %c126_i32_60 dim 1 : vector<32x128xf32>, i32 -> vector<32x128xf32>
    %337 = vector.broadcast %268 : vector<1x128xf32> to vector<32x128xf32>
    %338 = arith.mulf %337, %336 : vector<32x128xf32>
    %339 = vector.broadcast %335 : f32 to vector<32x128xf32>
    %340 = arith.mulf %339, %338 : vector<32x128xf32>
    %341 = arith.addf %334, %340 : vector<32x128xf32>
    %c31_i32_61 = arith.constant 31 : i32
    %342 = tpu.dynamic_rotate %207 by %c31_i32_61 dim 0 : vector<32x128xf32>, i32 -> vector<32x128xf32>
    %343 = vector.broadcast %144 : vector<32x1xf32> to vector<32x128xf32>
    %344 = arith.mulf %343, %342 : vector<32x128xf32>
    %c45 = arith.constant 45 : index
    %345 = memref.load %arg5[%c45] : memref<82xf32, #tpu.memory_space<smem>>
    %c2_i32_62 = arith.constant 2 : i32
    %346 = tpu.dynamic_rotate %344 by %c2_i32_62 dim 1 : vector<32x128xf32>, i32 -> vector<32x128xf32>
    %347 = vector.broadcast %233 : vector<1x128xf32> to vector<32x128xf32>
    %348 = arith.mulf %347, %346 : vector<32x128xf32>
    %349 = vector.broadcast %345 : f32 to vector<32x128xf32>
    %350 = arith.mulf %349, %348 : vector<32x128xf32>
    %351 = arith.addf %341, %350 : vector<32x128xf32>
    %c46 = arith.constant 46 : index
    %352 = memref.load %arg5[%c46] : memref<82xf32, #tpu.memory_space<smem>>
    %c1_i32_63 = arith.constant 1 : i32
    %353 = tpu.dynamic_rotate %344 by %c1_i32_63 dim 1 : vector<32x128xf32>, i32 -> vector<32x128xf32>
    %354 = vector.broadcast %26 : vector<1x128xf32> to vector<32x128xf32>
    %355 = arith.mulf %354, %353 : vector<32x128xf32>
    %356 = vector.broadcast %352 : f32 to vector<32x128xf32>
    %357 = arith.mulf %356, %355 : vector<32x128xf32>
    %358 = arith.addf %351, %357 : vector<32x128xf32>
    %c47 = arith.constant 47 : index
    %359 = memref.load %arg5[%c47] : memref<82xf32, #tpu.memory_space<smem>>
    %360 = vector.broadcast %359 : f32 to vector<32x128xf32>
    %361 = arith.mulf %360, %344 : vector<32x128xf32>
    %362 = arith.addf %358, %361 : vector<32x128xf32>
    %c48 = arith.constant 48 : index
    %363 = memref.load %arg5[%c48] : memref<82xf32, #tpu.memory_space<smem>>
    %c127_i32_64 = arith.constant 127 : i32
    %364 = tpu.dynamic_rotate %344 by %c127_i32_64 dim 1 : vector<32x128xf32>, i32 -> vector<32x128xf32>
    %365 = vector.broadcast %40 : vector<1x128xf32> to vector<32x128xf32>
    %366 = arith.mulf %365, %364 : vector<32x128xf32>
    %367 = vector.broadcast %363 : f32 to vector<32x128xf32>
    %368 = arith.mulf %367, %366 : vector<32x128xf32>
    %369 = arith.addf %362, %368 : vector<32x128xf32>
    %c49 = arith.constant 49 : index
    %370 = memref.load %arg5[%c49] : memref<82xf32, #tpu.memory_space<smem>>
    %c126_i32_65 = arith.constant 126 : i32
    %371 = tpu.dynamic_rotate %344 by %c126_i32_65 dim 1 : vector<32x128xf32>, i32 -> vector<32x128xf32>
    %372 = vector.broadcast %268 : vector<1x128xf32> to vector<32x128xf32>
    %373 = arith.mulf %372, %371 : vector<32x128xf32>
    %374 = vector.broadcast %370 : f32 to vector<32x128xf32>
    %375 = arith.mulf %374, %373 : vector<32x128xf32>
    %376 = arith.addf %369, %375 : vector<32x128xf32>
    %c2_i32_66 = arith.constant 2 : i32
    %377 = vector.broadcast %c2_i32_66 : i32 to vector<32x1xi32>
    %378 = arith.addi %5, %377 : vector<32x1xi32>
    %c0_i32_67 = arith.constant 0 : i32
    %379 = vector.broadcast %c0_i32_67 : i32 to vector<32x1xi32>
    %380 = arith.cmpi sge, %378, %379 : vector<32x1xi32>
    %c2_i32_68 = arith.constant 2 : i32
    %381 = vector.broadcast %c2_i32_68 : i32 to vector<32x1xi32>
    %382 = arith.addi %5, %381 : vector<32x1xi32>
    %c32_i32_69 = arith.constant 32 : i32
    %383 = vector.broadcast %c32_i32_69 : i32 to vector<32x1xi32>
    %384 = arith.cmpi slt, %382, %383 : vector<32x1xi32>
    %385 = arith.andi %380, %384 : vector<32x1xi1>
    %386 = arith.extui %385 : vector<32x1xi1> to vector<32x1xi32>
    %387 = arith.sitofp %386 : vector<32x1xi32> to vector<32x1xf32>
    %c30_i32 = arith.constant 30 : i32
    %388 = tpu.dynamic_rotate %207 by %c30_i32 dim 0 : vector<32x128xf32>, i32 -> vector<32x128xf32>
    %389 = vector.broadcast %387 : vector<32x1xf32> to vector<32x128xf32>
    %390 = arith.mulf %389, %388 : vector<32x128xf32>
    %c50 = arith.constant 50 : index
    %391 = memref.load %arg5[%c50] : memref<82xf32, #tpu.memory_space<smem>>
    %c2_i32_70 = arith.constant 2 : i32
    %392 = tpu.dynamic_rotate %390 by %c2_i32_70 dim 1 : vector<32x128xf32>, i32 -> vector<32x128xf32>
    %393 = vector.broadcast %233 : vector<1x128xf32> to vector<32x128xf32>
    %394 = arith.mulf %393, %392 : vector<32x128xf32>
    %395 = vector.broadcast %391 : f32 to vector<32x128xf32>
    %396 = arith.mulf %395, %394 : vector<32x128xf32>
    %397 = arith.addf %376, %396 : vector<32x128xf32>
    %c51 = arith.constant 51 : index
    %398 = memref.load %arg5[%c51] : memref<82xf32, #tpu.memory_space<smem>>
    %c1_i32_71 = arith.constant 1 : i32
    %399 = tpu.dynamic_rotate %390 by %c1_i32_71 dim 1 : vector<32x128xf32>, i32 -> vector<32x128xf32>
    %400 = vector.broadcast %26 : vector<1x128xf32> to vector<32x128xf32>
    %401 = arith.mulf %400, %399 : vector<32x128xf32>
    %402 = vector.broadcast %398 : f32 to vector<32x128xf32>
    %403 = arith.mulf %402, %401 : vector<32x128xf32>
    %404 = arith.addf %397, %403 : vector<32x128xf32>
    %c52 = arith.constant 52 : index
    %405 = memref.load %arg5[%c52] : memref<82xf32, #tpu.memory_space<smem>>
    %406 = vector.broadcast %405 : f32 to vector<32x128xf32>
    %407 = arith.mulf %406, %390 : vector<32x128xf32>
    %408 = arith.addf %404, %407 : vector<32x128xf32>
    %c53 = arith.constant 53 : index
    %409 = memref.load %arg5[%c53] : memref<82xf32, #tpu.memory_space<smem>>
    %c127_i32_72 = arith.constant 127 : i32
    %410 = tpu.dynamic_rotate %390 by %c127_i32_72 dim 1 : vector<32x128xf32>, i32 -> vector<32x128xf32>
    %411 = vector.broadcast %40 : vector<1x128xf32> to vector<32x128xf32>
    %412 = arith.mulf %411, %410 : vector<32x128xf32>
    %413 = vector.broadcast %409 : f32 to vector<32x128xf32>
    %414 = arith.mulf %413, %412 : vector<32x128xf32>
    %415 = arith.addf %408, %414 : vector<32x128xf32>
    %c54 = arith.constant 54 : index
    %416 = memref.load %arg5[%c54] : memref<82xf32, #tpu.memory_space<smem>>
    %c126_i32_73 = arith.constant 126 : i32
    %417 = tpu.dynamic_rotate %390 by %c126_i32_73 dim 1 : vector<32x128xf32>, i32 -> vector<32x128xf32>
    %418 = vector.broadcast %268 : vector<1x128xf32> to vector<32x128xf32>
    %419 = arith.mulf %418, %417 : vector<32x128xf32>
    %420 = vector.broadcast %416 : f32 to vector<32x128xf32>
    %421 = arith.mulf %420, %419 : vector<32x128xf32>
    %422 = arith.addf %415, %421 : vector<32x128xf32>
    %c55 = arith.constant 55 : index
    %423 = memref.load %arg5[%c55] : memref<82xf32, #tpu.memory_space<smem>>
    %424 = vector.broadcast %423 : f32 to vector<32x128xf32>
    %425 = arith.addf %422, %424 : vector<32x128xf32>
    %cst_74 = arith.constant 0.000000e+00 : f32
    %426 = vector.broadcast %cst_74 : f32 to vector<32x128xf32>
    %427 = arith.maximumf %425, %426 : vector<32x128xf32>
    %c1_i32_75 = arith.constant 1 : i32
    %428 = tpu.dynamic_rotate %427 by %c1_i32_75 dim 1 : vector<32x128xf32>, i32 -> vector<32x128xf32>
    %429 = vector.broadcast %26 : vector<1x128xf32> to vector<32x128xf32>
    %430 = arith.mulf %429, %428 : vector<32x128xf32>
    %c127_i32_76 = arith.constant 127 : i32
    %431 = tpu.dynamic_rotate %427 by %c127_i32_76 dim 1 : vector<32x128xf32>, i32 -> vector<32x128xf32>
    %432 = vector.broadcast %40 : vector<1x128xf32> to vector<32x128xf32>
    %433 = arith.mulf %432, %431 : vector<32x128xf32>
    %c56 = arith.constant 56 : index
    %434 = memref.load %arg5[%c56] : memref<82xf32, #tpu.memory_space<smem>>
    %435 = vector.broadcast %434 : f32 to vector<32x128xf32>
    %436 = arith.mulf %435, %430 : vector<32x128xf32>
    %c57 = arith.constant 57 : index
    %437 = memref.load %arg5[%c57] : memref<82xf32, #tpu.memory_space<smem>>
    %438 = vector.broadcast %437 : f32 to vector<32x128xf32>
    %439 = arith.mulf %438, %427 : vector<32x128xf32>
    %440 = arith.addf %436, %439 : vector<32x128xf32>
    %c58 = arith.constant 58 : index
    %441 = memref.load %arg5[%c58] : memref<82xf32, #tpu.memory_space<smem>>
    %442 = vector.broadcast %441 : f32 to vector<32x128xf32>
    %443 = arith.mulf %442, %433 : vector<32x128xf32>
    %444 = arith.addf %440, %443 : vector<32x128xf32>
    %c1_i32_77 = arith.constant 1 : i32
    %445 = tpu.dynamic_rotate %444 by %c1_i32_77 dim 0 : vector<32x128xf32>, i32 -> vector<32x128xf32>
    %446 = vector.broadcast %83 : vector<32x1xf32> to vector<32x128xf32>
    %447 = arith.mulf %446, %445 : vector<32x128xf32>
    %c59 = arith.constant 59 : index
    %448 = memref.load %arg5[%c59] : memref<82xf32, #tpu.memory_space<smem>>
    %449 = vector.broadcast %448 : f32 to vector<32x128xf32>
    %450 = arith.mulf %449, %430 : vector<32x128xf32>
    %c60 = arith.constant 60 : index
    %451 = memref.load %arg5[%c60] : memref<82xf32, #tpu.memory_space<smem>>
    %452 = vector.broadcast %451 : f32 to vector<32x128xf32>
    %453 = arith.mulf %452, %427 : vector<32x128xf32>
    %454 = arith.addf %450, %453 : vector<32x128xf32>
    %c61 = arith.constant 61 : index
    %455 = memref.load %arg5[%c61] : memref<82xf32, #tpu.memory_space<smem>>
    %456 = vector.broadcast %455 : f32 to vector<32x128xf32>
    %457 = arith.mulf %456, %433 : vector<32x128xf32>
    %458 = arith.addf %454, %457 : vector<32x128xf32>
    %459 = arith.addf %447, %458 : vector<32x128xf32>
    %c62 = arith.constant 62 : index
    %460 = memref.load %arg5[%c62] : memref<82xf32, #tpu.memory_space<smem>>
    %461 = vector.broadcast %460 : f32 to vector<32x128xf32>
    %462 = arith.mulf %461, %430 : vector<32x128xf32>
    %c63 = arith.constant 63 : index
    %463 = memref.load %arg5[%c63] : memref<82xf32, #tpu.memory_space<smem>>
    %464 = vector.broadcast %463 : f32 to vector<32x128xf32>
    %465 = arith.mulf %464, %427 : vector<32x128xf32>
    %466 = arith.addf %462, %465 : vector<32x128xf32>
    %c64 = arith.constant 64 : index
    %467 = memref.load %arg5[%c64] : memref<82xf32, #tpu.memory_space<smem>>
    %468 = vector.broadcast %467 : f32 to vector<32x128xf32>
    %469 = arith.mulf %468, %433 : vector<32x128xf32>
    %470 = arith.addf %466, %469 : vector<32x128xf32>
    %c31_i32_78 = arith.constant 31 : i32
    %471 = tpu.dynamic_rotate %470 by %c31_i32_78 dim 0 : vector<32x128xf32>, i32 -> vector<32x128xf32>
    %472 = vector.broadcast %144 : vector<32x1xf32> to vector<32x128xf32>
    %473 = arith.mulf %472, %471 : vector<32x128xf32>
    %474 = arith.addf %459, %473 : vector<32x128xf32>
    %c65 = arith.constant 65 : index
    %475 = memref.load %arg5[%c65] : memref<82xf32, #tpu.memory_space<smem>>
    %476 = vector.broadcast %475 : f32 to vector<32x128xf32>
    %477 = arith.addf %474, %476 : vector<32x128xf32>
    %cst_79 = arith.constant 0.000000e+00 : f32
    %478 = vector.broadcast %cst_79 : f32 to vector<32x128xf32>
    %479 = arith.maximumf %477, %478 : vector<32x128xf32>
    %cst_80 = arith.constant 0.000000e+00 : f32
    %cst_81 = arith.constant 1.000000e+00 : f32
    %480 = vector.broadcast %cst_80 : f32 to vector<32x128xf32>
    %481 = arith.maximumf %480, %207 : vector<32x128xf32>
    %482 = vector.broadcast %cst_81 : f32 to vector<32x128xf32>
    %483 = arith.minimumf %482, %481 : vector<32x128xf32>
    %c66 = arith.constant 66 : index
    %484 = memref.load %arg5[%c66] : memref<82xf32, #tpu.memory_space<smem>>
    %485 = vector.broadcast %484 : f32 to vector<32x128xf32>
    %486 = arith.mulf %485, %479 : vector<32x128xf32>
    %c69 = arith.constant 69 : index
    %487 = memref.load %arg5[%c69] : memref<82xf32, #tpu.memory_space<smem>>
    %488 = vector.broadcast %487 : f32 to vector<32x128xf32>
    %489 = arith.addf %486, %488 : vector<32x128xf32>
    %cst_82 = arith.constant -6.000000e+01 : f32
    %cst_83 = arith.constant 6.000000e+01 : f32
    %490 = vector.broadcast %cst_82 : f32 to vector<32x128xf32>
    %491 = arith.maximumf %490, %489 : vector<32x128xf32>
    %492 = vector.broadcast %cst_83 : f32 to vector<32x128xf32>
    %493 = arith.minimumf %492, %491 : vector<32x128xf32>
    %cst_84 = arith.constant 0.000000e+00 : f32
    %494 = vector.broadcast %cst_84 : f32 to vector<32x128xf32>
    %495 = arith.subf %494, %493 : vector<32x128xf32>
    %496 = math.exp %495 : vector<32x128xf32>
    %cst_85 = arith.constant 1.000000e+00 : f32
    %497 = vector.broadcast %cst_85 : f32 to vector<32x128xf32>
    %498 = arith.addf %497, %496 : vector<32x128xf32>
    %499 = tpu.reciprocal %498 {approx = true} : vector<32x128xf32> -> vector<32x128xf32>
    %500 = arith.mulf %498, %499 : vector<32x128xf32>
    %cst_86 = arith.constant 2.000000e+00 : f32
    %501 = vector.broadcast %cst_86 : f32 to vector<32x128xf32>
    %502 = arith.subf %501, %500 : vector<32x128xf32>
    %503 = arith.mulf %499, %502 : vector<32x128xf32>
    %504 = arith.mulf %503, %483 : vector<32x128xf32>
    %cst_87 = arith.constant 1.000000e+00 : f32
    %505 = vector.broadcast %cst_87 : f32 to vector<32x128xf32>
    %506 = arith.subf %505, %483 : vector<32x128xf32>
    %507 = arith.mulf %504, %506 : vector<32x128xf32>
    %508 = arith.addf %483, %507 : vector<32x128xf32>
    %c67 = arith.constant 67 : index
    %509 = memref.load %arg5[%c67] : memref<82xf32, #tpu.memory_space<smem>>
    %510 = vector.broadcast %509 : f32 to vector<32x128xf32>
    %511 = arith.mulf %510, %479 : vector<32x128xf32>
    %c70 = arith.constant 70 : index
    %512 = memref.load %arg5[%c70] : memref<82xf32, #tpu.memory_space<smem>>
    %513 = vector.broadcast %512 : f32 to vector<32x128xf32>
    %514 = arith.addf %511, %513 : vector<32x128xf32>
    %cst_88 = arith.constant -6.000000e+01 : f32
    %cst_89 = arith.constant 6.000000e+01 : f32
    %515 = vector.broadcast %cst_88 : f32 to vector<32x128xf32>
    %516 = arith.maximumf %515, %514 : vector<32x128xf32>
    %517 = vector.broadcast %cst_89 : f32 to vector<32x128xf32>
    %518 = arith.minimumf %517, %516 : vector<32x128xf32>
    %cst_90 = arith.constant 0.000000e+00 : f32
    %519 = vector.broadcast %cst_90 : f32 to vector<32x128xf32>
    %520 = arith.subf %519, %518 : vector<32x128xf32>
    %521 = math.exp %520 : vector<32x128xf32>
    %cst_91 = arith.constant 1.000000e+00 : f32
    %522 = vector.broadcast %cst_91 : f32 to vector<32x128xf32>
    %523 = arith.addf %522, %521 : vector<32x128xf32>
    %524 = tpu.reciprocal %523 {approx = true} : vector<32x128xf32> -> vector<32x128xf32>
    %525 = arith.mulf %523, %524 : vector<32x128xf32>
    %cst_92 = arith.constant 2.000000e+00 : f32
    %526 = vector.broadcast %cst_92 : f32 to vector<32x128xf32>
    %527 = arith.subf %526, %525 : vector<32x128xf32>
    %528 = arith.mulf %524, %527 : vector<32x128xf32>
    %529 = arith.mulf %528, %508 : vector<32x128xf32>
    %cst_93 = arith.constant 1.000000e+00 : f32
    %530 = vector.broadcast %cst_93 : f32 to vector<32x128xf32>
    %531 = arith.subf %530, %508 : vector<32x128xf32>
    %532 = arith.mulf %529, %531 : vector<32x128xf32>
    %533 = arith.addf %508, %532 : vector<32x128xf32>
    %c68 = arith.constant 68 : index
    %534 = memref.load %arg5[%c68] : memref<82xf32, #tpu.memory_space<smem>>
    %535 = vector.broadcast %534 : f32 to vector<32x128xf32>
    %536 = arith.mulf %535, %479 : vector<32x128xf32>
    %c71 = arith.constant 71 : index
    %537 = memref.load %arg5[%c71] : memref<82xf32, #tpu.memory_space<smem>>
    %538 = vector.broadcast %537 : f32 to vector<32x128xf32>
    %539 = arith.addf %536, %538 : vector<32x128xf32>
    %cst_94 = arith.constant -6.000000e+01 : f32
    %cst_95 = arith.constant 6.000000e+01 : f32
    %540 = vector.broadcast %cst_94 : f32 to vector<32x128xf32>
    %541 = arith.maximumf %540, %539 : vector<32x128xf32>
    %542 = vector.broadcast %cst_95 : f32 to vector<32x128xf32>
    %543 = arith.minimumf %542, %541 : vector<32x128xf32>
    %cst_96 = arith.constant 0.000000e+00 : f32
    %544 = vector.broadcast %cst_96 : f32 to vector<32x128xf32>
    %545 = arith.subf %544, %543 : vector<32x128xf32>
    %546 = math.exp %545 : vector<32x128xf32>
    %cst_97 = arith.constant 1.000000e+00 : f32
    %547 = vector.broadcast %cst_97 : f32 to vector<32x128xf32>
    %548 = arith.addf %547, %546 : vector<32x128xf32>
    %549 = tpu.reciprocal %548 {approx = true} : vector<32x128xf32> -> vector<32x128xf32>
    %550 = arith.mulf %548, %549 : vector<32x128xf32>
    %cst_98 = arith.constant 2.000000e+00 : f32
    %551 = vector.broadcast %cst_98 : f32 to vector<32x128xf32>
    %552 = arith.subf %551, %550 : vector<32x128xf32>
    %553 = arith.mulf %549, %552 : vector<32x128xf32>
    %554 = arith.mulf %553, %533 : vector<32x128xf32>
    %cst_99 = arith.constant 1.000000e+00 : f32
    %555 = vector.broadcast %cst_99 : f32 to vector<32x128xf32>
    %556 = arith.subf %555, %533 : vector<32x128xf32>
    %557 = arith.mulf %554, %556 : vector<32x128xf32>
    %558 = arith.addf %533, %557 : vector<32x128xf32>
    %c1_i32_100 = arith.constant 1 : i32
    %559 = tpu.dynamic_rotate %558 by %c1_i32_100 dim 1 : vector<32x128xf32>, i32 -> vector<32x128xf32>
    %560 = vector.broadcast %26 : vector<1x128xf32> to vector<32x128xf32>
    %561 = arith.mulf %560, %559 : vector<32x128xf32>
    %c127_i32_101 = arith.constant 127 : i32
    %562 = tpu.dynamic_rotate %558 by %c127_i32_101 dim 1 : vector<32x128xf32>, i32 -> vector<32x128xf32>
    %563 = vector.broadcast %40 : vector<1x128xf32> to vector<32x128xf32>
    %564 = arith.mulf %563, %562 : vector<32x128xf32>
    %c72 = arith.constant 72 : index
    %565 = memref.load %arg5[%c72] : memref<82xf32, #tpu.memory_space<smem>>
    %566 = vector.broadcast %565 : f32 to vector<32x128xf32>
    %567 = arith.mulf %566, %561 : vector<32x128xf32>
    %c73 = arith.constant 73 : index
    %568 = memref.load %arg5[%c73] : memref<82xf32, #tpu.memory_space<smem>>
    %569 = vector.broadcast %568 : f32 to vector<32x128xf32>
    %570 = arith.mulf %569, %558 : vector<32x128xf32>
    %571 = arith.addf %567, %570 : vector<32x128xf32>
    %c74 = arith.constant 74 : index
    %572 = memref.load %arg5[%c74] : memref<82xf32, #tpu.memory_space<smem>>
    %573 = vector.broadcast %572 : f32 to vector<32x128xf32>
    %574 = arith.mulf %573, %564 : vector<32x128xf32>
    %575 = arith.addf %571, %574 : vector<32x128xf32>
    %c1_i32_102 = arith.constant 1 : i32
    %576 = tpu.dynamic_rotate %575 by %c1_i32_102 dim 0 : vector<32x128xf32>, i32 -> vector<32x128xf32>
    %577 = vector.broadcast %83 : vector<32x1xf32> to vector<32x128xf32>
    %578 = arith.mulf %577, %576 : vector<32x128xf32>
    %c75 = arith.constant 75 : index
    %579 = memref.load %arg5[%c75] : memref<82xf32, #tpu.memory_space<smem>>
    %580 = vector.broadcast %579 : f32 to vector<32x128xf32>
    %581 = arith.mulf %580, %561 : vector<32x128xf32>
    %c76 = arith.constant 76 : index
    %582 = memref.load %arg5[%c76] : memref<82xf32, #tpu.memory_space<smem>>
    %583 = vector.broadcast %582 : f32 to vector<32x128xf32>
    %584 = arith.mulf %583, %558 : vector<32x128xf32>
    %585 = arith.addf %581, %584 : vector<32x128xf32>
    %c77 = arith.constant 77 : index
    %586 = memref.load %arg5[%c77] : memref<82xf32, #tpu.memory_space<smem>>
    %587 = vector.broadcast %586 : f32 to vector<32x128xf32>
    %588 = arith.mulf %587, %564 : vector<32x128xf32>
    %589 = arith.addf %585, %588 : vector<32x128xf32>
    %590 = arith.addf %578, %589 : vector<32x128xf32>
    %c78 = arith.constant 78 : index
    %591 = memref.load %arg5[%c78] : memref<82xf32, #tpu.memory_space<smem>>
    %592 = vector.broadcast %591 : f32 to vector<32x128xf32>
    %593 = arith.mulf %592, %561 : vector<32x128xf32>
    %c79 = arith.constant 79 : index
    %594 = memref.load %arg5[%c79] : memref<82xf32, #tpu.memory_space<smem>>
    %595 = vector.broadcast %594 : f32 to vector<32x128xf32>
    %596 = arith.mulf %595, %558 : vector<32x128xf32>
    %597 = arith.addf %593, %596 : vector<32x128xf32>
    %c80 = arith.constant 80 : index
    %598 = memref.load %arg5[%c80] : memref<82xf32, #tpu.memory_space<smem>>
    %599 = vector.broadcast %598 : f32 to vector<32x128xf32>
    %600 = arith.mulf %599, %564 : vector<32x128xf32>
    %601 = arith.addf %597, %600 : vector<32x128xf32>
    %c31_i32_103 = arith.constant 31 : i32
    %602 = tpu.dynamic_rotate %601 by %c31_i32_103 dim 0 : vector<32x128xf32>, i32 -> vector<32x128xf32>
    %603 = vector.broadcast %144 : vector<32x1xf32> to vector<32x128xf32>
    %604 = arith.mulf %603, %602 : vector<32x128xf32>
    %605 = arith.addf %590, %604 : vector<32x128xf32>
    %c81 = arith.constant 81 : index
    %606 = memref.load %arg5[%c81] : memref<82xf32, #tpu.memory_space<smem>>
    %607 = vector.broadcast %606 : f32 to vector<32x128xf32>
    %608 = arith.addf %605, %607 : vector<32x128xf32>
    %609 = vector.extract_strided_slice %608 {offsets = [8, 0], sizes = [16, 128], strides = [1, 1]} : vector<32x128xf32> to vector<16x128xf32>
    %610 = vector.extract_strided_slice %10 {offsets = [8, 0], sizes = [16, 128], strides = [1, 1]} : vector<32x128xf32> to vector<16x128xf32>
    %611 = arith.addf %609, %610 : vector<16x128xf32>
    %c0_104 = arith.constant 0 : index
    %c0_105 = arith.constant 0 : index
    %c0_106 = arith.constant 0 : index
    %c0_107 = arith.constant 0 : index
    %612 = vector.load %arg6[%c0_104, %c0_105, %c0_106, %c0_107] : memref<1x2x16x128xf32, #tpu.memory_space<vmem>>, vector<1x1x16x128xf32>
    %613 = vector.shape_cast %612 : vector<1x1x16x128xf32> to vector<16x128xf32>
    %614 = vector.shape_cast %611 : vector<16x128xf32> to vector<1x1x16x128xf32>
    tpu.vector_store %arg6[%c0_104, %c0_105, %c0_106, %c0_107], %614 {strides = array<i32>} : memref<1x2x16x128xf32, #tpu.memory_space<vmem>>, vector<1x1x16x128xf32>,
    %615 = vector.extract_strided_slice %608 {offsets = [8, 0], sizes = [16, 128], strides = [1, 1]} : vector<32x128xf32> to vector<16x128xf32>
    %616 = vector.extract_strided_slice %15 {offsets = [8, 0], sizes = [16, 128], strides = [1, 1]} : vector<32x128xf32> to vector<16x128xf32>
    %617 = arith.addf %615, %616 : vector<16x128xf32>
    %c0_108 = arith.constant 0 : index
    %c1_109 = arith.constant 1 : index
    %c0_110 = arith.constant 0 : index
    %c0_111 = arith.constant 0 : index
    %618 = vector.load %arg6[%c0_108, %c1_109, %c0_110, %c0_111] : memref<1x2x16x128xf32, #tpu.memory_space<vmem>>, vector<1x1x16x128xf32>
    %619 = vector.shape_cast %618 : vector<1x1x16x128xf32> to vector<16x128xf32>
    %620 = vector.shape_cast %617 : vector<16x128xf32> to vector<1x1x16x128xf32>
    tpu.vector_store %arg6[%c0_108, %c1_109, %c0_110, %c0_111], %620 {strides = array<i32>} : memref<1x2x16x128xf32, #tpu.memory_space<vmem>>, vector<1x1x16x128xf32>,
    return
  }
  func.func @transform_0(%arg0: i32, %arg1: i32) -> (i32, i32, i32, i32) {
    %c0_i32 = arith.constant 0 : i32
    %c0_i32_0 = arith.constant 0 : i32
    %c0_i32_1 = arith.constant 0 : i32
    return %arg0, %c0_i32, %arg1, %c0_i32_0 : i32, i32, i32, i32
  }
  func.func @transform_1(%arg0: i32, %arg1: i32) -> (i32, i32, i32, i32) {
    %c1_i32 = arith.constant 1 : i32
    %0 = arith.addi %arg1, %c1_i32 : i32
    %c1_i32_0 = arith.constant 1 : i32
    %1 = arith.muli %0, %c1_i32_0 : i32
    %c0_i32 = arith.constant 0 : i32
    %c0_i32_1 = arith.constant 0 : i32
    %c0_i32_2 = arith.constant 0 : i32
    return %arg0, %c0_i32, %1, %c0_i32_1 : i32, i32, i32, i32
  }
  func.func @transform_2(%arg0: i32, %arg1: i32) -> (i32, i32) {
    %c0_i32 = arith.constant 0 : i32
    %c0_i32_0 = arith.constant 0 : i32
    %c0_i32_1 = arith.constant 0 : i32
    return %c0_i32, %c0_i32_0 : i32, i32
  }
  func.func @transform_3(%arg0: i32, %arg1: i32) -> i32 {
    %c0_i32 = arith.constant 0 : i32
    %c0_i32_0 = arith.constant 0 : i32
    return %c0_i32 : i32
  }
  func.func @transform_4(%arg0: i32, %arg1: i32) -> (i32, i32, i32, i32) {
    %c0_i32 = arith.constant 0 : i32
    %c0_i32_0 = arith.constant 0 : i32
    %c0_i32_1 = arith.constant 0 : i32
    return %arg0, %c0_i32, %arg1, %c0_i32_0 : i32, i32, i32, i32
  }
}

</mosaic_0001>

<bundles_post_ra>
// kernel: tpu_custom_call.1
= control target key start
LH: loop header
LB: loop body
LE: loop exit
PB: predicated region body
PF: predicated region fallthrough
CT: control target
= control target key end

     0   :  { %s3954_s0 = inlined_call_operand.hbm [shape: f32[1,2,48,128], index: 0, kind: input, shape index: {}]   ;;  %s3955_s1 = inlined_call_operand.hbm [shape: f32[1,2,48,128], index: 1, kind: input, shape index: {}]   ;;  %s3956_s2 = inlined_call_operand.vmem [shape: s32[1,128], index: 2, kind: input, shape index: {}]   ;;  %s3957_s3 = inlined_call_operand.vmem [shape: f32[82], index: 3, kind: input, shape index: {}]   ;;  %s3958_s4 = inlined_call_operand.hbm [shape: f32[1,2,32,128], index: 4, kind: output, shape index: {}]  }
   0x1   :  { %4007 = sst [smem:[#allocation47_spill]] %s3954_s0 }
   0x2   :  { %4008 = sst [smem:[#allocation48_spill]] %s3957_s3 }
   0x3   :  { %9 = vsyncpa [#allocation3], 0 }
   0x4   :  { %11 = vsyncpa [#allocation3 + $0x1], 0 }
   0x5   :  { %12 = vsyncpa [#allocation7], 0 }
   0x6   :  { %14 = vsyncpa [#allocation7 + $0x1], 0 }
   0x7   :  { %15 = vsyncpa [#allocation5], 0 }
   0x8   :  { %16 = vsyncpa [#allocation4], 0 }
   0x9   :  { %18 = vsyncpa [#allocation4 + $0x1], 0  ;;  %s2604_s15 = smov 0   ;;  %s2606_s16 = smov 0  }
   0xa   :  { %s2608_s17 = smov 0   ;;  %s2610_s18 = smov 0  }
   0xb   :  { %s2612_s19 = smov 0   ;;  %s2614_s20 = smov 0  }
   0xc   :  { %s2616_s21 = smov 0   ;;  %s2618_s22 = smov 0  }
   0xd   :  { %s2620_s23 = smov 0  }
   0xe LB: > { %4009 = sst [smem:[#allocation22_spill]] %s2540_s20  ;;  %s2112_s24 = sadd.s32 4294967295, %s2552_s23   ;;  %s2552_s23 = sphi %s2620_s23, %s24_s23   ;;  %s2548_s22 = sphi %s2618_s22, %s4112_s22   ;;  %s2544_s21 = sphi %s2616_s21, %s4105_s21   ;;  %s2540_s20 = sphi %s2614_s20, %s4104_s20   ;;  %s2536_s19 = sphi %s2612_s19, %s4111_s19   ;;  %s2532_s18 = sphi %s2610_s18, %s4110_s18   ;;  %s2528_s17 = sphi %s2608_s17, %s4109_s17   ;;  %s2524_s16 = sphi %s2606_s16, %s4108_s16   ;;  %s2520_s15 = sphi %s2604_s15, %s4107_s15  }
   0xf   : > { %4010 = sst [smem:[#allocation23_spill]] %s2548_s22  ;;  %s2113_s25 = sadd.s32 4294967294, %s2552_s23  }
  0x10   : > { %4011 = sst [smem:[#allocation24_spill]] %s2552_s23  ;;  %s33_s26 = sadd.s32 1, %s2548_s22 }
  0x11   : > { %s45_s27 = sadd.s32 1, %s2540_s20  ;;  %p34_p0 = scmp.ge.s32.totalorder %s33_s26, 2 }
  0x12   : > { %p52_p1 = scmp.ne.s32.totalorder %s2540_s20, %s2536_s19  ;;  %p53_p2 = scmp.eq.s32.totalorder %s2552_s23, 0 }
  0x13   : > { %p3959_p3 = scmp.ne.s32.totalorder %s2536_s19, %s2532_s18  ;;  %p2669_p5 = scmp.eq.s32.totalorder %s2112_s24, 0 }
  0x14   : > { %s2658_s28 = scalar_select %p34_p0, 0, %s33_s26  }
  0x15   : > { %p2665_p4 = por %p53_p2, %p52_p1  ;;  %p2681_p7 = por %p2669_p5, %p3959_p3 }
  0x16   : > { %4012 = sst [smem:[#allocation25_spill]] %s2658_s28  ;;  %s41_s5 = ssub.s32 %s2548_s22, %s2658_s28 }
  0x17   : > { %s4013_s29 = scalar_select %p2665_p4, 1, 0 }
  0x18   : > { %s69_s6 = sadd.s32 1, %s2658_s28  ;;  %p43_p6 = scmp.eq.s32.totalorder %s41_s5, 0 }
  0x19   : > { %s4015_s7 = scalar_select %p2681_p7, 1, 0 }
  0x1a   : > { %s71_s8 = ssub.s32 %s33_s26, %s69_s6  ;;  %s75_s9 = sadd.s32 1, %s2528_s17 }
  0x1b   : > { %s2687_s10 = scalar_select %p43_p6, %s2540_s20, %s45_s27  }
  0x1c   : > { %p73_p8 = scmp.eq.s32.totalorder %s71_s8, 0  ;;  %p82_p9 = scmp.ne.s32.totalorder %s2528_s17, %s2524_s16 }
  0x1d   : > { %4016 = sst [smem:[#allocation26_spill]] %s2687_s10  ;;  %p88_p10 = scmp.ne.s32.totalorder %s2524_s16, %s2520_s15 }
  0x1e   : > { %p156_p11 = scmp.eq.s32.totalorder %s2112_s24, 1  ;;  %p2698_p12 = por %p82_p9, %p53_p2 }
  0x1f   : > { %s2694_s11 = scalar_select %p73_p8, %s2528_s17, %s75_s9  }
  0x20   : > { %p2704_p13 = por %p88_p10, %p2669_p5  ;;  %p2711_p0 = por %p156_p11, %p52_p1 }
  0x21   : > { %4017 = sst [smem:[#allocation27_spill]] %s2694_s11  ;;  %p162_p6 = scmp.eq.s32.totalorder %s2113_s25, 1 }
  0x22   : > { %s4019_s13 = scalar_select %p2704_p13, 1, 0 }
  0x23   : > { %s4020_s14 = scalar_select %p2711_p0, 1, 0 }
  0x24   : > { %p2114_p3 = scmp.ge.s32.totalorder %s2552_s23, 1  ;;  %p169_p7 = scmp.lt.s32.totalorder %s2552_s23, 3 }
  0x25   : > { %p4021_p8 = scmp.ne.s32.totalorder %s2536_s19, %s2532_s18  ;;  %s4024_s3 = sld [smem:[#allocation48_spill]] }
  0x26   : > { %p2724_p2 = pnand %p2114_p3, %p169_p7 }
  0x27   : > { %p2720_p4 = por %p162_p6, %p4021_p8 }
  0x28   : > { %p2291_p1 = pneg %p2724_p2 }
  0x29   : > { %s4022_s15 = scalar_select %p2720_p4, 1, 0 }
  0x2a   : > { %p2292_p9 = pnand %p2291_p1, %p2669_p5 }
  0x2b   : > { %s185_s5 = sshll.u32 %s4024_s3, 4  ;;  %s186_s5 = int_to_ptr.vmem [resolvable:$true] %s185_s5 }
  0x2c   : > { %s2451_s25 = scalar_lea.vmem %s186_s5, 16  ;;  %p2453_p11 = pneg %p2292_p9 }
  0x2d   : > { %p2452_p10 = scmp.ne.s32.totalorder %s186_s5, %s2451_s25  ;;  %p2459_p4 = scmp.lt.s32.totalorder %s186_s5, %s186_s5 }
  0x2e   : > { %p2460_p3 = scmp.lt.s32.totalorder %s2451_s25, %s2451_s25 }
  0x2f   : > { %p2454_p6 = pnand %p2453_p11, %p2452_p10 }
  0x30   : > { %p2461_p7 = por %p2460_p3, %p2459_p4 }
  0x31   : > { %p2455_p8 = pneg %p2454_p6 }
  0x33   : > { %p2462_p0 = pnand %p2461_p7, %p2455_p8 }
  0x35   : > { %2465 = shalt.err (!%p2462_p0)
}
  0x36   : > { %s2554_s6 = smov [#allocation8]   ;;  %p2116_p13 = scmp.ge.s32.totalorder %s2552_s23, 2 }
  0x37   : > { %2294 = dma.vmem_to_smem (!%p2292_p9), %s186_s5, 16, %s2554_s6, [#allocation5]  }
  0x38   : > { %192 = sbr.rel (%p2116_p13) target bundleno = 91 (0x5b), region = 24 }
  0x3f   : > { %s196_s8 = sand.u32 1, %s2540_s20   ;;  %s2258_s9 = sshll.u32 %s2548_s22, 8 }
  0x40   : > { %s2117_s26 = sshll.u32 %s196_s8, 5  ;;  %s4025_s0 = sld [smem:[#allocation47_spill]] }
  0x41   : > { %p4026_p4 = scmp.ne.s32.totalorder %s4013_s29, 0  ;;  %s200_s3 = scalar_lea.vmem [#allocation2], %s2117_s26 }
  0x42   : > { %s221_s28 = sshll.u32 %s200_s3, 4  ;;  %s2555_s11 = smov 768   ;;  %s222_s28 = int_to_ptr.vmem [resolvable:$true] %s221_s28 }
  0x43   : > { %s2263_s6 = scalar_select %p4026_p4, [#allocation0], [#allocation16] }
  0x44   : > { %2264 = sst [smem:[#allocation11]] (%p4026_p4), %s2555_s11  ;;  %s2556_s20 = smov 256  }
  0x45   : > { %s213_s10 = sld [smem:[%s2263_s6]]   ;;  %s2557_s22 = smov 2  }
  0x46   : > { %s208_s5 = scalar_lea.hbm %s4025_s0, %s2258_s9  ;;  %2265 = sst [smem:[#allocation11 + $0x1]] (%p4026_p4), %s2556_s20 }
  0x47   : > { %2266 = sst [smem:[#allocation11 + $0x2]] (%p4026_p4), %s2557_s22  ;;  %s2558_s23 = smov 128  }
  0x48   : > { %2267 = sst [smem:[#allocation11 + $0x3]] (%p4026_p4), %s2558_s23  ;;  %s2559_s26 = smov 8  }
  0x49   : > { %2268 = sst [smem:[#allocation11 + $0x4]] (%p4026_p4), %s2558_s23  ;;  %s197_s25 = scalar_lea.sflag [#allocation3], %s196_s8 }
  0x4a   : > { %2269 = sst [smem:[#allocation11 + $0x5]] (%p4026_p4), %s2559_s26  ;;  %s2560_s6 = smov [#allocation10]  }
  0x4b   : > { %s2120_s27 = sshll.u32 %s213_s10, 26 }
  0x4c   : > { %s2121_s3 = sadd.s32 134217728, %s2120_s27 }
  0x4d   : > { %2270 = dma.general (%p4026_p4), %s208_s5, 512, %s222_s28, %s197_s25, %s2560_s6, [#allocation11], %s2121_s3, 0  }
  0x4e   : > { %s244_s20 = sand.u32 1, %s2528_s17   ;;  %s2034_s23 = scalar_lea.hbm %s3955_s1, %s2258_s9 }
  0x4f   : > { %s2122_s10 = sshll.u32 %s244_s20, 5  ;;  %s2035_s0 = scalar_lea.hbm %s2034_s23, 256 }
  0x50   : > { %s2271_s27 = scalar_select %p2698_p12, [#allocation0], [#allocation17] }
  0x51   : > { %s248_s8 = scalar_lea.vmem [#allocation6], %s2122_s10  ;;  %s2561_s5 = smov 768  }
  0x52   : > { %s270_s29 = sshll.u32 %s248_s8, 4  ;;  %s262_s28 = sld [smem:[%s2271_s27]]   ;;  %s271_s29 = int_to_ptr.vmem [resolvable:$true] %s270_s29 }
  0x53   : > { %2272 = sst [smem:[#allocation13]] (%p2698_p12), %s2561_s5  ;;  %s2562_s26 = smov 256  }
  0x54   : > { %2273 = sst [smem:[#allocation13 + $0x1]] (%p2698_p12), %s2562_s26  ;;  %s2563_s3 = smov 2  }
  0x55   : > { %2274 = sst [smem:[#allocation13 + $0x2]] (%p2698_p12), %s2563_s3  ;;  %s2564_s9 = smov 128  }
  0x56   : > { %2275 = sst [smem:[#allocation13 + $0x3]] (%p2698_p12), %s2564_s9  ;;  %s2565_s6 = smov 8  }
  0x57   : > { %2276 = sst [smem:[#allocation13 + $0x4]] (%p2698_p12), %s2564_s9  ;;  %s245_s11 = scalar_lea.sflag [#allocation7], %s244_s20 }
  0x58   : > { %s2125_s25 = sshll.u32 %s262_s28, 26  ;;  %2277 = sst [smem:[#allocation13 + $0x5]] (%p2698_p12), %s2565_s6 }
  0x59   : > { %s2126_s22 = sadd.s32 134217728, %s2125_s25  ;;  %s2566_s23 = smov [#allocation12]  }
  0x5a   : > { %2278 = dma.general (%p2698_p12), %s2035_s0, 512, %s271_s29, %s245_s11, %s2566_s23, [#allocation13], %s2126_s22, 0  }
  0x5b PF: > { %295 = sbr.rel (%p2724_p2) target bundleno = 1062 (0x426), region = 36 }
  0x62   : > { %s2782_s10 = sand.u32 1, %s2536_s19   ;;  %p4027_p0 = scmp.ne.s32.totalorder %s4015_s7, 0 }
  0x63   : > { %s2128_s27 = sshll.u32 %s2782_s10, 5  ;;  %s298_s8 = scalar_lea.sflag [#allocation3], %s2782_s10 }
  0x64   : > { %s2788_s28 = scalar_lea.vmem [#allocation2], %s2128_s27 }
  0x65   : > { %2503 = dma.done.wait (%p4027_p0), %s298_s8, 512  }
  0x66   : > { %2505 = vsyncadd (%p4027_p0), %s298_s8, 4294966784  ;;  %s306_s0 = sand.u32 1, %s2524_s16   ;;  %p4028_p12 = scmp.ne.s32.totalorder %s4019_s13, 0 }
  0x67   : > { %s2129_s12 = sshll.u32 %s306_s0, 5  ;;  %s307_s24 = scalar_lea.sflag [#allocation7], %s306_s0 }
  0x68   : > { %s2795_s20 = scalar_lea.vmem [#allocation6], %s2129_s12 }
  0x69   : > { %2507 = dma.done.wait (%p4028_p12), %s307_s24, 512  }
  0x6a   : > { %2509 = vsyncadd (%p4028_p12), %s307_s24, 4294966784 }
  0x6b   : > { %2511 = dma.done.wait (%p2669_p5), [#allocation5], 16  }
  0x6c   : > { %2513 = vsyncadd (%p2669_p5), [#allocation5], 4294967280 }
  0x6d   : > { %319 = sfence }
  0x6e   : > { %v2806_v0 = vld [vmem:[%s2795_s20] sm:$0xff]  ;;  %s2567_s7 = smov 1   ;;  %v2816_v2 = vld [vmem:[%s2795_s20 + $0x8] sm:$0xff]  ;;  %s2568_s30 = smov 127   ;;  %v2834_v4 = vld [vmem:[%s2788_s28 + $0x18] sm:$0xff]  ;;  %v352_v8 = vlaneseq  ;;  %v3982_v14 = vmov 0.0  }
  0x6f   : > { %v2809_v1 = vld [vmem:[%s2788_s28] sm:$0xff]  ;;  %382 = vrot.lane.b32.xlu1 %v2806_v0, %s2567_s7  ;;  %v2819_v3 = vld [vmem:[%s2788_s28 + $0x8] sm:$0xff]  ;;  %v2134_v5 = vld [vmem:[%s2788_s28 + $0x10] sm:$0xff]  ;;  %s2143_s5 = sld [smem:[#allocation8 + $0xa]]  ;;  %s2153_s26 = sld [smem:[#allocation8 + $0xd]] }
  0x70   : > { %378 = vrot.lane.b32.xlu0 %v2809_v1, %s2567_s7  ;;  %v2137_v6 = vld [vmem:[%s2795_s20 + $0x18] sm:$0xff]  ;;  %v2842_v7 = vld [vmem:[%s2795_s20 + $0x10] sm:$0xff]  ;;  %v351_v9 = vld [vmem:[%s3956_s2] sm:$0x1]  ;;  %v2850_v10 = vshrl.u32 %v352_v8, 7  ;;  %s2159_s3 = sld [smem:[#allocation8 + $0x10]] }
  0x71   : > { %v892_v11 = vadd.s32 4294967294, %v351_v9  ;;  %v976_v12 = vadd.s32 2, %v351_v9  ;;  %v372_v19 = vadd.s32 4294967295, %v351_v9  ;;  %s2132_s9 = sshll.u32 %s2544_s21, 4  ;;  %s2870_s25 = sld [smem:[#allocation8]]  ;;  %v396_v20 = vadd.s32 1, %v351_v9 }
  0x72   : > { %4029 = vst [vmem:[#allocation28_spill] sm:$0xff] %v2850_v10  ;;  %v2856_v13 = vsub.s32 0, %v2850_v10  ;;  %s2140_s6 = sld [smem:[#allocation8 + $0x1]]  ;;  %s2150_s22 = sld [smem:[#allocation8 + $0x4]]  ;;  %v354_v21 = vadd.s32 8, %v2850_v10  ;;  %v355_v26 = vadd.s32 16, %v2850_v10 }
  0x73   : > { %384 = vrot.lane.b32.xlu1 %v2816_v2, %s2567_s7  ;;  %vm893_vm0 = vcmp.ge.s32.totalorder %v892_v11, 0  ;;  %vm894_vm1 = vcmp.lt.s32.totalorder %v892_v11, 32  ;;  %vm977_vm3 = vcmp.ge.s32.totalorder %v976_v12, 0  ;;  %vm978_vm4 = vcmp.lt.s32.totalorder %v976_v12, 32  ;;  %s2156_s11 = sld [smem:[#allocation8 + $0x7]]  ;;  %s2133_s23 = sadd.s32 4294967288, %s2132_s9 }
  0x74   : > { %380 = vrot.lane.b32.xlu0 %v2819_v3, %s2567_s7  ;;  %vm895_vm2 = vmand %vm893_vm0, %vm894_vm1  ;;  %s2149_s8 = sld [smem:[#allocation8 + $0x3]]  ;;  %vm373_vm6 = vcmp.ge.s32.totalorder %v372_v19, 0  ;;  %vm374_vm7 = vcmp.lt.s32.totalorder %v372_v19, 32  ;;  %s2155_s0 = sld [smem:[#allocation8 + $0x6]]  ;;  %v357_v24 = vstv %s2133_s23  ;;  %vm397_vm9 = vcmp.ge.s32.totalorder %v396_v20, 0 }
  0x75   : > { %v2182_v15 = vsel %vm895_vm2, 1.0, %v3982_v14  ;;  %vm979_vm5 = vmand %vm977_vm3, %vm978_vm4  ;;  %v2873_v22 = vstv %s2143_s5  ;;  %v2875_v23 = vstv %s2153_s26  ;;  %s2879_s12 = sld [smem:[#allocation8 + $0x2]]  ;;  %vm398_vm10 = vcmp.lt.s32.totalorder %v396_v20, 32  ;;  %s2919_s24 = sld [smem:[#allocation8 + $0x5]] }
  0x76   : > { %v2863_v16 = vrot.slane %v2182_v15, %v2856_v13  ;;  %v2187_v17 = vsel %vm979_vm5, 1.0, %v3982_v14  ;;  %v2877_v25 = vstv %s2159_s3  ;;  %vm375_vm8 = vmand %vm373_vm6, %vm374_vm7  ;;  %v2883_v27 = vmul.f32 %v2134_v5, %v2873_v22  ;;  %s2933_s13 = sld [smem:[#allocation8 + $0x8]]  ;;  %s2935_s29 = sld [smem:[#allocation8 + $0x9]] }
  0x77   : > { %404 = vrot.lane.b32.xlu1 %v2819_v3, %s2568_s30  ;;  %v2867_v18 = vrot.slane %v2187_v17, %v2856_v13  ;;  %v2886_v28 = vmul.f32 %v2134_v5, %v2875_v23  ;;  %v2888_v29 = vadd.s32 %v357_v24, %v354_v21  ;;  %v356_v30 = vadd.s32 24, %v2850_v10  ;;  %s2947_s5 = sld [smem:[#allocation8 + $0xc]]  ;;  %s2959_s26 = sld [smem:[#allocation8 + $0xf]]  ;;  %vm399_vm11 = vmand %vm397_vm9, %vm398_vm10 }
  0x78   : > { %402 = vrot.lane.b32.xlu0 %v2809_v1, %s2568_s30  ;;  %4030 = vst [vmem:[#allocation29_spill] sm:$0xff] %v2863_v16  ;;  %v2892_v31 = vmul.f32 %v2134_v5, %v2877_v25  ;;  %v2895_v32 = vmul.f32 %v2137_v6, %v2873_v22  ;;  %v2898_v33 = vmul.f32 %v2137_v6, %v2875_v23  ;;  %v2138_v34 = vsel %vm375_vm8, 1.0, %v3982_v14  ;;  %s2961_s3 = sld [smem:[#allocation8 + $0xb]]  ;;  %s2969_s9 = sld [smem:[#allocation8 + $0xe]] }
  0x79   : > { %4031 = vst [vmem:[#allocation30_spill] sm:$0xff] %v2867_v18  ;;  %4032 = vst [vmem:[#allocation31_spill] sm:$0xff] %v2888_v29  ;;  %v451_v35 = vstv %s2140_s6  ;;  %v544_v36 = vstv %s2150_s22  ;;  %v604_v37 = vstv %s2156_s11  ;;  %v2902_v38 = vadd.s32 %v357_v24, %v2850_v10  ;;  %s3004_s6 = sld [smem:[#allocation8 + $0x12]]  ;;  %s3195_s22 = sld [smem:[#allocation8 + $0x13]] }
  0x7a   : > { %v2905_v39 = vmul.f32 %v2137_v6, %v2877_v25  ;;  %v2908_v40 = vstv %s2870_s25  ;;  %v2910_v41 = vstv %s2149_s8  ;;  %v2912_v42 = vadd.s32 %v357_v24, %v355_v26  ;;  %s2975_s25 = sld [smem:[#allocation8 + $0x11]]  ;;  %s2168_s11 = sld [smem:[#allocation8 + $0x15]] }
  0x7b   : > { %408 = vrot.lane.b32.xlu1 %v2816_v2, %s2568_s30  ;;  %4033 = vst [vmem:[#allocation32_spill] sm:$0xff] %v2902_v38  ;;  %v2914_v43 = vstv %s2155_s0  ;;  %v2917_v44 = vrot.slane %v2138_v34, %v2856_v13  ;;  %v501_v45 = vadd.s32 4294967295, %v2888_v29  ;;  %v2922_v46 = vadd.s32 %v357_v24, %v356_v30  ;;  %s2171_s23 = sld [smem:[#allocation8 + $0x18]]  ;;  %s2167_s8 = sld [smem:[#allocation8 + $0x14]] }
  0x7c   : > { %406 = vrot.lane.b32.xlu0 %v2806_v0, %s2568_s30  ;;  %4034 = vst [vmem:[#allocation33_spill] sm:$0xff] %v2912_v42  ;;  %v2925_v47 = vmul.f32 %v451_v35, %v2806_v0  ;;  %v2928_v48 = vmul.f32 %v544_v36, %v2806_v0  ;;  %v2931_v49 = vmul.f32 %v604_v37, %v2806_v0  ;;  %v500_v50 = vadd.s32 4294967295, %v2902_v38  ;;  %s2174_s0 = sld [smem:[#allocation8 + $0x1b]] }
  0x7d   : > { %4035 = vst [vmem:[#allocation34_spill] sm:$0xff] %v2922_v46  ;;  %v2939_v51 = vmul.f32 %v451_v35, %v2809_v1  ;;  %v2942_v52 = vmul.f32 %v544_v36, %v2809_v1  ;;  %v2945_v53 = vmul.f32 %v604_v37, %v2809_v1  ;;  %v653_v54 = vadd.s32 1, %v2902_v38 }
  0x7e   : > { %v2951_v55 = vmul.f32 %v451_v35, %v2816_v2  ;;  %v2954_v56 = vmul.f32 %v544_v36, %v2816_v2  ;;  %v2957_v57 = vstv %s2879_s12  ;;  %v502_v58 = vadd.s32 4294967295, %v2912_v42  ;;  %s2170_s12 = sld [smem:[#allocation8 + $0x17]] }
  0x7f   : > { %422 = vrot.lane.b32.xlu1 %v2834_v4, %s2567_s7  ;;  %v2965_v59 = vmul.f32 %v604_v37, %v2816_v2  ;;  %vm505_vm12 = vcmp.ge.s32.totalorder %v501_v45, 0  ;;  %vm509_vm13 = vcmp.lt.s32.totalorder %v501_v45, 32  ;;  %v503_v60 = vadd.s32 4294967295, %v2922_v46 }
  0x80   : > { %420 = vrot.lane.b32.xlu0 %v2134_v5, %s2567_s7  ;;  %v2973_v61 = vmul.f32 %v451_v35, %v2819_v3  ;;  %vm504_vm14 = vcmp.ge.s32.totalorder %v500_v50, 0  ;;  %vm508_vm15 = vcmp.lt.s32.totalorder %v500_v50, 32  ;;  %v654_v62 = vadd.s32 1, %v2888_v29  ;;  %vm2983_vm2 = vmand %vm505_vm12, %vm509_vm13 }
  0x81   : > { %v2979_v63 = vmul.f32 %v544_v36, %v2819_v3  ;;  %vm657_vm0 = vcmp.ge.s32.totalorder %v653_v54, 0  ;;  %vm661_vm1 = vcmp.lt.s32.totalorder %v653_v54, 32  ;;  %v656_v0 = vadd.s32 1, %v2922_v46  ;;  %vm2994_vm5 = vmand %vm504_vm14, %vm508_vm15 }
  0x82   : > { %v2139_v1 = vsel %vm399_vm11, 1.0, %v3982_v14  ;;  %vm506_vm3 = vcmp.ge.s32.totalorder %v502_v58, 0  ;;  %vm510_vm4 = vcmp.lt.s32.totalorder %v502_v58, 32  ;;  %v2992_v8 = vstv %s2919_s24  ;;  %vm3008_vm10 = vmand %vm657_vm0, %vm661_vm1  ;;  %s2173_s24 = sld [smem:[#allocation8 + $0x1a]] }
  0x83   : > { %426 = vrot.lane.b32.xlu1 %v2137_v6, %s2567_s7  ;;  %vm507_vm6 = vcmp.ge.s32.totalorder %v503_v60, 0  ;;  %vm511_vm7 = vcmp.lt.s32.totalorder %v503_v60, 32  ;;  %v2999_v15 = vstv %s2933_s13  ;;  %v3002_v17 = vstv %s2935_s29  ;;  %vm3020_vm11 = vmand %vm506_vm3, %vm510_vm4  ;;  %s2169_s13 = sld [smem:[#allocation8 + $0x16]]  ;;  %s2172_s29 = sld [smem:[#allocation8 + $0x19]] }
  0x84   : > { %424 = vrot.lane.b32.xlu0 %v2842_v7, %s2567_s7  ;;  %vm658_vm8 = vcmp.ge.s32.totalorder %v654_v62, 0  ;;  %vm662_vm9 = vcmp.lt.s32.totalorder %v654_v62, 32  ;;  %v3013_v19 = vrot.slane %v2139_v1, %v2856_v13  ;;  %v3016_v20 = vstv %s2947_s5  ;;  %vm3033_vm14 = vmand %vm507_vm6, %vm511_vm7  ;;  %s3245_s5 = sld [smem:[#allocation8 + $0x1c]] }
  0x85   : > { %vm660_vm12 = vcmp.ge.s32.totalorder %v656_v0, 0  ;;  %vm664_vm13 = vcmp.lt.s32.totalorder %v656_v0, 32  ;;  %v3025_v24 = vstv %s2959_s26  ;;  %v3029_v26 = vmul.f32 %v2834_v4, %v2873_v22  ;;  %vm3050_vm1 = vmand %vm658_vm8, %vm662_vm9  ;;  %s2176_s26 = sld [smem:[#allocation8 + $0x1d]] }
  0x86   : > { %v3039_v34 = vstv %s2961_s3  ;;  %v3043_v35 = vmul.f32 %v2834_v4, %v2875_v23  ;;  %v3046_v36 = vstv %s2969_s9  ;;  %v3056_v54 = vmul.f32 %v2834_v4, %v2877_v25  ;;  %vm668_vm3 = vmand %vm660_vm12, %vm664_vm13  ;;  %s2570_s3 = smov 2   ;;  %s2571_s9 = smov 126  }
  0x87   : > { %434 = vrot.lane.b32.xlu1 %v2834_v4, %s2568_s30  ;;  %v3059_v58 = vstv %s2975_s25  ;;  %v3063_v60 = vmul.f32 %v2842_v7, %v2873_v22  ;;  %v3067_v1 = vmul.f32 %v2842_v7, %v2875_v23  ;;  %v3074_v62 = vsel %vm2983_vm2, 1.0, %v3982_v14  ;;  %s2181_s25 = sld [smem:[#allocation8 + $0x1e]] }
  0x88   : > { %432 = vrot.lane.b32.xlu0 %v2134_v5, %s2568_s30  ;;  %v655_v5 = vadd.s32 1, %v2912_v42  ;;  %4049 = vst [vmem:[#allocation36_spill] sm:$0xff] %v3074_v62  ;;  %v3079_v4 = vsel %vm2994_vm5, 1.0, %v3982_v14  ;;  %v3083_v22 = vmul.f32 %v2842_v7, %v2877_v25  ;;  %v3088_v23 = vsel %vm3008_vm10, 1.0, %v3982_v14 }
  0x89   : > { %4048 = vst [vmem:[#allocation35_spill] sm:$0xff] %v3067_v1  ;;  %4050 = vst [vmem:[#allocation37_spill] sm:$0xff] %v3079_v4  ;;  %v3097_v9 = vsel %vm3020_vm11, 1.0, %v3982_v14  ;;  %v3117_v18 = vstv %s3004_s6  ;;  %vm528_vm2 = vcmp.lt.s32.totalorder %v2850_v10, 1  ;;  %vm681_vm5 = vcmp.lt.s32.totalorder %v2850_v10, 7  ;;  %s2183_s6 = sld [smem:[#allocation8 + $0x1f]] }
  0x8a   : > { %vm659_vm15 = vcmp.ge.s32.totalorder %v655_v5, 0  ;;  %vm663_vm0 = vcmp.lt.s32.totalorder %v655_v5, 32  ;;  %4051 = vst [vmem:[#allocation38_spill] sm:$0xff] %v3088_v23  ;;  %4052 = vst [vmem:[#allocation39_spill] sm:$0xff] %v3097_v9  ;;  %v3109_v5 = vsel %vm3050_vm1, 1.0, %v3982_v14  ;;  %vm882_vm10 = vcmp.lt.s32.totalorder %v2850_v10, 2 }
  0x8b   : > { %438 = vrot.lane.b32.xlu1 %v2137_v6, %s2568_s30  ;;  %v2989_v6 = vmul.f32 %v604_v37, %v2819_v3  ;;  %vm667_vm4 = vmand %vm659_vm15, %vm663_vm0  ;;  %4054 = vst [vmem:[#allocation41_spill] sm:$0xff] %v3109_v5  ;;  %vm1355_vm11 = vcmp.lt.s32.totalorder %v2850_v10, 6 }
  0x8c   : > { %436 = vrot.lane.b32.xlu0 %v2842_v7, %s2568_s30  ;;  %v3102_v7 = vsel %vm3033_vm14, 1.0, %v3982_v14  ;;  %4056 = vst [vmem:[#allocation43_spill] sm:$0xff] %v3117_v18  ;;  %v3120_v16 = vsel %vm667_vm4, 1.0, %v3982_v14 }
  0x8d   : > { %4053 = vst [vmem:[#allocation40_spill] sm:$0xff] %v3102_v7  ;;  %4057 = vst [vmem:[#allocation44_spill] sm:$0xff] %v3120_v16 }
  0xe1   : > { %v383_v11 = vpop.permute.xlu1 %382 }
  0xe2   : > { %v379_v12 = vpop.permute.xlu0 %378  ;;  %v394_v30 = vmul.f32 %v2917_v44, %v383_v11 }
  0xe3   : > { %v392_v0 = vmul.f32 %v2917_v44, %v379_v12  ;;  %v3112_v12 = vsel %vm668_vm3, 1.0, %v3982_v14 }
  0xe4   : > { %v448_v25 = vmul.f32 %v2908_v40, %v394_v30  ;;  %4055 = vst [vmem:[#allocation42_spill] sm:$0xff] %v3112_v12  ;;  %v541_v3 = vmul.f32 %v2910_v41, %v394_v30  ;;  %v601_v38 = vmul.f32 %v2914_v43, %v394_v30 }
  0xe5   : > { %v385_v45 = vpop.permute.xlu1 %384  ;;  %v446_v29 = vmul.f32 %v2908_v40, %v392_v0  ;;  %v539_v5 = vmul.f32 %v2910_v41, %v392_v0  ;;  %v599_v12 = vmul.f32 %v2914_v43, %v392_v0 }
  0xe6   : > { %v381_v50 = vpop.permute.xlu0 %380  ;;  %v395_v11 = vmul.f32 %v2917_v44, %v385_v45  ;;  %v458_v18 = vadd.f32 %v2925_v47, %v448_v25 }
  0xe7   : > { %v393_v2 = vmul.f32 %v2917_v44, %v381_v50  ;;  %v609_v25 = vadd.f32 %v2945_v53, %v599_v12 }
  0xe8   : > { %v449_v14 = vmul.f32 %v2908_v40, %v395_v11  ;;  %v542_v16 = vmul.f32 %v2910_v41, %v395_v11 }
  0xe9   : > { %v447_v21 = vmul.f32 %v2908_v40, %v393_v2  ;;  %v405_v50 = vpop.permute.xlu1 %404  ;;  %v540_v45 = vmul.f32 %v2910_v41, %v393_v2  ;;  %v600_v37 = vmul.f32 %v2914_v43, %v393_v2  ;;  %v602_v2 = vmul.f32 %v2914_v43, %v395_v11 }
  0xea   : > { %v403_v13 = vpop.permute.xlu0 %402  ;;  %v417_v42 = vmul.f32 %v3013_v19, %v405_v50  ;;  %v551_v43 = vadd.f32 %v2928_v48, %v541_v3 }
  0xeb   : > { %v416_v46 = vmul.f32 %v3013_v19, %v403_v13  ;;  %v457_v50 = vadd.f32 %v2973_v61, %v447_v21  ;;  %v550_v13 = vadd.f32 %v2979_v63, %v540_v45  ;;  %v610_v30 = vadd.f32 %v2989_v6, %v600_v37 }
  0xec   : > { %v463_v7 = vmul.f32 %v2957_v57, %v417_v42  ;;  %v556_v0 = vmul.f32 %v2992_v8, %v417_v42  ;;  %v616_v47 = vmul.f32 %v2999_v15, %v417_v42  ;;  %v611_v61 = vadd.f32 %v2931_v49, %v601_v38 }
  0xed   : > { %v409_v9 = vpop.permute.xlu1 %408  ;;  %v462_v40 = vmul.f32 %v2957_v57, %v416_v46  ;;  %v456_v63 = vadd.f32 %v2939_v51, %v446_v29  ;;  %v549_v6 = vadd.f32 %v2942_v52, %v539_v5  ;;  %v555_v11 = vmul.f32 %v2992_v8, %v416_v46 }
  0xee   : > { %v407_v1 = vpop.permute.xlu0 %406  ;;  %v419_v41 = vmul.f32 %v3013_v19, %v409_v9  ;;  %v615_v21 = vmul.f32 %v2999_v15, %v416_v46  ;;  %v459_v45 = vadd.f32 %v2951_v55, %v449_v14  ;;  %v552_v9 = vadd.f32 %v2954_v56, %v542_v16 }
  0xef   : > { %v418_v42 = vmul.f32 %v3013_v19, %v407_v1  ;;  %v612_v48 = vadd.f32 %v2965_v59, %v602_v2  ;;  %v467_v3 = vadd.f32 %v463_v7, %v457_v50  ;;  %v560_v29 = vadd.f32 %v556_v0, %v550_v13 }
  0xf0   : > { %v620_v51 = vadd.f32 %v616_v47, %v610_v30  ;;  %v466_v52 = vadd.f32 %v462_v40, %v456_v63  ;;  %v465_v53 = vmul.f32 %v2957_v57, %v419_v41  ;;  %v558_v5 = vmul.f32 %v2992_v8, %v419_v41 }
  0xf1   : > { %v423_v38 = vpop.permute.xlu1 %422  ;;  %v618_v46 = vmul.f32 %v2999_v15, %v419_v41  ;;  %v559_v55 = vadd.f32 %v555_v11, %v549_v6  ;;  %v619_v16 = vadd.f32 %v615_v21, %v609_v25  ;;  %v464_v56 = vmul.f32 %v2957_v57, %v418_v42 }
  0xf2   : > { %v421_v49 = vpop.permute.xlu0 %420  ;;  %v429_v1 = vmul.f32 %v423_v38, %v2917_v44  ;;  %v557_v59 = vmul.f32 %v2992_v8, %v418_v42  ;;  %v617_v7 = vmul.f32 %v2999_v15, %v418_v42  ;;  %v469_v30 = vadd.f32 %v465_v53, %v459_v45 }
  0xf3   : > { %v428_v14 = vmul.f32 %v421_v49, %v2917_v44  ;;  %v562_v57 = vadd.f32 %v558_v5, %v552_v9  ;;  %v622_v41 = vadd.f32 %v618_v46, %v612_v48  ;;  %v468_v21 = vadd.f32 %v464_v56, %v458_v18 }
  0xf4   : > { %v473_v12 = vmul.f32 %v3002_v17, %v429_v1  ;;  %v626_v37 = vmul.f32 %v3025_v24, %v429_v1  ;;  %v566_v8 = vmul.f32 %v3016_v20, %v429_v1  ;;  %v561_v42 = vadd.f32 %v557_v59, %v551_v43 }
  0xf5   : > { %v472_v2 = vmul.f32 %v3002_v17, %v428_v14  ;;  %v427_v50 = vpop.permute.xlu1 %426  ;;  %v565_v0 = vmul.f32 %v3016_v20, %v428_v14  ;;  %v625_v47 = vmul.f32 %v3025_v24, %v428_v14  ;;  %v621_v53 = vadd.f32 %v617_v7, %v611_v61 }
  0xf6   : > { %v425_v13 = vpop.permute.xlu0 %424  ;;  %v431_v40 = vmul.f32 %v427_v50, %v2917_v44  ;;  %v477_v63 = vadd.f32 %v473_v12, %v467_v3  ;;  %v630_v6 = vadd.f32 %v626_v37, %v620_v51  ;;  %v570_v3 = vadd.f32 %v566_v8, %v560_v29 }
  0xf7   : > { %v430_v15 = vmul.f32 %v425_v13, %v2917_v44  ;;  %v476_v45 = vadd.f32 %v472_v2, %v466_v52  ;;  %v569_v38 = vadd.f32 %v565_v0, %v559_v55  ;;  %v629_v14 = vadd.f32 %v625_v47, %v619_v16 }
  0xf8   : > { %v475_v25 = vmul.f32 %v3002_v17, %v431_v40  ;;  %v568_v11 = vmul.f32 %v3016_v20, %v431_v40  ;;  %v628_v9 = vmul.f32 %v3025_v24, %v431_v40  ;;  %v487_v43 = vadd.f32 %v3029_v26, %v477_v63 }
  0xf9   : > { %v435_v49 = vpop.permute.xlu1 %434  ;;  %v474_v46 = vmul.f32 %v3002_v17, %v430_v15  ;;  %v567_v1 = vmul.f32 %v3016_v20, %v430_v15  ;;  %v640_v52 = vadd.f32 %v3056_v54, %v630_v6  ;;  %v486_v29 = vadd.f32 %v2883_v27, %v476_v45 }
  0xfa   : > { %v441_v48 = vmul.f32 %v435_v49, %v3013_v19  ;;  %v433_v5 = vpop.permute.xlu0 %432  ;;  %v479_v51 = vadd.f32 %v475_v25, %v469_v30  ;;  %v572_v18 = vadd.f32 %v568_v11, %v562_v57  ;;  %v579_v56 = vadd.f32 %v2886_v28, %v569_v38 }
  0xfb   : > { %v440_v16 = vmul.f32 %v433_v5, %v3013_v19  ;;  %v632_v59 = vadd.f32 %v628_v9, %v622_v41  ;;  %v639_v7 = vadd.f32 %v2892_v31, %v629_v14  ;;  %v627_v26 = vmul.f32 %v3025_v24, %v430_v15 }
  0xfc   : > { %v493_v61 = vmul.f32 %v3039_v34, %v441_v48  ;;  %v646_v55 = vmul.f32 %v3059_v58, %v441_v48  ;;  %v478_v50 = vadd.f32 %v474_v46, %v468_v21  ;;  %v489_v13 = vadd.f32 %v2895_v32, %v479_v51 }
  0xfd   : > { %v439_v17 = vpop.permute.xlu1 %438  ;;  %v492_v54 = vmul.f32 %v3039_v34, %v440_v16  ;;  %v645_v2 = vmul.f32 %v3059_v58, %v440_v16  ;;  %v582_v28 = vadd.f32 %v2898_v33, %v572_v18  ;;  %v585_v31 = vmul.f32 %v3046_v36, %v440_v16 }
  0xfe   : > { %v497_v20 = vadd.f32 %v493_v61, %v487_v43  ;;  %v443_v12 = vmul.f32 %v439_v17, %v3013_v19  ;;  %v650_v37 = vadd.f32 %v646_v55, %v640_v52  ;;  %v437_v30 = vpop.permute.xlu0 %436  ;;  %v642_v41 = vadd.f32 %v2905_v39, %v632_v59 }
  0xff   : > { %v496_v47 = vadd.f32 %v492_v54, %v486_v29  ;;  %v649_v40 = vadd.f32 %v645_v2, %v639_v7  ;;  %v631_v15 = vadd.f32 %v627_v26, %v621_v53  ;;  %v442_v6 = vmul.f32 %v437_v30, %v3013_v19  ;;  %v4060_v7 = vld [vmem:[#allocation40_spill] sm:$0xff] }
 0x100   : > { %v495_v27 = vmul.f32 %v3039_v34, %v443_v12  ;;  %v525_v0 = vrot.slane %v497_v20, 7  ;;  %v678_v57 = vrot.slane %v650_v37, 1  ;;  %v648_v8 = vmul.f32 %v3059_v58, %v443_v12  ;;  %v4059_v20 = vld [vmem:[#allocation39_spill] sm:$0xff] }
 0x101   : > { %v524_v32 = vrot.slane %v496_v47, 7  ;;  %v677_v63 = vrot.slane %v649_v40, 1  ;;  %v571_v33 = vadd.f32 %v567_v1, %v561_v42  ;;  %v586_v25 = vmul.f32 %v3046_v36, %v441_v48  ;;  %v4064_v40 = vld [vmem:[#allocation44_spill] sm:$0xff] }
 0x102   : > { %v499_v24 = vadd.f32 %v495_v27, %v489_v13  ;;  %v652_v21 = vadd.f32 %v648_v8, %v642_v41  ;;  %v589_v38 = vadd.f32 %v585_v31, %v579_v56  ;;  %v488_v39 = vadd.f32 %v3063_v60, %v478_v50  ;;  %v4058_v56 = vld [vmem:[#allocation35_spill] sm:$0xff]  ;;  %v4062_v27 = vld [vmem:[#allocation42_spill] sm:$0xff] }
 0x103   : > { %v531_v45 = vsel %vm528_vm2, %v524_v32, %v525_v0  ;;  %v494_v49 = vmul.f32 %v3039_v34, %v442_v6  ;;  %v684_v53 = vsel %vm681_vm5, %v677_v63, %v678_v57  ;;  %v588_v42 = vmul.f32 %v3046_v36, %v443_v12  ;;  %v4061_v50 = vld [vmem:[#allocation43_spill] sm:$0xff] }
 0x104   : > { %v527_v11 = vrot.slane %v499_v24, 7  ;;  %v680_v9 = vrot.slane %v652_v21, 1  ;;  %v641_v51 = vadd.f32 %v3083_v22, %v631_v15  ;;  %v647_v46 = vmul.f32 %v3059_v58, %v442_v6 }
 0x105   : > { %v498_v5 = vadd.f32 %v494_v49, %v488_v39  ;;  %v580_v60 = vadd.f32 %v3043_v35, %v570_v3  ;;  %v534_v34 = vmul.f32 %v3074_v62, %v531_v45  ;;  %v587_v18 = vmul.f32 %v3046_v36, %v442_v6 }
 0x106   : > { %v532_v14 = vsel %vm528_vm2, %v527_v11, %v524_v32  ;;  %v685_v1 = vsel %vm681_vm5, %v680_v9, %v677_v63  ;;  %v651_v61 = vadd.f32 %v647_v46, %v641_v51  ;;  %v686_v55 = vmul.f32 %v3088_v23, %v684_v53 }
 0x107   : > { %v533_v48 = vmul.f32 %v3079_v4, %v532_v14  ;;  %v526_v43 = vrot.slane %v498_v5, 7  ;;  %v590_v16 = vadd.f32 %v586_v25, %v580_v60  ;;  %v592_v29 = vadd.f32 %v588_v42, %v582_v28 }
 0x108   : > { %v581_v22 = vadd.f32 %v4058_v56, %v571_v33  ;;  %v705_v17 = vstv %s3195_s22  ;;  %v679_v3 = vrot.slane %v651_v61, 1  ;;  %v689_v28 = vmul.f32 %v4062_v27, %v685_v1  ;;  %s2184_s22 = sld [smem:[#allocation8 + $0x20]] }
 0x109   : > { %v593_v52 = vadd.f32 %v589_v38, %v533_v48  ;;  %v529_v35 = vsel %vm528_vm2, %v526_v43, %v527_v11  ;;  %v530_v58 = vsel %vm528_vm2, %v525_v0, %v526_v43  ;;  %v594_v37 = vadd.f32 %v590_v16, %v534_v34  ;;  %v4063_v0 = vld [vmem:[#allocation41_spill] sm:$0xff] }
 0x10a   : > { %v535_v36 = vmul.f32 %v4059_v20, %v530_v58  ;;  %v536_v12 = vmul.f32 %v4060_v7, %v529_v35  ;;  %v591_v26 = vadd.f32 %v587_v18, %v581_v22  ;;  %v682_v54 = vsel %vm681_vm5, %v679_v3, %v680_v9 }
 0x10b   : > { %v690_v59 = vadd.f32 %v686_v55, %v593_v52  ;;  %v683_v2 = vsel %vm681_vm5, %v678_v57, %v679_v3  ;;  %v688_v24 = vmul.f32 %v4064_v40, %v682_v54  ;;  %v745_v53 = vstv %s2168_s11  ;;  %s2185_s11 = sld [smem:[#allocation8 + $0x21]] }
 0x10c   : > { %v595_v30 = vadd.f32 %v591_v26, %v535_v36  ;;  %v687_v47 = vmul.f32 %v4063_v0, %v683_v2  ;;  %v596_v31 = vadd.f32 %v592_v29, %v536_v12  ;;  %v783_v14 = vstv %s2171_s23  ;;  %s2186_s23 = sld [smem:[#allocation8 + $0x22]] }
 0x10d   : > { %v696_v13 = vadd.f32 %v4061_v50, %v690_v59  ;;  %v739_v9 = vstv %s2167_s8  ;;  %v777_v48 = vstv %s2170_s12  ;;  %v807_v5 = vstv %s2173_s24  ;;  %s2188_s8 = sld [smem:[#allocation8 + $0x23]]  ;;  %s2190_s12 = sld [smem:[#allocation8 + $0x25]] }
 0x10e   : > { %v691_v8 = vadd.f32 %v687_v47, %v594_v37  ;;  %v693_v15 = vadd.f32 %v689_v28, %v596_v31  ;;  %v692_v32 = vadd.f32 %v688_v24, %v595_v30  ;;  %v813_v51 = vstv %s2174_s0  ;;  %s2189_s0 = sld [smem:[#allocation8 + $0x24]]  ;;  %s2193_s24 = sld [smem:[#allocation8 + $0x28]] }
 0x10f   : > { %vm701_vm6 = vcmp.ge.f32.partialorder %v696_v13, 0.0  ;;  %v706_v41 = vmul.f32 %v705_v17, %v696_v13  ;;  %v3247_v18 = vstv %s2169_s13  ;;  %v3250_v16 = vstv %s2172_s29  ;;  %s2195_s13 = sld [smem:[#allocation8 + $0x2a]]  ;;  %s2194_s29 = sld [smem:[#allocation8 + $0x29]] }
 0x110   : > { %v697_v6 = vadd.f32 %v4061_v50, %v691_v8  ;;  %v699_v57 = vadd.f32 %v4061_v50, %v693_v15  ;;  %v698_v33 = vadd.f32 %v4061_v50, %v692_v32  ;;  %v823_v24 = vstv %s3245_s5  ;;  %s2196_s5 = sld [smem:[#allocation8 + $0x2b]] }
 0x111   : > { %v710_v63 = vsel %vm701_vm6, %v696_v13, %v706_v41 }
 0x112   : > { %714 = vrot.lane.b32.xlu0 %v710_v63, %s2567_s7  ;;  %vm702_vm7 = vcmp.ge.f32.partialorder %v697_v6, 0.0  ;;  %v707_v25 = vmul.f32 %v705_v17, %v697_v6  ;;  %vm703_vm8 = vcmp.ge.f32.partialorder %v698_v33, 0.0  ;;  %v708_v11 = vmul.f32 %v705_v17, %v698_v33 }
 0x113   : > { %v709_v45 = vmul.f32 %v705_v17, %v699_v57  ;;  %vm704_vm9 = vcmp.ge.f32.partialorder %v699_v57, 0.0  ;;  %v746_v60 = vmul.f32 %v745_v53, %v710_v63  ;;  %v784_v34 = vmul.f32 %v783_v14, %v710_v63 }
 0x114   : > { %v711_v21 = vsel %vm702_vm7, %v697_v6, %v707_v25  ;;  %v712_v38 = vsel %vm703_vm8, %v698_v33, %v708_v11  ;;  %v814_v1 = vmul.f32 %v813_v51, %v710_v63 }
 0x115   : > { %716 = vrot.lane.b32.xlu1 %v711_v21, %s2567_s7  ;;  %v713_v39 = vsel %vm704_vm9, %v699_v57, %v709_v45  ;;  %v747_v61 = vmul.f32 %v745_v53, %v711_v21  ;;  %v785_v52 = vmul.f32 %v783_v14, %v711_v21  ;;  %v815_v29 = vmul.f32 %v813_v51, %v711_v21 }
 0x116   : > { %718 = vrot.lane.b32.xlu0 %v712_v38, %s2567_s7  ;;  %v749_v22 = vmul.f32 %v745_v53, %v713_v39  ;;  %v787_v59 = vmul.f32 %v783_v14, %v713_v39  ;;  %v817_v12 = vmul.f32 %v813_v51, %v713_v39  ;;  %v748_v37 = vmul.f32 %v745_v53, %v712_v38 }
 0x117   : > { %v786_v54 = vmul.f32 %v783_v14, %v712_v38  ;;  %v816_v31 = vmul.f32 %v813_v51, %v712_v38 }
 0x119   : > { %720 = vrot.lane.b32.xlu1 %v713_v39, %s2567_s7 }
 0x11a   : > { %726 = vrot.lane.b32.xlu0 %v710_v63, %s2568_s30 }
 0x11d   : > { %728 = vrot.lane.b32.xlu1 %v711_v21, %s2568_s30 }
 0x11e   : > { %730 = vrot.lane.b32.xlu0 %v712_v38, %s2568_s30 }
 0x121   : > { %732 = vrot.lane.b32.xlu1 %v713_v39, %s2568_s30 }
 0x184   : > { %v715_v49 = vpop.permute.xlu0 %714 }
 0x185   : > { %v722_v42 = vmul.f32 %v715_v49, %v2917_v44 }
 0x187   : > { %v717_v46 = vpop.permute.xlu1 %716  ;;  %v740_v56 = vmul.f32 %v739_v9, %v722_v42  ;;  %v778_v58 = vmul.f32 %v777_v48, %v722_v42  ;;  %v808_v3 = vmul.f32 %v807_v5, %v722_v42 }
 0x188   : > { %v723_v43 = vmul.f32 %v717_v46, %v2917_v44  ;;  %v719_v55 = vpop.permute.xlu0 %718 }
 0x189   : > { %v724_v17 = vmul.f32 %v719_v55, %v2917_v44  ;;  %v750_v47 = vadd.f32 %v746_v60, %v740_v56  ;;  %v788_v15 = vadd.f32 %v784_v34, %v778_v58  ;;  %v818_v32 = vadd.f32 %v814_v1, %v808_v3 }
 0x18a   : > { %v741_v35 = vmul.f32 %v739_v9, %v723_v43  ;;  %v779_v36 = vmul.f32 %v777_v48, %v723_v43  ;;  %v809_v2 = vmul.f32 %v807_v5, %v723_v43 }
 0x18b   : > { %v721_v26 = vpop.permute.xlu1 %720  ;;  %v742_v13 = vmul.f32 %v739_v9, %v724_v17  ;;  %v780_v28 = vmul.f32 %v777_v48, %v724_v17  ;;  %v810_v63 = vmul.f32 %v807_v5, %v724_v17 }
 0x18c   : > { %v725_v50 = vmul.f32 %v721_v26, %v2917_v44  ;;  %v727_v30 = vpop.permute.xlu0 %726  ;;  %v751_v8 = vadd.f32 %v747_v61, %v741_v35  ;;  %v789_v6 = vadd.f32 %v785_v52, %v779_v36  ;;  %v819_v21 = vadd.f32 %v815_v29, %v809_v2 }
 0x18d   : > { %v734_v41 = vmul.f32 %v727_v30, %v3013_v19  ;;  %v752_v45 = vadd.f32 %v748_v37, %v742_v13  ;;  %v790_v39 = vadd.f32 %v786_v54, %v780_v28  ;;  %v820_v60 = vadd.f32 %v816_v31, %v810_v63 }
 0x18e   : > { %v743_v57 = vmul.f32 %v739_v9, %v725_v50  ;;  %v811_v38 = vmul.f32 %v807_v5, %v725_v50  ;;  %v781_v46 = vmul.f32 %v777_v48, %v725_v50 }
 0x18f   : > { %v729_v33 = vpop.permute.xlu1 %728  ;;  %v756_v25 = vmul.f32 %v3247_v18, %v734_v41  ;;  %v824_v11 = vmul.f32 %v823_v24, %v734_v41  ;;  %v794_v61 = vmul.f32 %v3250_v16, %v734_v41 }
 0x190   : > { %v735_v49 = vmul.f32 %v729_v33, %v3013_v19  ;;  %v731_v53 = vpop.permute.xlu0 %730  ;;  %v753_v1 = vadd.f32 %v749_v22, %v743_v57  ;;  %v821_v35 = vadd.f32 %v817_v12, %v811_v38  ;;  %v791_v28 = vadd.f32 %v787_v59, %v781_v46 }
 0x191   : > { %v760_v14 = vadd.f32 %v756_v25, %v750_v47  ;;  %v828_v42 = vadd.f32 %v824_v11, %v818_v32  ;;  %v736_v51 = vmul.f32 %v731_v53, %v3013_v19  ;;  %v798_v59 = vadd.f32 %v794_v61, %v788_v15 }
 0x192   : > { %v757_v34 = vmul.f32 %v3247_v18, %v735_v49  ;;  %v825_v9 = vmul.f32 %v823_v24, %v735_v49  ;;  %v795_v58 = vmul.f32 %v3250_v16, %v735_v49  ;;  %v849_v38 = vstv %s2176_s26  ;;  %s2191_s26 = sld [smem:[#allocation8 + $0x26]] }
 0x193   : > { %v764_v43 = vrot.slane %v760_v14, 7  ;;  %v733_v52 = vpop.permute.xlu1 %732  ;;  %v758_v55 = vmul.f32 %v3247_v18, %v736_v51  ;;  %v832_v17 = vrot.slane %v828_v42, 1  ;;  %v826_v3 = vmul.f32 %v823_v24, %v736_v51 }
 0x194   : > { %v761_v29 = vadd.f32 %v757_v34, %v751_v8  ;;  %v829_v56 = vadd.f32 %v825_v9, %v819_v21  ;;  %v737_v5 = vmul.f32 %v733_v52, %v3013_v19  ;;  %v796_v37 = vmul.f32 %v3250_v16, %v736_v51 }
 0x195   : > { %v762_v48 = vadd.f32 %v758_v55, %v752_v45  ;;  %v830_v13 = vadd.f32 %v826_v3, %v820_v60  ;;  %v799_v31 = vadd.f32 %v795_v58, %v789_v6 }
 0x196   : > { %v765_v36 = vrot.slane %v761_v29, 7  ;;  %v833_v26 = vrot.slane %v829_v56, 1  ;;  %v759_v22 = vmul.f32 %v3247_v18, %v737_v5  ;;  %v797_v54 = vmul.f32 %v3250_v16, %v737_v5 }
 0x197   : > { %v827_v2 = vmul.f32 %v823_v24, %v737_v5  ;;  %v766_v50 = vrot.slane %v762_v48, 7  ;;  %v800_v24 = vadd.f32 %v796_v37, %v790_v39  ;;  %v834_v63 = vrot.slane %v830_v13, 1 }
 0x198   : > { %v770_v12 = vsel %vm528_vm2, %v764_v43, %v765_v36  ;;  %v838_v30 = vsel %vm681_vm5, %v832_v17, %v833_v26  ;;  %v763_v47 = vadd.f32 %v759_v22, %v753_v1  ;;  %v801_v33 = vadd.f32 %v797_v54, %v791_v28 }
 0x199   : > { %v773_v41 = vmul.f32 %v3074_v62, %v770_v12  ;;  %v831_v18 = vadd.f32 %v827_v2, %v821_v35  ;;  %v769_v8 = vsel %vm528_vm2, %v765_v36, %v766_v50  ;;  %v837_v45 = vsel %vm681_vm5, %v833_v26, %v834_v63 }
 0x19a   : > { %v767_v32 = vrot.slane %v763_v47, 7  ;;  %v774_v16 = vmul.f32 %v4059_v20, %v769_v8  ;;  %v841_v14 = vmul.f32 %v4063_v0, %v837_v45  ;;  %v840_v51 = vmul.f32 %v3088_v23, %v838_v30 }
 0x19b   : > { %v803_v57 = vadd.f32 %v799_v31, %v773_v41  ;;  %v835_v25 = vrot.slane %v831_v18, 1 }
 0x19c   : > { %v771_v11 = vsel %vm528_vm2, %v767_v32, %v764_v43  ;;  %v768_v6 = vsel %vm528_vm2, %v766_v50, %v767_v32  ;;  %v804_v21 = vadd.f32 %v800_v24, %v774_v16 }
 0x19d   : > { %v772_v49 = vmul.f32 %v3079_v4, %v771_v11  ;;  %v839_v39 = vsel %vm681_vm5, %v835_v25, %v832_v17  ;;  %v775_v15 = vmul.f32 %v4060_v7, %v768_v6  ;;  %v836_v53 = vsel %vm681_vm5, %v834_v63, %v835_v25 }
 0x19e   : > { %v842_v42 = vmul.f32 %v4064_v40, %v836_v53  ;;  %v843_v60 = vmul.f32 %v4062_v27, %v839_v39  ;;  %v845_v9 = vadd.f32 %v841_v14, %v803_v57 }
 0x19f   : > { %v802_v46 = vadd.f32 %v798_v59, %v772_v49  ;;  %v805_v34 = vadd.f32 %v801_v33, %v775_v15  ;;  %v4070_v49 = vld [vmem:[#allocation32_spill] sm:$0xff]  ;;  %v4071_v15 = vld [vmem:[#allocation34_spill] sm:$0xff] }
 0x1a0   : > { %v846_v1 = vadd.f32 %v842_v42, %v804_v21  ;;  %v3291_v52 = vadd.f32 %v849_v38, %v845_v9  ;;  %v4069_v21 = vld [vmem:[#allocation31_spill] sm:$0xff]  ;;  %v854_v39 = vadd.s32 4294967294, %v4070_v49  ;;  %v857_v53 = vadd.s32 4294967294, %v4071_v15 }
 0x1a1   : > { %v844_v43 = vadd.f32 %v840_v51, %v802_v46  ;;  %v847_v61 = vadd.f32 %v843_v60, %v805_v34  ;;  %v855_v45 = vadd.s32 4294967294, %v4069_v21  ;;  %v4073_v42 = vmov 0.0  }
 0x1a2   : > { %4065 = vst [vmem:[#allocation35_spill] sm:$0xff] %v3291_v52  ;;  %v3293_v55 = vadd.f32 %v849_v38, %v846_v1  ;;  %1122 = vrot.lane.b32.xlu1 %v3291_v52, %s2570_s3  ;;  %v879_v17 = vrot.slane %v3291_v52, 6  ;;  %v1010_v35 = vrot.slane %v3291_v52, 7  ;;  %v1218_v12 = vrot.slane %v3291_v52, 1 }
 0x1a3   : > { %v3295_v29 = vadd.f32 %v849_v38, %v844_v43  ;;  %v3297_v56 = vadd.f32 %v849_v38, %v847_v61  ;;  %v1352_v8 = vrot.slane %v3291_v52, 2  ;;  %vm859_vm12 = vcmp.ge.s32.totalorder %v855_v45, 0  ;;  %v4072_v38 = vld [vmem:[#allocation33_spill] sm:$0xff] }
 0x1a4   : > { %4066 = vst [vmem:[#allocation43_spill] sm:$0xff] %v3293_v55  ;;  %v880_v5 = vrot.slane %v3293_v55, 6  ;;  %v1011_v58 = vrot.slane %v3293_v55, 7  ;;  %v1219_v54 = vrot.slane %v3293_v55, 1  ;;  %v1353_v16 = vrot.slane %v3293_v55, 2 }
 0x1a5   : > { %4067 = vst [vmem:[#allocation45_spill] sm:$0xff] %v3295_v29  ;;  %4068 = vst [vmem:[#allocation46_spill] sm:$0xff] %v3297_v56  ;;  %1120 = vrot.lane.b32.xlu0 %v3295_v29, %s2570_s3  ;;  %v878_v48 = vrot.slane %v3295_v29, 6  ;;  %v881_v3 = vrot.slane %v3297_v56, 6  ;;  %v1009_v36 = vrot.slane %v3295_v29, 7  ;;  %v1012_v26 = vrot.slane %v3297_v56, 7 }
 0x1a6   : > { %v3314_v22 = vsel %vm882_vm10, %v879_v17, %v880_v5  ;;  %v3318_v37 = vsel %vm528_vm2, %v1010_v35, %v1011_v58  ;;  %1126 = vrot.lane.b32.xlu1 %v3297_v56, %s2570_s3  ;;  %v3346_v31 = vsel %vm681_vm5, %v1218_v12, %v1219_v54  ;;  %v1217_v41 = vrot.slane %v3295_v29, 1 }
 0x1a7   : > { %v886_v2 = vsel %vm882_vm10, %v881_v3, %v878_v48  ;;  %v885_v50 = vsel %vm882_vm10, %v878_v48, %v879_v17  ;;  %v883_v13 = vsel %vm882_vm10, %v880_v5, %v881_v3  ;;  %v3331_v28 = vsel %vm528_vm2, %v1009_v36, %v1010_v35 }
 0x1a8   : > { %v3338_v30 = vsel %vm528_vm2, %v1012_v26, %v1009_v36  ;;  %v3342_v47 = vsel %vm528_vm2, %v1011_v58, %v1012_v26  ;;  %v1220_v18 = vrot.slane %v3297_v56, 1  ;;  %v3356_v32 = vsel %vm681_vm5, %v1217_v41, %v1218_v12 }
 0x1a9   : > { %1124 = vrot.lane.b32.xlu0 %v3293_v55, %s2570_s3  ;;  %v1351_v24 = vrot.slane %v3295_v29, 2  ;;  %v1354_v57 = vrot.slane %v3297_v56, 2  ;;  %v3371_v33 = vsel %vm1355_vm11, %v1352_v8, %v1353_v16  ;;  %vm863_vm13 = vcmp.lt.s32.totalorder %v855_v45, 32 }
 0x1aa   : > { %1144 = vrot.lane.b32.xlu1 %v3291_v52, %s2567_s7  ;;  %v3364_v63 = vsel %vm681_vm5, %v1220_v18, %v1217_v41  ;;  %v3368_v59 = vsel %vm681_vm5, %v1219_v54, %v1220_v18  ;;  %vm858_vm14 = vcmp.ge.s32.totalorder %v854_v39, 0  ;;  %vm862_vm15 = vcmp.lt.s32.totalorder %v854_v39, 32  ;;  %vm867_vm0 = vmand %vm859_vm12, %vm863_vm13 }
 0x1ab   : > { %v3373_v25 = vsel %vm1355_vm11, %v1351_v24, %v1352_v8  ;;  %v3375_v11 = vsel %vm1355_vm11, %v1354_v57, %v1351_v24  ;;  %v3377_v6 = vsel %vm1355_vm11, %v1353_v16, %v1354_v57  ;;  %v856_v14 = vadd.s32 4294967294, %v4072_v38  ;;  %vm866_vm1 = vmand %vm858_vm14, %vm862_vm15 }
 0x1ac   : > { %vm861_vm3 = vcmp.ge.s32.totalorder %v857_v53, 0  ;;  %vm865_vm4 = vcmp.lt.s32.totalorder %v857_v53, 32  ;;  %v2178_v51 = vsel %vm867_vm0, 1.0, %v4073_v42  ;;  %v2177_v46 = vsel %vm866_vm1, 1.0, %v4073_v42 }
 0x1ad   : > { %1142 = vrot.lane.b32.xlu0 %v3295_v29, %s2567_s7  ;;  %vm860_vm6 = vcmp.ge.s32.totalorder %v856_v14, 0  ;;  %vm864_vm7 = vcmp.lt.s32.totalorder %v856_v14, 32  ;;  %vm869_vm8 = vmand %vm861_vm3, %vm865_vm4  ;;  %v3405_v60 = vmul.f32 %v2178_v51, %v885_v50  ;;  %v3407_v34 = vmul.f32 %v2177_v46, %v886_v2  ;;  %v4075_v50 = vld [vmem:[#allocation29_spill] sm:$0xff] }
 0x1ae   : > { %1148 = vrot.lane.b32.xlu1 %v3297_v56, %s2567_s7  ;;  %vm868_vm9 = vmand %vm860_vm6, %vm864_vm7  ;;  %v2180_v9 = vsel %vm869_vm8, 1.0, %v4073_v42  ;;  %v3450_v17 = vmul.f32 %v3074_v62, %v3331_v28  ;;  %v3454_v5 = vmul.f32 %v3079_v4, %v3338_v30  ;;  %v3462_v35 = vmul.f32 %v4060_v7, %v3342_v47 }
 0x1af   : > { %v2179_v1 = vsel %vm868_vm9, 1.0, %v4073_v42  ;;  %v3415_v43 = vmul.f32 %v2180_v9, %v883_v13  ;;  %v3466_v58 = vmul.f32 %v4059_v20, %v3318_v37  ;;  %v3498_v48 = vmul.f32 %v4063_v0, %v3346_v31 }
 0x1b0   : > { %v3418_v61 = vmul.f32 %v2179_v1, %v3314_v22  ;;  %v3502_v3 = vmul.f32 %v3088_v23, %v3356_v32  ;;  %v3510_v36 = vmul.f32 %v4062_v27, %v3364_v63  ;;  %v3514_v26 = vmul.f32 %v4064_v40, %v3368_v59 }
 0x1b1   : > { %1146 = vrot.lane.b32.xlu0 %v3293_v55, %s2567_s7  ;;  %v1328_v22 = vadd.s32 2, %v4069_v21  ;;  %v1327_v54 = vadd.s32 2, %v4070_v49  ;;  %v1330_v12 = vadd.s32 2, %v4071_v15  ;;  %v1329_v47 = vadd.s32 2, %v4072_v38 }
 0x1b2   : > { %1176 = vrot.lane.b32.xlu1 %v3291_v52, %s2568_s30  ;;  %4074 = vst [vmem:[#allocation31_spill] sm:$0xff] %v3514_v26 }
 0x1b3   : > { %vm1332_vm10 = vcmp.ge.s32.totalorder %v1328_v22, 0  ;;  %vm1336_vm11 = vcmp.lt.s32.totalorder %v1328_v22, 32  ;;  %vm1331_vm12 = vcmp.ge.s32.totalorder %v1327_v54, 0  ;;  %vm1335_vm13 = vcmp.lt.s32.totalorder %v1327_v54, 32 }
 0x1b4   : > { %vm1340_vm14 = vmand %vm1332_vm10, %vm1336_vm11  ;;  %vm1334_vm0 = vcmp.ge.s32.totalorder %v1330_v12, 0  ;;  %vm1338_vm1 = vcmp.lt.s32.totalorder %v1330_v12, 32  ;;  %vm1333_vm3 = vcmp.ge.s32.totalorder %v1329_v47, 0  ;;  %vm1337_vm4 = vcmp.lt.s32.totalorder %v1329_v47, 32 }
 0x1b5   : > { %1174 = vrot.lane.b32.xlu0 %v3295_v29, %s2568_s30  ;;  %vm1339_vm15 = vmand %vm1331_vm12, %vm1335_vm13  ;;  %v2204_v16 = vsel %vm1340_vm14, 1.0, %v4073_v42 }
 0x1b6   : > { %1180 = vrot.lane.b32.xlu1 %v3297_v56, %s2568_s30  ;;  %v2203_v24 = vsel %vm1339_vm15, 1.0, %v4073_v42  ;;  %vm1342_vm6 = vmand %vm1334_vm0, %vm1338_vm1  ;;  %v3569_v59 = vmul.f32 %v2204_v16, %v3371_v33 }
 0x1b7   : > { %vm1341_vm7 = vmand %vm1333_vm3, %vm1337_vm4  ;;  %v3574_v21 = vmul.f32 %v2203_v24, %v3373_v25  ;;  %v2206_v45 = vsel %vm1342_vm6, 1.0, %v4073_v42  ;;  %v916_v24 = vstv %s2181_s25  ;;  %s3664_s25 = sld [smem:[#allocation8 + $0x2d]] }
 0x1b8   : > { %4076 = vst [vmem:[#allocation32_spill] sm:$0xff] %v3569_v59  ;;  %v2205_v49 = vsel %vm1341_vm7, 1.0, %v4073_v42  ;;  %v3585_v33 = vmul.f32 %v2206_v45, %v3375_v11  ;;  %v934_v45 = vstv %s2183_s6  ;;  %s2199_s6 = sld [smem:[#allocation8 + $0x2e]] }
 0x1b9   : > { %1178 = vrot.lane.b32.xlu0 %v3293_v55, %s2568_s30  ;;  %4077 = vst [vmem:[#allocation34_spill] sm:$0xff] %v3574_v21  ;;  %v3590_v25 = vmul.f32 %v2205_v49, %v3377_v6  ;;  %v4080_v6 = vld [vmem:[#allocation30_spill] sm:$0xff] }
 0x1ba   : > { %1198 = vrot.lane.b32.xlu1 %v3291_v52, %s2571_s9  ;;  %4078 = vst [vmem:[#allocation33_spill] sm:$0xff] %v3585_v33 }
 0x1bb   : > { %4079 = vst [vmem:[#allocation29_spill] sm:$0xff] %v3590_v25 }
 0x1bd   : > { %1196 = vrot.lane.b32.xlu0 %v3295_v29, %s2571_s9 }
 0x1be   : > { %1202 = vrot.lane.b32.xlu1 %v3297_v56, %s2571_s9 }
 0x1c1   : > { %1200 = vrot.lane.b32.xlu0 %v3293_v55, %s2571_s9 }
 0x1c2   : > { %900 = vrot.lane.b32.xlu1 %v3405_v60, %s2570_s3 }
 0x1c5   : > { %898 = vrot.lane.b32.xlu0 %v3407_v34, %s2570_s3 }
 0x1c6   : > { %904 = vrot.lane.b32.xlu1 %v3415_v43, %s2570_s3 }
 0x1c9   : > { %902 = vrot.lane.b32.xlu0 %v3418_v61, %s2570_s3 }
 0x1ca   : > { %924 = vrot.lane.b32.xlu1 %v3405_v60, %s2567_s7 }
 0x1cd   : > { %922 = vrot.lane.b32.xlu0 %v3407_v34, %s2567_s7 }
 0x1ce   : > { %928 = vrot.lane.b32.xlu1 %v3415_v43, %s2567_s7 }
 0x1d1   : > { %926 = vrot.lane.b32.xlu0 %v3418_v61, %s2567_s7 }
 0x1d2   : > { %956 = vrot.lane.b32.xlu1 %v3405_v60, %s2568_s30 }
 0x1d5   : > { %954 = vrot.lane.b32.xlu0 %v3407_v34, %s2568_s30 }
 0x1d6   : > { %960 = vrot.lane.b32.xlu1 %v3415_v43, %s2568_s30 }
 0x1d9   : > { %958 = vrot.lane.b32.xlu0 %v3418_v61, %s2568_s30 }
 0x1da   : > { %984 = vrot.lane.b32.xlu1 %v3405_v60, %s2571_s9 }
 0x1dd   : > { %982 = vrot.lane.b32.xlu0 %v3407_v34, %s2571_s9 }
 0x1de   : > { %988 = vrot.lane.b32.xlu1 %v3415_v43, %s2571_s9 }
 0x1e1   : > { %986 = vrot.lane.b32.xlu0 %v3418_v61, %s2571_s9 }
 0x1e2   : > { %1024 = vrot.lane.b32.xlu1 %v3450_v17, %s2570_s3 }
 0x1e5   : > { %1022 = vrot.lane.b32.xlu0 %v3454_v5, %s2570_s3 }
 0x1e6   : > { %1028 = vrot.lane.b32.xlu1 %v3462_v35, %s2570_s3 }
 0x1e9   : > { %1026 = vrot.lane.b32.xlu0 %v3466_v58, %s2570_s3 }
 0x1ea   : > { %1046 = vrot.lane.b32.xlu1 %v3450_v17, %s2567_s7 }
 0x1ed   : > { %1044 = vrot.lane.b32.xlu0 %v3454_v5, %s2567_s7 }
 0x1ee   : > { %1050 = vrot.lane.b32.xlu1 %v3462_v35, %s2567_s7 }
 0x1f1   : > { %1048 = vrot.lane.b32.xlu0 %v3466_v58, %s2567_s7 }
 0x1f2   : > { %1078 = vrot.lane.b32.xlu1 %v3450_v17, %s2568_s30 }
 0x1f5   : > { %1076 = vrot.lane.b32.xlu0 %v3454_v5, %s2568_s30 }
 0x1f6   : > { %1082 = vrot.lane.b32.xlu1 %v3462_v35, %s2568_s30 }
 0x1f9   : > { %1080 = vrot.lane.b32.xlu0 %v3466_v58, %s2568_s30 }
 0x1fa   : > { %1100 = vrot.lane.b32.xlu1 %v3450_v17, %s2571_s9 }
 0x1fd   : > { %1098 = vrot.lane.b32.xlu0 %v3454_v5, %s2571_s9 }
 0x1fe   : > { %1104 = vrot.lane.b32.xlu1 %v3462_v35, %s2571_s9 }
 0x201   : > { %1102 = vrot.lane.b32.xlu0 %v3466_v58, %s2571_s9 }
 0x202   : > { %1232 = vrot.lane.b32.xlu1 %v3498_v48, %s2570_s3 }
 0x205   : > { %1230 = vrot.lane.b32.xlu0 %v3502_v3, %s2570_s3 }
 0x206   : > { %1236 = vrot.lane.b32.xlu1 %v3510_v36, %s2570_s3 }
 0x209   : > { %1234 = vrot.lane.b32.xlu0 %v3514_v26, %s2570_s3 }
 0x20a   : > { %1254 = vrot.lane.b32.xlu1 %v3498_v48, %s2567_s7 }
 0x20d   : > { %1252 = vrot.lane.b32.xlu0 %v3502_v3, %s2567_s7 }
 0x20e   : > { %1258 = vrot.lane.b32.xlu1 %v3510_v36, %s2567_s7 }
 0x211   : > { %1256 = vrot.lane.b32.xlu0 %v3514_v26, %s2567_s7 }
 0x212   : > { %1286 = vrot.lane.b32.xlu1 %v3498_v48, %s2568_s30 }
 0x214   : > { %v1123_v37 = vpop.permute.xlu1 %1122 }
 0x215   : > { %1284 = vrot.lane.b32.xlu0 %v3502_v3, %s2568_s30  ;;  %v3535_v13 = vmul.f32 %v1123_v37, %v4075_v50 }
 0x216   : > { %1290 = vrot.lane.b32.xlu1 %v3510_v36, %s2568_s30 }
 0x217   : > { %v1121_v2 = vpop.permute.xlu0 %1120 }
 0x218   : > { %v3538_v28 = vmul.f32 %v1121_v2, %v4075_v50  ;;  %v1127_v30 = vpop.permute.xlu1 %1126 }
 0x219   : > { %1288 = vrot.lane.b32.xlu0 %v3514_v26, %s2568_s30  ;;  %v3547_v41 = vmul.f32 %v1127_v30, %v4075_v50 }
 0x21a   : > { %1308 = vrot.lane.b32.xlu1 %v3498_v48, %s2571_s9 }
 0x21b   : > { %v1125_v31 = vpop.permute.xlu0 %1124 }
 0x21c   : > { %v3550_v18 = vmul.f32 %v1125_v31, %v4075_v50  ;;  %v3556_v8 = vpop.permute.xlu1 %1144 }
 0x21d   : > { %1306 = vrot.lane.b32.xlu0 %v3502_v3, %s2571_s9 }
 0x21e   : > { %1312 = vrot.lane.b32.xlu1 %v3510_v36, %s2571_s9 }
 0x21f   : > { %v3558_v32 = vpop.permute.xlu0 %1142 }
 0x220   : > { %v3566_v63 = vpop.permute.xlu1 %1148 }
 0x221   : > { %1310 = vrot.lane.b32.xlu0 %v3514_v26, %s2571_s9 }
 0x222   : > { %1367 = vrot.lane.b32.xlu1 %v3569_v59, %s2570_s3 }
 0x223   : > { %v3571_v57 = vpop.permute.xlu0 %1146 }
 0x224   : > { %v3582_v39 = vpop.permute.xlu1 %1176 }
 0x225   : > { %1365 = vrot.lane.b32.xlu0 %v3574_v21, %s2570_s3 }
 0x226   : > { %1371 = vrot.lane.b32.xlu1 %v3585_v33, %s2570_s3 }
 0x227   : > { %v3587_v15 = vpop.permute.xlu0 %1174 }
 0x228   : > { %v3596_v53 = vpop.permute.xlu1 %1180 }
 0x229   : > { %1369 = vrot.lane.b32.xlu0 %v3590_v25, %s2570_s3  ;;  %s2197_s3 = sld [smem:[#allocation8 + $0x2c]] }
 0x22a   : > { %1389 = vrot.lane.b32.xlu1 %v3569_v59, %s2567_s7 }
 0x22b   : > { %v3598_v38 = vpop.permute.xlu0 %1178 }
 0x22c   : > { %v1199_v11 = vpop.permute.xlu1 %1198 }
 0x22d   : > { %1387 = vrot.lane.b32.xlu0 %v3574_v21, %s2567_s7  ;;  %v3605_v42 = vmul.f32 %v1199_v11, %v4080_v6 }
 0x22e   : > { %1393 = vrot.lane.b32.xlu1 %v3585_v33, %s2567_s7 }
 0x22f   : > { %v1197_v14 = vpop.permute.xlu0 %1196 }
 0x230   : > { %v3608_v51 = vmul.f32 %v1197_v14, %v4080_v6  ;;  %v1203_v46 = vpop.permute.xlu1 %1202 }
 0x231   : > { %1391 = vrot.lane.b32.xlu0 %v3590_v25, %s2567_s7  ;;  %v3615_v1 = vmul.f32 %v1203_v46, %v4080_v6 }
 0x232   : > { %1421 = vrot.lane.b32.xlu1 %v3569_v59, %s2568_s30 }
 0x233   : > { %v1201_v9 = vpop.permute.xlu0 %1200 }
 0x234   : > { %v3618_v22 = vmul.f32 %v1201_v9, %v4080_v6  ;;  %v901_v37 = vpop.permute.xlu1 %900  ;;  %v944_v9 = vstv %s2184_s22  ;;  %s2201_s22 = sld [smem:[#allocation8 + $0x30]] }
 0x235   : > { %1419 = vrot.lane.b32.xlu0 %v3574_v21, %s2568_s30  ;;  %v913_v2 = vmul.f32 %v4075_v50, %v901_v37  ;;  %v946_v23 = vmul.f32 %v944_v9, %v3405_v60  ;;  %v945_v20 = vmul.f32 %v944_v9, %v3407_v34  ;;  %v947_v60 = vmul.f32 %v944_v9, %v3418_v61 }
 0x236   : > { %1425 = vrot.lane.b32.xlu1 %v3585_v33, %s2568_s30 }
 0x237   : > { %v899_v54 = vpop.permute.xlu0 %898  ;;  %v918_v37 = vmul.f32 %v916_v24, %v913_v2 }
 0x238   : > { %v912_v12 = vmul.f32 %v4075_v50, %v899_v54  ;;  %v905_v30 = vpop.permute.xlu1 %904 }
 0x239   : > { %1423 = vrot.lane.b32.xlu0 %v3590_v25, %s2568_s30  ;;  %v915_v47 = vmul.f32 %v4075_v50, %v905_v30 }
 0x23a   : > { %1443 = vrot.lane.b32.xlu1 %v3569_v59, %s2571_s9  ;;  %v917_v30 = vmul.f32 %v916_v24, %v912_v12 }
 0x23b   : > { %v903_v31 = vpop.permute.xlu0 %902  ;;  %v920_v2 = vmul.f32 %v916_v24, %v915_v47 }
 0x23c   : > { %v914_v16 = vmul.f32 %v4075_v50, %v903_v31  ;;  %v925_v49 = vpop.permute.xlu1 %924 }
 0x23d   : > { %1441 = vrot.lane.b32.xlu0 %v3574_v21, %s2571_s9  ;;  %v931_v11 = vmul.f32 %v925_v49, %v2917_v44 }
 0x23e   : > { %1447 = vrot.lane.b32.xlu1 %v3585_v33, %s2571_s9  ;;  %v919_v62 = vmul.f32 %v916_v24, %v914_v16  ;;  %v1000_v24 = vstv %s2186_s23  ;;  %v1034_v33 = vstv %s2188_s8  ;;  %s2202_s23 = sld [smem:[#allocation8 + $0x31]]  ;;  %s2207_s8 = sld [smem:[#allocation8 + $0x32]] }
 0x23f   : > { %v923_v14 = vpop.permute.xlu0 %922  ;;  %v936_v54 = vmul.f32 %v934_v45, %v931_v11 }
 0x240   : > { %v930_v46 = vmul.f32 %v923_v14, %v2917_v44  ;;  %v929_v40 = vpop.permute.xlu1 %928 }
 0x241   : > { %1445 = vrot.lane.b32.xlu0 %v3590_v25, %s2571_s9  ;;  %v940_v0 = vadd.f32 %v936_v54, %v918_v37  ;;  %v933_v27 = vmul.f32 %v929_v40, %v2917_v44  ;;  %v948_v40 = vmul.f32 %v944_v9, %v3415_v43  ;;  %s3662_s9 = sld [smem:[#allocation8 + $0x27]] }
 0x242   : > { %v935_v31 = vmul.f32 %v934_v45, %v930_v46 }
 0x243   : > { %v927_v49 = vpop.permute.xlu0 %926  ;;  %v938_v11 = vmul.f32 %v934_v45, %v933_v27  ;;  %v950_v4 = vadd.f32 %v946_v23, %v940_v0 }
 0x244   : > { %v939_v14 = vadd.f32 %v935_v31, %v917_v30  ;;  %v932_v7 = vmul.f32 %v927_v49, %v2917_v44  ;;  %v957_v12 = vpop.permute.xlu1 %956  ;;  %v966_v49 = vstv %s2185_s11  ;;  %s2200_s11 = sld [smem:[#allocation8 + $0x2f]] }
 0x245   : > { %v942_v25 = vadd.f32 %v938_v11, %v920_v2  ;;  %v963_v30 = vmul.f32 %v957_v12, %v3013_v19 }
 0x246   : > { %v937_v10 = vmul.f32 %v934_v45, %v932_v7  ;;  %v949_v46 = vadd.f32 %v945_v20, %v939_v14 }
 0x247   : > { %v955_v37 = vpop.permute.xlu0 %954  ;;  %v952_v31 = vadd.f32 %v948_v40, %v942_v25  ;;  %v968_v7 = vmul.f32 %v966_v49, %v963_v30 }
 0x248   : > { %v941_v54 = vadd.f32 %v937_v10, %v919_v62  ;;  %v962_v34 = vmul.f32 %v955_v37, %v3013_v19  ;;  %v961_v27 = vpop.permute.xlu1 %960 }
 0x249   : > { %v965_v20 = vmul.f32 %v961_v27, %v3013_v19  ;;  %v972_v25 = vadd.f32 %v968_v7, %v950_v4 }
 0x24a   : > { %v951_v23 = vadd.f32 %v947_v60, %v941_v54  ;;  %v967_v47 = vmul.f32 %v966_v49, %v962_v34 }
 0x24b   : > { %v959_v0 = vpop.permute.xlu0 %958  ;;  %v970_v45 = vmul.f32 %v966_v49, %v965_v20 }
 0x24c   : > { %v964_v16 = vmul.f32 %v959_v0, %v3013_v19  ;;  %v985_v43 = vpop.permute.xlu1 %984  ;;  %v971_v14 = vadd.f32 %v967_v47, %v949_v46 }
 0x24d   : > { %v997_v10 = vmul.f32 %v4080_v6, %v985_v43  ;;  %v974_v34 = vadd.f32 %v970_v45, %v952_v31 }
 0x24e   : > { %v969_v2 = vmul.f32 %v966_v49, %v964_v16 }
 0x24f   : > { %v983_v62 = vpop.permute.xlu0 %982  ;;  %v1002_v9 = vmul.f32 %v1000_v24, %v997_v10 }
 0x250   : > { %v996_v61 = vmul.f32 %v4080_v6, %v983_v62  ;;  %v989_v12 = vpop.permute.xlu1 %988  ;;  %v973_v0 = vadd.f32 %v969_v2, %v951_v23 }
 0x251   : > { %v1006_v37 = vadd.f32 %v1002_v9, %v972_v25  ;;  %v999_v40 = vmul.f32 %v4080_v6, %v989_v12 }
 0x252   : > { %v1001_v11 = vmul.f32 %v1000_v24, %v996_v61 }
 0x253   : > { %v987_v54 = vpop.permute.xlu0 %986  ;;  %v1004_v27 = vmul.f32 %v1000_v24, %v999_v40 }
 0x254   : > { %v1005_v60 = vadd.f32 %v1001_v11, %v971_v14  ;;  %v998_v30 = vmul.f32 %v4080_v6, %v987_v54  ;;  %v1025_v62 = vpop.permute.xlu1 %1024 }
 0x255   : > { %v1008_v4 = vadd.f32 %v1004_v27, %v974_v34  ;;  %v1031_v7 = vmul.f32 %v1025_v62, %v4075_v50  ;;  %v1132_v34 = vstv %s2193_s24  ;;  %v3668_v62 = vstv %s2196_s5  ;;  %s2209_s24 = sld [smem:[#allocation8 + $0x34]]  ;;  %s2214_s5 = sld [smem:[#allocation8 + $0x39]] }
 0x256   : > { %v1003_v43 = vmul.f32 %v1000_v24, %v998_v30 }
 0x257   : > { %v1023_v46 = vpop.permute.xlu0 %1022  ;;  %v1036_v47 = vmul.f32 %v1034_v33, %v1031_v7 }
 0x258   : > { %v1007_v49 = vadd.f32 %v1003_v43, %v973_v0  ;;  %v1030_v20 = vmul.f32 %v1023_v46, %v4075_v50  ;;  %v1029_v10 = vpop.permute.xlu1 %1028  ;;  %v1164_v0 = vstv %s2195_s13  ;;  %v3666_v43 = vstv %s2194_s29  ;;  %s2211_s13 = sld [smem:[#allocation8 + $0x36]]  ;;  %s2212_s29 = sld [smem:[#allocation8 + $0x37]] }
 0x259   : > { %v1040_v61 = vadd.f32 %v1036_v47, %v1006_v37  ;;  %v1033_v25 = vmul.f32 %v1029_v10, %v4075_v50 }
 0x25a   : > { %v1035_v16 = vmul.f32 %v1034_v33, %v1030_v20 }
 0x25b   : > { %v1027_v9 = vpop.permute.xlu0 %1026  ;;  %v1038_v24 = vmul.f32 %v1034_v33, %v1033_v25 }
 0x25c   : > { %v1039_v31 = vadd.f32 %v1035_v16, %v1005_v60  ;;  %v1032_v23 = vmul.f32 %v1027_v9, %v4075_v50  ;;  %v1047_v14 = vpop.permute.xlu1 %1046  ;;  %v1056_v60 = vstv %s2189_s0  ;;  %s2208_s0 = sld [smem:[#allocation8 + $0x33]] }
 0x25d   : > { %v1042_v2 = vadd.f32 %v1038_v24, %v1008_v4  ;;  %v1053_v37 = vmul.f32 %v1047_v14, %v2917_v44  ;;  %v1088_v24 = vstv %s2191_s26  ;;  %s2217_s26 = sld [smem:[#allocation8 + $0x3c]] }
 0x25e   : > { %v1037_v45 = vmul.f32 %v1034_v33, %v1032_v23  ;;  %v1066_v33 = vstv %s2190_s12  ;;  %v3678_v23 = vmul.f32 %v1164_v0, %v3291_v52  ;;  %s2210_s12 = sld [smem:[#allocation8 + $0x35]] }
 0x25f   : > { %v1045_v11 = vpop.permute.xlu0 %1044  ;;  %v1058_v4 = vmul.f32 %v1056_v60, %v1053_v37  ;;  %v1068_v47 = vmul.f32 %v1066_v33, %v3450_v17  ;;  %v1067_v16 = vmul.f32 %v1066_v33, %v3454_v5  ;;  %v1070_v25 = vmul.f32 %v1066_v33, %v3462_v35 }
 0x260   : > { %v1041_v12 = vadd.f32 %v1037_v45, %v1007_v49  ;;  %v1051_v40 = vpop.permute.xlu1 %1050  ;;  %v1052_v30 = vmul.f32 %v1045_v11, %v2917_v44  ;;  %v1069_v9 = vmul.f32 %v1066_v33, %v3466_v58  ;;  %v3682_v11 = vmul.f32 %v1164_v0, %v3295_v29 }
 0x261   : > { %v1055_v7 = vmul.f32 %v1051_v40, %v2917_v44  ;;  %v3685_v17 = vmul.f32 %v1164_v0, %v3297_v56  ;;  %v3687_v5 = vstv %s2197_s3  ;;  %v1062_v40 = vadd.f32 %v1058_v4, %v1040_v61  ;;  %s2220_s3 = sld [smem:[#allocation8 + $0x3f]] }
 0x262   : > { %v1057_v49 = vmul.f32 %v1056_v60, %v1052_v30  ;;  %v3690_v58 = vmul.f32 %v1164_v0, %v3293_v55  ;;  %v1110_v33 = vstv %s3662_s9  ;;  %v1151_v29 = vmul.f32 %v3556_v8, %v2917_v44  ;;  %s2213_s9 = sld [smem:[#allocation8 + $0x38]] }
 0x263   : > { %v1049_v54 = vpop.permute.xlu0 %1048  ;;  %v1060_v35 = vmul.f32 %v1056_v60, %v1055_v7  ;;  %v1133_v61 = vmul.f32 %v1132_v34, %v3538_v28  ;;  %v1150_v4 = vmul.f32 %v3558_v32, %v2917_v44  ;;  %v1136_v7 = vmul.f32 %v1132_v34, %v3547_v41 }
 0x264   : > { %v1079_v27 = vpop.permute.xlu1 %1078  ;;  %v1054_v20 = vmul.f32 %v1049_v54, %v2917_v44  ;;  %v1061_v54 = vadd.f32 %v1057_v49, %v1039_v31  ;;  %v1135_v8 = vmul.f32 %v1132_v34, %v3550_v18  ;;  %v1156_v21 = vmul.f32 %v3666_v43, %v1151_v29 }
 0x265   : > { %v1085_v10 = vmul.f32 %v1079_v27, %v3013_v19  ;;  %v3694_v27 = vstv %s3664_s25  ;;  %v1064_v49 = vadd.f32 %v1060_v35, %v1042_v2  ;;  %s2216_s25 = sld [smem:[#allocation8 + $0x3b]] }
 0x266   : > { %v1059_v30 = vmul.f32 %v1056_v60, %v1054_v20  ;;  %v1072_v20 = vadd.f32 %v1068_v47, %v1062_v40  ;;  %v1153_v40 = vmul.f32 %v3566_v63, %v2917_v44  ;;  %v1182_v63 = vmul.f32 %v3587_v15, %v3013_v19 }
 0x267   : > { %v1077_v46 = vpop.permute.xlu0 %1076  ;;  %v1090_v56 = vmul.f32 %v1088_v24, %v1085_v10  ;;  %v1074_v35 = vadd.f32 %v1070_v25, %v1064_v49 }
 0x268   : > { %v1084_v45 = vmul.f32 %v1077_v46, %v3013_v19  ;;  %v1083_v14 = vpop.permute.xlu1 %1082  ;;  %v1134_v46 = vmul.f32 %v1132_v34, %v3535_v13  ;;  %v1063_v10 = vadd.f32 %v1059_v30, %v1041_v12 }
 0x269   : > { %v1087_v52 = vmul.f32 %v1083_v14, %v3013_v19  ;;  %v1071_v14 = vadd.f32 %v1067_v16, %v1061_v54  ;;  %v1094_v32 = vadd.f32 %v1090_v56, %v1072_v20  ;;  %v1183_v16 = vmul.f32 %v3582_v39, %v3013_v19 }
 0x26a   : > { %v1089_v0 = vmul.f32 %v1088_v24, %v1084_v45  ;;  %v1073_v29 = vadd.f32 %v1069_v9, %v1063_v10  ;;  %v1187_v10 = vmul.f32 %v3668_v62, %v1182_v63 }
 0x26b   : > { %v1081_v37 = vpop.permute.xlu0 %1080  ;;  %v1092_v45 = vmul.f32 %v1088_v24, %v1087_v52  ;;  %v1188_v15 = vmul.f32 %v3668_v62, %v1183_v16 }
 0x26c   : > { %v1086_v31 = vmul.f32 %v1081_v37, %v3013_v19  ;;  %v1101_v60 = vpop.permute.xlu1 %1100  ;;  %v1155_v37 = vmul.f32 %v3666_v43, %v1150_v4  ;;  %v1093_v26 = vadd.f32 %v1089_v0, %v1071_v14 }
 0x26d   : > { %v1107_v13 = vmul.f32 %v1101_v60, %v4080_v6 }
 0x26e   : > { %v1091_v41 = vmul.f32 %v1088_v24, %v1086_v31  ;;  %v1096_v24 = vadd.f32 %v1092_v45, %v1074_v35  ;;  %v1158_v31 = vmul.f32 %v3666_v43, %v1153_v40 }
 0x26f   : > { %v1099_v55 = vpop.permute.xlu0 %1098  ;;  %v1112_v59 = vmul.f32 %v1110_v33, %v1107_v13 }
 0x270   : > { %v1106_v28 = vmul.f32 %v1099_v55, %v4080_v6  ;;  %v1105_v47 = vpop.permute.xlu1 %1104  ;;  %v1152_v55 = vmul.f32 %v3571_v57, %v2917_v44 }
 0x271   : > { %v1116_v18 = vadd.f32 %v1112_v59, %v1094_v32  ;;  %v1109_v12 = vmul.f32 %v1105_v47, %v4080_v6  ;;  %v1095_v59 = vadd.f32 %v1091_v41, %v1073_v29 }
 0x272   : > { %v1111_v2 = vmul.f32 %v1110_v33, %v1106_v28  ;;  %v1157_v39 = vmul.f32 %v3666_v43, %v1152_v55 }
 0x273   : > { %v1103_v34 = vpop.permute.xlu0 %1102  ;;  %v1138_v54 = vadd.f32 %v1134_v46, %v1116_v18  ;;  %v1114_v30 = vmul.f32 %v1110_v33, %v1109_v12  ;;  %v1184_v46 = vmul.f32 %v3598_v38, %v3013_v19  ;;  %v1210_v38 = vmul.f32 %v3687_v5, %v3605_v42 }
 0x274   : > { %v1115_v52 = vadd.f32 %v1111_v2, %v1093_v26  ;;  %v1108_v56 = vmul.f32 %v1103_v34, %v4080_v6  ;;  %v1233_v0 = vpop.permute.xlu1 %1232  ;;  %v1185_v26 = vmul.f32 %v3596_v53, %v3013_v19 }
 0x275   : > { %v1160_v57 = vadd.f32 %v1156_v21, %v1138_v54  ;;  %v1118_v9 = vadd.f32 %v1114_v30, %v1096_v24  ;;  %v1239_v13 = vmul.f32 %v1233_v0, %v4075_v50 }
 0x276   : > { %v1137_v25 = vadd.f32 %v1133_v61, %v1115_v52  ;;  %v1113_v4 = vmul.f32 %v1110_v33, %v1108_v56  ;;  %v1190_v28 = vmul.f32 %v3668_v62, %v1185_v26  ;;  %v1211_v52 = vmul.f32 %v3687_v5, %v3618_v22 }
 0x277   : > { %v1231_v60 = vpop.permute.xlu0 %1230  ;;  %v1140_v61 = vadd.f32 %v1136_v7, %v1118_v9  ;;  %v1170_v33 = vadd.f32 %v3678_v23, %v1160_v57  ;;  %v1189_v23 = vmul.f32 %v3668_v62, %v1184_v46  ;;  %v1244_v2 = vmul.f32 %v3694_v27, %v1239_v13 }
 0x278   : > { %v1159_v49 = vadd.f32 %v1155_v37, %v1137_v25  ;;  %v1117_v20 = vadd.f32 %v1113_v4, %v1095_v59  ;;  %v1238_v14 = vmul.f32 %v1231_v60, %v4075_v50  ;;  %v1237_v43 = vpop.permute.xlu1 %1236  ;;  %v1209_v37 = vmul.f32 %v3687_v5, %v3608_v51 }
 0x279   : > { %v1162_v32 = vadd.f32 %v1158_v31, %v1140_v61  ;;  %v1192_v45 = vadd.f32 %v1188_v15, %v1170_v33  ;;  %v1241_v40 = vmul.f32 %v1237_v43, %v4075_v50  ;;  %v1212_v51 = vmul.f32 %v3687_v5, %v3615_v1 }
 0x27a   : > { %v1139_v53 = vadd.f32 %v1135_v8, %v1117_v20  ;;  %v1169_v21 = vadd.f32 %v3682_v11, %v1159_v49  ;;  %v1243_v42 = vmul.f32 %v3694_v27, %v1238_v14  ;;  %v1264_v4 = vstv %s2199_s6  ;;  %s2219_s6 = sld [smem:[#allocation8 + $0x3e]] }
 0x27b   : > { %v1235_v7 = vpop.permute.xlu0 %1234  ;;  %v1214_v11 = vadd.f32 %v1210_v38, %v1192_v45  ;;  %v1172_v47 = vadd.f32 %v3685_v17, %v1162_v32  ;;  %v1246_v24 = vmul.f32 %v3694_v27, %v1241_v40  ;;  %v1296_v60 = vstv %s2201_s22  ;;  %s2215_s22 = sld [smem:[#allocation8 + $0x3a]] }
 0x27c   : > { %v1161_v41 = vadd.f32 %v1157_v39, %v1139_v53  ;;  %v1191_v8 = vadd.f32 %v1187_v10, %v1169_v21  ;;  %v1240_v62 = vmul.f32 %v1235_v7, %v4075_v50  ;;  %v1255_v12 = vpop.permute.xlu1 %1254  ;;  %v1274_v15 = vstv %s2200_s11  ;;  %s2218_s11 = sld [smem:[#allocation8 + $0x3d]] }
 0x27d   : > { %v1248_v34 = vadd.f32 %v1244_v2, %v1214_v11  ;;  %v1194_v55 = vadd.f32 %v1190_v28, %v1172_v47  ;;  %v1261_v59 = vmul.f32 %v1255_v12, %v2917_v44  ;;  %v1276_v10 = vmul.f32 %v1274_v15, %v3498_v48 }
 0x27e   : > { %v1213_v35 = vadd.f32 %v1209_v37, %v1191_v8  ;;  %v1171_v18 = vadd.f32 %v3690_v58, %v1161_v41  ;;  %v1245_v58 = vmul.f32 %v3694_v27, %v1240_v62  ;;  %v1275_v14 = vmul.f32 %v1274_v15, %v3502_v3 }
 0x27f   : > { %v1253_v29 = vpop.permute.xlu0 %1252  ;;  %v1216_v16 = vadd.f32 %v1212_v51, %v1194_v55  ;;  %v1266_v5 = vmul.f32 %v1264_v4, %v1261_v59  ;;  %v1318_v38 = vstv %s2202_s23  ;;  %v1278_v2 = vmul.f32 %v1274_v15, %v3510_v36  ;;  %s2221_s23 = sld [smem:[#allocation8 + $0x40]] }
 0x280   : > { %v1247_v17 = vadd.f32 %v1243_v42, %v1213_v35  ;;  %v1193_v56 = vadd.f32 %v1189_v23, %v1171_v18  ;;  %v1259_v30 = vpop.permute.xlu1 %1258  ;;  %v1260_v0 = vmul.f32 %v1253_v29, %v2917_v44  ;;  %v4081_v35 = vld [vmem:[#allocation31_spill] sm:$0xff] }
 0x281   : > { %v1250_v63 = vadd.f32 %v1246_v24, %v1216_v16  ;;  %v1263_v31 = vmul.f32 %v1259_v30, %v2917_v44  ;;  %v1270_v49 = vadd.f32 %v1266_v5, %v1248_v34  ;;  %v1277_v42 = vmul.f32 %v1274_v15, %v4081_v35 }
 0x282   : > { %v1215_v54 = vadd.f32 %v1211_v52, %v1193_v56  ;;  %v1265_v57 = vmul.f32 %v1264_v4, %v1260_v0 }
 0x283   : > { %v1257_v1 = vpop.permute.xlu0 %1256  ;;  %v1268_v20 = vmul.f32 %v1264_v4, %v1263_v31  ;;  %v1280_v7 = vadd.f32 %v1276_v10, %v1270_v49  ;;  %v1399_v10 = vstv %s2208_s0  ;;  %s2223_s0 = sld [smem:[#allocation8 + $0x42]] }
 0x284   : > { %v1249_v25 = vadd.f32 %v1245_v58, %v1215_v54  ;;  %v1287_v22 = vpop.permute.xlu1 %1286  ;;  %v1262_v27 = vmul.f32 %v1257_v1, %v2917_v44  ;;  %v1269_v33 = vadd.f32 %v1265_v57, %v1247_v17  ;;  %v1377_v58 = vstv %s2207_s8  ;;  %s3812_s8 = sld [smem:[#allocation8 + $0x41]] }
 0x285   : > { %v1293_v9 = vmul.f32 %v1287_v22, %v3013_v19  ;;  %v1272_v45 = vadd.f32 %v1268_v20, %v1250_v63 }
 0x286   : > { %v1267_v13 = vmul.f32 %v1264_v4, %v1262_v27  ;;  %v1279_v8 = vadd.f32 %v1275_v14, %v1269_v33 }
 0x287   : > { %v1285_v26 = vpop.permute.xlu0 %1284  ;;  %v1298_v53 = vmul.f32 %v1296_v60, %v1293_v9  ;;  %v1282_v51 = vadd.f32 %v1278_v2, %v1272_v45  ;;  %v1431_v45 = vstv %s2210_s12  ;;  %s2224_s12 = sld [smem:[#allocation8 + $0x45]] }
 0x288   : > { %v1292_v39 = vmul.f32 %v1285_v26, %v3013_v19  ;;  %v1291_v46 = vpop.permute.xlu1 %1290  ;;  %v1271_v41 = vadd.f32 %v1267_v13, %v1249_v25 }
 0x289   : > { %v1295_v21 = vmul.f32 %v1291_v46, %v3013_v19  ;;  %v1302_v11 = vadd.f32 %v1298_v53, %v1280_v7 }
 0x28a   : > { %v1297_v43 = vmul.f32 %v1296_v60, %v1292_v39  ;;  %v1281_v52 = vadd.f32 %v1277_v42, %v1271_v41  ;;  %v4083_v42 = vld [vmem:[#allocation34_spill] sm:$0xff] }
 0x28b   : > { %v1289_v61 = vpop.permute.xlu0 %1288  ;;  %v1300_v47 = vmul.f32 %v1296_v60, %v1295_v21 }
 0x28c   : > { %v1294_v28 = vmul.f32 %v1289_v61, %v3013_v19  ;;  %v1309_v32 = vpop.permute.xlu1 %1308  ;;  %v1301_v40 = vadd.f32 %v1297_v43, %v1279_v8  ;;  %v1409_v8 = vstv %s2209_s24  ;;  %s2229_s24 = sld [smem:[#allocation8 + $0x43]] }
 0x28d   : > { %v1315_v23 = vmul.f32 %v1309_v32, %v4080_v6  ;;  %v1304_v16 = vadd.f32 %v1300_v47, %v1282_v51  ;;  %v4082_v47 = vld [vmem:[#allocation32_spill] sm:$0xff]  ;;  %v1453_v51 = vstv %s2211_s13  ;;  %s3820_s13 = sld [smem:[#allocation8 + $0x44]] }
 0x28e   : > { %v1299_v18 = vmul.f32 %v1296_v60, %v1294_v28 }
 0x28f   : > { %v1307_v37 = vpop.permute.xlu0 %1306  ;;  %v1320_v3 = vmul.f32 %v1318_v38, %v1315_v23 }
 0x290   : > { %v1314_v48 = vmul.f32 %v1307_v37, %v4080_v6  ;;  %v1313_v12 = vpop.permute.xlu1 %1312  ;;  %v1303_v36 = vadd.f32 %v1299_v18, %v1281_v52  ;;  %v1410_v18 = vmul.f32 %v1409_v8, %v4083_v42  ;;  %v1513_v42 = vstv %s2215_s22  ;;  %s3864_s22 = sld [smem:[#allocation8 + $0x4b]] }
 0x291   : > { %v1324_v34 = vadd.f32 %v1320_v3, %v1302_v11  ;;  %v1317_v55 = vmul.f32 %v1313_v12, %v4080_v6  ;;  %v1411_v3 = vmul.f32 %v1409_v8, %v4082_v47 }
 0x292   : > { %v1319_v62 = vmul.f32 %v1318_v38, %v1314_v48 }
 0x293   : > { %v1311_v29 = vpop.permute.xlu0 %1310  ;;  %v1322_v24 = vmul.f32 %v1318_v38, %v1317_v55 }
 0x294   : > { %v1323_v17 = vadd.f32 %v1319_v62, %v1301_v40  ;;  %v1316_v56 = vmul.f32 %v1311_v29, %v4080_v6  ;;  %v1368_v30 = vpop.permute.xlu1 %1367 }
 0x295   : > { %v1326_v63 = vadd.f32 %v1322_v24, %v1304_v16  ;;  %v1374_v59 = vmul.f32 %v1368_v30, %v4075_v50  ;;  %v4084_v24 = vld [vmem:[#allocation33_spill] sm:$0xff] }
 0x296   : > { %v1321_v54 = vmul.f32 %v1318_v38, %v1316_v56 }
 0x297   : > { %v1366_v1 = vpop.permute.xlu0 %1365  ;;  %v1379_v0 = vmul.f32 %v1377_v58, %v1374_v59 }
 0x298   : > { %v1325_v25 = vadd.f32 %v1321_v54, %v1303_v36  ;;  %v1373_v4 = vmul.f32 %v1366_v1, %v4075_v50  ;;  %v1372_v5 = vpop.permute.xlu1 %1371  ;;  %v1413_v36 = vmul.f32 %v1409_v8, %v4084_v24 }
 0x299   : > { %v1383_v31 = vadd.f32 %v1379_v0, %v1324_v34  ;;  %v1376_v26 = vmul.f32 %v1372_v5, %v4075_v50  ;;  %v1463_v0 = vstv %s2212_s29  ;;  %s2230_s29 = sld [smem:[#allocation8 + $0x46]] }
 0x29a   : > { %v1378_v22 = vmul.f32 %v1377_v58, %v1373_v4 }
 0x29b   : > { %v1370_v57 = vpop.permute.xlu0 %1369  ;;  %v1381_v60 = vmul.f32 %v1377_v58, %v1376_v26 }
 0x29c   : > { %v1382_v27 = vadd.f32 %v1378_v22, %v1323_v17  ;;  %v1375_v9 = vmul.f32 %v1370_v57, %v4075_v50  ;;  %v1390_v46 = vpop.permute.xlu1 %1389 }
 0x29d   : > { %v1385_v49 = vadd.f32 %v1381_v60, %v1326_v63  ;;  %v1396_v33 = vmul.f32 %v1390_v46, %v2917_v44  ;;  %v4085_v63 = vld [vmem:[#allocation29_spill] sm:$0xff] }
 0x29e   : > { %v1380_v39 = vmul.f32 %v1377_v58, %v1375_v9  ;;  %v1412_v59 = vmul.f32 %v1409_v8, %v4085_v63 }
 0x29f   : > { %v1388_v20 = vpop.permute.xlu0 %1387  ;;  %v1401_v14 = vmul.f32 %v1399_v10, %v1396_v33 }
 0x2a0   : > { %v1384_v15 = vadd.f32 %v1380_v39, %v1325_v25  ;;  %v1394_v61 = vpop.permute.xlu1 %1393  ;;  %v1395_v53 = vmul.f32 %v1388_v20, %v2917_v44 }
 0x2a1   : > { %v1398_v50 = vmul.f32 %v1394_v61, %v2917_v44  ;;  %v1405_v37 = vadd.f32 %v1401_v14, %v1383_v31 }
 0x2a2   : > { %v1400_v28 = vmul.f32 %v1399_v10, %v1395_v53 }
 0x2a3   : > { %v1392_v13 = vpop.permute.xlu0 %1391  ;;  %v1403_v41 = vmul.f32 %v1399_v10, %v1398_v50  ;;  %v1415_v29 = vadd.f32 %v1411_v3, %v1405_v37  ;;  %v1565_v37 = vstv %s2219_s6  ;;  %s2248_s6 = sld [smem:[#allocation8 + $0x4f]] }
 0x2a4   : > { %v1422_v21 = vpop.permute.xlu1 %1421  ;;  %v1397_v38 = vmul.f32 %v1392_v13, %v2917_v44  ;;  %v1404_v11 = vadd.f32 %v1400_v28, %v1382_v27 }
 0x2a5   : > { %v1428_v32 = vmul.f32 %v1422_v21, %v3013_v19  ;;  %v1407_v55 = vadd.f32 %v1403_v41, %v1385_v49 }
 0x2a6   : > { %v1402_v2 = vmul.f32 %v1399_v10, %v1397_v38  ;;  %v1414_v16 = vadd.f32 %v1410_v18, %v1404_v11  ;;  %v1541_v38 = vstv %s2217_s26  ;;  %v3796_v18 = vstv %s2218_s11  ;;  %s2241_s26 = sld [smem:[#allocation8 + $0x48]] }
 0x2a7   : > { %v1420_v43 = vpop.permute.xlu0 %1419  ;;  %v1433_v40 = vmul.f32 %v1431_v45, %v1428_v32  ;;  %v1417_v31 = vadd.f32 %v1413_v36, %v1407_v55  ;;  %v1571_v32 = vstv %s2220_s3  ;;  %v1581_v55 = vstv %s2221_s23  ;;  %s3862_s3 = sld [smem:[#allocation8 + $0x4c]]  ;;  %s2249_s11 = sld [smem:[#allocation8 + $0x50]] }
 0x2a8   : > { %v1427_v7 = vmul.f32 %v1420_v43, %v3013_v19  ;;  %v1426_v23 = vpop.permute.xlu1 %1425  ;;  %v1406_v56 = vadd.f32 %v1402_v2, %v1384_v15  ;;  %s3881_s23 = sld [smem:[#allocation8 + $0x51]] }
 0x2a9   : > { %v1430_v35 = vmul.f32 %v1426_v23, %v3013_v19  ;;  %v1437_v58 = vadd.f32 %v1433_v40, %v1415_v29  ;;  %v1535_v23 = vstv %s2216_s25  ;;  %s2247_s25 = sld [smem:[#allocation8 + $0x4e]] }
 0x2aa   : > { %v1432_v62 = vmul.f32 %v1431_v45, %v1427_v7  ;;  %v1416_v9 = vadd.f32 %v1412_v59, %v1406_v56 }
 0x2ab   : > { %v1424_v48 = vpop.permute.xlu0 %1423  ;;  %v1435_v30 = vmul.f32 %v1431_v45, %v1430_v35 }
 0x2ac   : > { %v1429_v12 = vmul.f32 %v1424_v48, %v3013_v19  ;;  %v1444_v34 = vpop.permute.xlu1 %1443  ;;  %v1436_v25 = vadd.f32 %v1432_v62, %v1414_v16 }
 0x2ad   : > { %v1450_v52 = vmul.f32 %v1444_v34, %v4080_v6  ;;  %v1439_v46 = vadd.f32 %v1435_v30, %v1417_v31 }
 0x2ae   : > { %v1434_v4 = vmul.f32 %v1431_v45, %v1429_v12  ;;  %v1497_v45 = vstv %s2213_s9  ;;  %s2242_s9 = sld [smem:[#allocation8 + $0x49]] }
 0x2af   : > { %v1442_v17 = vpop.permute.xlu0 %1441  ;;  %v1455_v1 = vmul.f32 %v1453_v51, %v1450_v52 }
 0x2b0   : > { %v1449_v54 = vmul.f32 %v1442_v17, %v4080_v6  ;;  %v1448_v5 = vpop.permute.xlu1 %1447  ;;  %v1438_v15 = vadd.f32 %v1434_v4, %v1416_v9 }
 0x2b1   : > { %v1459_v26 = vadd.f32 %v1455_v1, %v1437_v58  ;;  %v1452_v57 = vmul.f32 %v1448_v5, %v4080_v6 }
 0x2b2   : > { %v1454_v22 = vmul.f32 %v1453_v51, %v1449_v54 }
 0x2b3   : > { %v1446_v27 = vpop.permute.xlu0 %1445  ;;  %v1465_v49 = vadd.f32 %v1463_v0, %v1459_v26  ;;  %v1457_v20 = vmul.f32 %v1453_v51, %v1452_v57 }
 0x2b4   : > { %v1458_v60 = vadd.f32 %v1454_v22, %v1436_v25  ;;  %v1451_v39 = vmul.f32 %v1446_v27, %v4080_v6  ;;  %v1503_v6 = vstv %s2214_s5  ;;  %s2236_s5 = sld [smem:[#allocation8 + $0x47]] }
 0x2b5   : > { %v1469_v13 = vmax.f32 %v1465_v49, 0.0  ;;  %v1461_v10 = vadd.f32 %v1457_v20, %v1439_v46 }
 0x2b6   : > { %v1464_v61 = vadd.f32 %v1463_v0, %v1458_v60  ;;  %v1456_v33 = vmul.f32 %v1453_v51, %v1451_v39 }
 0x2b7   : > { %v1467_v14 = vadd.f32 %v1463_v0, %v1461_v10  ;;  %1474 = vrot.lane.b32.xlu1 %v1469_v13, %s2567_s7  ;;  %v1505_v8 = vmul.f32 %v1503_v6, %v1469_v13  ;;  %v1543_v11 = vmul.f32 %v1541_v38, %v1469_v13  ;;  %v1573_v2 = vmul.f32 %v1571_v32, %v1469_v13 }
 0x2b8   : > { %v1468_v53 = vmax.f32 %v1464_v61, 0.0  ;;  %v1460_v21 = vadd.f32 %v1456_v33, %v1438_v15 }
 0x2b9   : > { %v1471_v43 = vmax.f32 %v1467_v14, 0.0 }
 0x2ba   : > { %v1466_v50 = vadd.f32 %v1463_v0, %v1460_v21  ;;  %1472 = vrot.lane.b32.xlu0 %v1468_v53, %s2567_s7  ;;  %v1504_v47 = vmul.f32 %v1503_v6, %v1468_v53  ;;  %v1542_v40 = vmul.f32 %v1541_v38, %v1468_v53  ;;  %v1572_v35 = vmul.f32 %v1571_v32, %v1468_v53 }
 0x2bb   : > { %1478 = vrot.lane.b32.xlu1 %v1471_v43, %s2567_s7  ;;  %v1507_v51 = vmul.f32 %v1503_v6, %v1471_v43  ;;  %v1545_v17 = vmul.f32 %v1541_v38, %v1471_v43  ;;  %v1575_v54 = vmul.f32 %v1571_v32, %v1471_v43 }
 0x2bc   : > { %v1470_v28 = vmax.f32 %v1466_v50, 0.0 }
 0x2be   : > { %1476 = vrot.lane.b32.xlu0 %v1470_v28, %s2567_s7  ;;  %v1506_v63 = vmul.f32 %v1503_v6, %v1470_v28  ;;  %v1544_v59 = vmul.f32 %v1541_v38, %v1470_v28  ;;  %v1574_v1 = vmul.f32 %v1571_v32, %v1470_v28 }
 0x2bf   : > { %1486 = vrot.lane.b32.xlu1 %v1469_v13, %s2568_s30 }
 0x2c2   : > { %1484 = vrot.lane.b32.xlu0 %v1468_v53, %s2568_s30 }
 0x2c3   : > { %1490 = vrot.lane.b32.xlu1 %v1471_v43, %s2568_s30 }
 0x2c6   : > { %1488 = vrot.lane.b32.xlu0 %v1470_v28, %s2568_s30 }
 0x329   : > { %v1475_v7 = vpop.permute.xlu1 %1474 }
 0x32a   : > { %v1481_v41 = vmul.f32 %v1475_v7, %v2917_v44 }
 0x32c   : > { %v1473_v48 = vpop.permute.xlu0 %1472  ;;  %v1499_v62 = vmul.f32 %v1497_v45, %v1481_v41  ;;  %v1537_v12 = vmul.f32 %v1535_v23, %v1481_v41  ;;  %v1567_v29 = vmul.f32 %v1565_v37, %v1481_v41 }
 0x32d   : > { %v1480_v3 = vmul.f32 %v1473_v48, %v2917_v44  ;;  %v1479_v34 = vpop.permute.xlu1 %1478 }
 0x32e   : > { %v1483_v56 = vmul.f32 %v1479_v34, %v2917_v44  ;;  %v1509_v25 = vadd.f32 %v1505_v8, %v1499_v62  ;;  %v1547_v4 = vadd.f32 %v1543_v11, %v1537_v12  ;;  %v1577_v31 = vadd.f32 %v1573_v2, %v1567_v29 }
 0x32f   : > { %v1498_v52 = vmul.f32 %v1497_v45, %v1480_v3  ;;  %v1536_v24 = vmul.f32 %v1535_v23, %v1480_v3  ;;  %v1566_v36 = vmul.f32 %v1565_v37, %v1480_v3 }
 0x330   : > { %v1477_v16 = vpop.permute.xlu0 %1476  ;;  %v1501_v30 = vmul.f32 %v1497_v45, %v1483_v56  ;;  %v1539_v0 = vmul.f32 %v1535_v23, %v1483_v56  ;;  %v1569_v22 = vmul.f32 %v1565_v37, %v1483_v56 }
 0x331   : > { %v1482_v58 = vmul.f32 %v1477_v16, %v2917_v44  ;;  %v1487_v5 = vpop.permute.xlu1 %1486  ;;  %v1508_v26 = vadd.f32 %v1504_v47, %v1498_v52  ;;  %v1546_v60 = vadd.f32 %v1542_v40, %v1536_v24  ;;  %v1576_v39 = vadd.f32 %v1572_v35, %v1566_v36  ;;  %v4087_v16 = vld [vmem:[#allocation36_spill] sm:$0xff] }
 0x332   : > { %v1493_v27 = vmul.f32 %v1487_v5, %v3013_v19  ;;  %v1511_v20 = vadd.f32 %v1507_v51, %v1501_v30  ;;  %v1549_v13 = vadd.f32 %v1545_v17, %v1539_v0  ;;  %v1579_v10 = vadd.f32 %v1575_v54, %v1569_v22 }
 0x333   : > { %v1500_v57 = vmul.f32 %v1497_v45, %v1482_v58  ;;  %v1568_v46 = vmul.f32 %v1565_v37, %v1482_v58  ;;  %v1538_v15 = vmul.f32 %v1535_v23, %v1482_v58 }
 0x334   : > { %v1485_v9 = vpop.permute.xlu0 %1484  ;;  %v1515_v61 = vmul.f32 %v1513_v42, %v1493_v27  ;;  %v1583_v33 = vmul.f32 %v1581_v55, %v1493_v27  ;;  %v1553_v23 = vmul.f32 %v3796_v18, %v1493_v27 }
 0x335   : > { %v1492_v49 = vmul.f32 %v1485_v9, %v3013_v19  ;;  %v1491_v14 = vpop.permute.xlu1 %1490  ;;  %v1510_v50 = vadd.f32 %v1506_v63, %v1500_v57  ;;  %v1578_v32 = vadd.f32 %v1574_v1, %v1568_v46  ;;  %v1548_v54 = vadd.f32 %v1544_v59, %v1538_v15  ;;  %v4090_v57 = vld [vmem:[#allocation40_spill] sm:$0xff] }
 0x336   : > { %v1519_v43 = vadd.f32 %v1515_v61, %v1509_v25  ;;  %v1587_v28 = vadd.f32 %v1583_v33, %v1577_v31  ;;  %v1495_v6 = vmul.f32 %v1491_v14, %v3013_v19  ;;  %v1557_v56 = vadd.f32 %v1553_v23, %v1547_v4  ;;  %v4088_v4 = vld [vmem:[#allocation37_spill] sm:$0xff]  ;;  %v4089_v31 = vld [vmem:[#allocation39_spill] sm:$0xff] }
 0x337   : > { %v1514_v53 = vmul.f32 %v1513_v42, %v1492_v49  ;;  %v1582_v21 = vmul.f32 %v1581_v55, %v1492_v49  ;;  %v1552_v40 = vmul.f32 %v3796_v18, %v1492_v49 }
 0x338   : > { %v1489_v38 = vpop.permute.xlu0 %1488  ;;  %v1523_v41 = vrot.slane %v1519_v43, 7  ;;  %v1591_v8 = vrot.slane %v1587_v28, 1  ;;  %v1517_v48 = vmul.f32 %v1513_v42, %v1495_v6  ;;  %v1585_v47 = vmul.f32 %v1581_v55, %v1495_v6 }
 0x339   : > { %v1518_v45 = vadd.f32 %v1514_v53, %v1508_v26  ;;  %v1586_v7 = vadd.f32 %v1582_v21, %v1576_v39  ;;  %v1494_v37 = vmul.f32 %v1489_v38, %v3013_v19  ;;  %v1555_v62 = vmul.f32 %v3796_v18, %v1495_v6  ;;  %v4091_v39 = vld [vmem:[#allocation38_spill] sm:$0xff]  ;;  %v4093_v21 = vld [vmem:[#allocation41_spill] sm:$0xff] }
 0x33a   : > { %v1521_v35 = vadd.f32 %v1517_v48, %v1511_v20  ;;  %v1589_v52 = vadd.f32 %v1585_v47, %v1579_v10  ;;  %v1556_v63 = vadd.f32 %v1552_v40, %v1546_v60  ;;  %v4092_v20 = vld [vmem:[#allocation42_spill] sm:$0xff]  ;;  %v1607_v28 = vstv %s3812_s8  ;;  %s344_s8 = scalar_lea.vmem [#allocation9], %s2128_s27 }
 0x33b   : > { %v1522_v11 = vrot.slane %v1518_v45, 7  ;;  %v1590_v2 = vrot.slane %v1586_v7, 1  ;;  %v1516_v3 = vmul.f32 %v1513_v42, %v1494_v37  ;;  %v1584_v12 = vmul.f32 %v1581_v55, %v1494_v37 }
 0x33c   : > { %v1525_v36 = vrot.slane %v1521_v35, 7  ;;  %v1554_v42 = vmul.f32 %v3796_v18, %v1494_v37  ;;  %v1593_v58 = vrot.slane %v1589_v52, 1  ;;  %v1559_v0 = vadd.f32 %v1555_v62, %v1549_v13 }
 0x33d   : > { %v1528_v34 = vsel %vm528_vm2, %v1522_v11, %v1523_v41  ;;  %v1596_v29 = vsel %vm681_vm5, %v1590_v2, %v1591_v8  ;;  %v1520_v17 = vadd.f32 %v1516_v3, %v1510_v50  ;;  %v1588_v55 = vadd.f32 %v1584_v12, %v1578_v32  ;;  %v4094_v50 = vld [vmem:[#allocation44_spill] sm:$0xff] }
 0x33e   : > { %v1531_v24 = vmul.f32 %v4087_v16, %v1528_v34  ;;  %v1529_v25 = vsel %vm528_vm2, %v1525_v36, %v1522_v11  ;;  %v1597_v5 = vsel %vm681_vm5, %v1593_v58, %v1590_v2  ;;  %v1558_v9 = vadd.f32 %v1554_v42, %v1548_v54 }
 0x33f   : > { %v1524_v30 = vrot.slane %v1520_v17, 7  ;;  %v1530_v22 = vmul.f32 %v4088_v4, %v1529_v25  ;;  %v1592_v60 = vrot.slane %v1588_v55, 1  ;;  %v1598_v46 = vmul.f32 %v4091_v39, %v1596_v29 }
 0x340   : > { %v1561_v1 = vadd.f32 %v1557_v56, %v1531_v24  ;;  %v1601_v15 = vmul.f32 %v4092_v20, %v1597_v5  ;;  %v1625_v7 = vstv %s2223_s0  ;;  %v1631_v37 = vstv %s2224_s12  ;;  %s1942_s0 = scalar_lea.sflag [#allocation4], %s2782_s10 }
 0x341   : > { %v1526_v18 = vsel %vm528_vm2, %v1524_v30, %v1525_v36  ;;  %v1527_v59 = vsel %vm528_vm2, %v1523_v41, %v1524_v30  ;;  %v1560_v49 = vadd.f32 %v1556_v63, %v1530_v22  ;;  %v1594_v13 = vsel %vm681_vm5, %v1592_v60, %v1593_v58 }
 0x342   : > { %v1532_v26 = vmul.f32 %v4089_v31, %v1527_v59  ;;  %v1533_v27 = vmul.f32 %v4090_v57, %v1526_v18  ;;  %v1595_v10 = vsel %vm681_vm5, %v1591_v8, %v1592_v60  ;;  %v1600_v43 = vmul.f32 %v4094_v50, %v1594_v13 }
 0x343   : > { %v1602_v53 = vadd.f32 %v1598_v46, %v1560_v49  ;;  %v1599_v14 = vmul.f32 %v4093_v21, %v1595_v10  ;;  %v1693_v48 = vstv %s2229_s24  ;;  %v1699_v47 = vstv %s2230_s29 }
 0x344   : > { %v1562_v61 = vadd.f32 %v1558_v9, %v1532_v26  ;;  %v1563_v33 = vadd.f32 %v1559_v0, %v1533_v27  ;;  %v1761_v8 = vstv %s3820_s13  ;;  %v1767_v3 = vstv %s2236_s5 }
 0x345   : > { %v1608_v38 = vadd.f32 %v1607_v28, %v1602_v53  ;;  %v1603_v32 = vadd.f32 %v1599_v14, %v1561_v1 }
 0x346   : > { %v1605_v6 = vadd.f32 %v1601_v15, %v1563_v33  ;;  %v1604_v45 = vadd.f32 %v1600_v43, %v1562_v61 }
 0x347   : > { %v1612_v23 = vmax.f32 %v1608_v38, 0.0  ;;  %v1609_v11 = vadd.f32 %v1607_v28, %v1603_v32 }
 0x348   : > { %v1611_v41 = vadd.f32 %v1607_v28, %v1605_v6  ;;  %v1610_v2 = vadd.f32 %v1607_v28, %v1604_v45 }
 0x349   : > { %v1626_v35 = vmul.f32 %v1625_v7, %v1612_v23  ;;  %v1694_v62 = vmul.f32 %v1693_v48, %v1612_v23  ;;  %v1613_v12 = vmax.f32 %v1609_v11, 0.0  ;;  %v1762_v56 = vmul.f32 %v1761_v8, %v1612_v23 }
 0x34a   : > { %v1615_v40 = vmax.f32 %v1611_v41, 0.0  ;;  %v1614_v34 = vmax.f32 %v1610_v2, 0.0 }
 0x34b   : > { %v1632_v24 = vadd.f32 %v1631_v37, %v1626_v35  ;;  %v1627_v36 = vmul.f32 %v1625_v7, %v1613_v12  ;;  %v1695_v54 = vmul.f32 %v1693_v48, %v1613_v12  ;;  %v1763_v63 = vmul.f32 %v1761_v8, %v1613_v12 }
 0x34c   : > { %v1629_v29 = vmul.f32 %v1625_v7, %v1615_v40  ;;  %v1697_v52 = vmul.f32 %v1693_v48, %v1615_v40  ;;  %v1765_v17 = vmul.f32 %v1761_v8, %v1615_v40  ;;  %v1628_v42 = vmul.f32 %v1625_v7, %v1614_v34 }
 0x34d   : > { %v1696_v30 = vmul.f32 %v1693_v48, %v1614_v34  ;;  %v2225_v1 = vclamps-f32 %v1632_v24, 60.0  ;;  %v1633_v25 = vadd.f32 %v1631_v37, %v1627_v36  ;;  %v1701_v4 = vadd.f32 %v1699_v47, %v1695_v54 }
 0x34e   : > { %v1635_v58 = vadd.f32 %v1631_v37, %v1629_v29  ;;  %v1703_v55 = vadd.f32 %v1699_v47, %v1697_v52  ;;  %v1634_v0 = vadd.f32 %v1631_v37, %v1628_v42  ;;  %v1764_v59 = vmul.f32 %v1761_v8, %v1614_v34 }
 0x34f   : > { %v1702_v5 = vadd.f32 %v1699_v47, %v1696_v30  ;;  %v1644_v26 = vsub.f32 0.0, %v2225_v1  ;;  %v2226_v57 = vclamps-f32 %v1633_v25, 60.0  ;;  %v2232_v9 = vclamps-f32 %v1701_v4, 60.0 }
 0x350   : > { %v2228_v22 = vclamps-f32 %v1635_v58, 60.0  ;;  %v2234_v18 = vclamps-f32 %v1703_v55, 60.0  ;;  %v2227_v27 = vclamps-f32 %v1634_v0, 60.0  ;;  %v1769_v46 = vadd.f32 %v1767_v3, %v1763_v63 }
 0x351   : > { %v2233_v39 = vclamps-f32 %v1702_v5, 60.0  ;;  %v1770_v49 = vadd.f32 %v1767_v3, %v1764_v59  ;;  %v1648_v20 = vmul.f32 1.442695, %v1644_v26  ;;  %v1645_v15 = vsub.f32 0.0, %v2226_v57  ;;  %v4095_v26 = vld [vmem:[#allocation35_spill] sm:$0xff] }
 0x352   : > { %v1647_v60 = vsub.f32 0.0, %v2228_v22  ;;  %v1646_v61 = vsub.f32 0.0, %v2227_v27  ;;  %v1713_v33 = vsub.f32 0.0, %v2232_v9  ;;  %v2238_v53 = vclamps-f32 %v1769_v46, 60.0  ;;  %v4096_v9 = vld [vmem:[#allocation45_spill] sm:$0xff] }
 0x353   : > { %v1714_v10 = vsub.f32 0.0, %v2233_v39  ;;  %v2239_v14 = vclamps-f32 %v1770_v49, 60.0  ;;  %v1650_v43 = vmul.f32 1.442695, %v1645_v15  ;;  %2399 = vpow2.f32 %v1648_v20  ;;  %v4097_v20 = vld [vmem:[#allocation46_spill] sm:$0xff] }
 0x354   : > { %v1654_v13 = vmul.f32 1.442695, %v1647_v60  ;;  %v1652_v28 = vmul.f32 1.442695, %v1646_v61  ;;  %v1718_v6 = vmul.f32 1.442695, %v1713_v33  ;;  %v1700_v7 = vadd.f32 %v1699_v47, %v1694_v62 }
 0x355   : > { %v1720_v38 = vmul.f32 1.442695, %v1714_v10  ;;  %v1781_v32 = vsub.f32 0.0, %v2238_v53  ;;  %v1782_v45 = vsub.f32 0.0, %v2239_v14  ;;  %v1768_v37 = vadd.f32 %v1767_v3, %v1762_v56 }
 0x356   : > { %2401 = vpow2.f32 %v1654_v13  ;;  %v1715_v41 = vsub.f32 0.0, %v2234_v18  ;;  %v1771_v11 = vadd.f32 %v1767_v3, %v1765_v17  ;;  %v2231_v2 = vclamps-f32 %v1700_v7, 60.0  ;;  %v4098_v13 = vld [vmem:[#allocation43_spill] sm:$0xff] }
 0x357   : > { %2403 = vpow2.f32 %v1650_v43  ;;  %v1786_v23 = vmul.f32 1.442695, %v1781_v32  ;;  %v1788_v48 = vmul.f32 1.442695, %v1782_v45  ;;  %v2237_v8 = vclamps-f32 %v1768_v37, 60.0 }
 0x358   : > { %2405 = vpow2.f32 %v1652_v28  ;;  %v1722_v40 = vmul.f32 1.442695, %v1715_v41  ;;  %v2240_v35 = vclamps-f32 %v1771_v11, 60.0  ;;  %v1712_v12 = vsub.f32 0.0, %v2231_v2 }
 0x359   : > { %2407 = vpow2.f32 %v1718_v6  ;;  %v1780_v34 = vsub.f32 0.0, %v2237_v8  ;;  %v1617_v57 = vmax.f32 %v4095_v26, 0.0  ;;  %v1616_v60 = vmax.f32 %v4096_v9, 0.0 }
 0x35a   : > { %2409 = vpow2.f32 %v1720_v38  ;;  %v1783_v29 = vsub.f32 0.0, %v2240_v35  ;;  %v1716_v52 = vmul.f32 1.442695, %v1712_v12  ;;  %v1619_v15 = vmax.f32 %v4097_v20, 0.0 }
 0x35b   : > { %2411 = vpow2.f32 %v1788_v48  ;;  %v1784_v24 = vmul.f32 1.442695, %v1780_v34  ;;  %v1618_v10 = vmax.f32 %v4098_v13, 0.0  ;;  %v1621_v14 = vmin.f32 %v1617_v57, 1.0 }
 0x35c   : > { %2413 = vpow2.f32 %v1786_v23  ;;  %v1790_v47 = vmul.f32 1.442695, %v1783_v29  ;;  %v1620_v6 = vmin.f32 %v1616_v60, 1.0  ;;  %v1623_v37 = vmin.f32 %v1619_v15, 1.0 }
 0x35d   : > { %2415 = vpow2.f32 %v1722_v40  ;;  %v2400_v62 = vpop.eup %2399  ;;  %v1622_v11 = vmin.f32 %v1618_v10, 1.0  ;;  %v1681_v40 = vsub.f32 1.0, %v1621_v14 }
 0x35e   : > { %2417 = vpow2.f32 %v1716_v52  ;;  %v1656_v36 = vadd.f32 1.0, %v2400_v62  ;;  %v1680_v52 = vsub.f32 1.0, %v1620_v6 }
 0x35f   : > { %2419 = vpow2.f32 %v1784_v24 }
 0x360   : > { %v2402_v56 = vpop.eup %2401  ;;  %2421 = vpow2.f32 %v1790_v47 }
 0x361   : > { %v2404_v3 = vpop.eup %2403  ;;  %v1659_v17 = vadd.f32 1.0, %v2402_v56  ;;  %2423 = vrcp.f32 %v1656_v36 }
 0x362   : > { %v2406_v42 = vpop.eup %2405  ;;  %v1657_v54 = vadd.f32 1.0, %v2404_v3 }
 0x363   : > { %v2408_v58 = vpop.eup %2407  ;;  %v1658_v30 = vadd.f32 1.0, %v2406_v42  ;;  %2425 = vrcp.f32 %v1659_v17 }
 0x364   : > { %v2410_v55 = vpop.eup %2409  ;;  %2427 = vrcp.f32 %v1657_v54  ;;  %v1725_v63 = vadd.f32 1.0, %v2408_v58 }
 0x365   : > { %v2412_v1 = vpop.eup %2411  ;;  %2429 = vrcp.f32 %v1658_v30  ;;  %v1726_v25 = vadd.f32 1.0, %v2410_v55  ;;  %v1682_v55 = vsub.f32 1.0, %v1622_v11 }
 0x366   : > { %v2414_v0 = vpop.eup %2413  ;;  %2431 = vrcp.f32 %v1725_v63  ;;  %v3838_v4 = vadd.f32 1.0, %v2412_v1 }
 0x367   : > { %v2416_v22 = vpop.eup %2415  ;;  %2433 = vrcp.f32 %v1726_v25  ;;  %v1793_v5 = vadd.f32 1.0, %v2414_v0 }
 0x368   : > { %v1727_v18 = vadd.f32 1.0, %v2416_v22  ;;  %2435 = vrcp.f32 %v3838_v4  ;;  %v2418_v59 = vpop.eup %2417 }
 0x369   : > { %2437 = vrcp.f32 %v1793_v5  ;;  %v2420_v27 = vpop.eup %2419  ;;  %v1724_v39 = vadd.f32 1.0, %v2418_v59 }
 0x36a   : > { %2439 = vrcp.f32 %v1727_v18  ;;  %v2422_v46 = vpop.eup %2421  ;;  %v1792_v49 = vadd.f32 1.0, %v2420_v27 }
 0x36b   : > { %v2424_v61 = vpop.eup %2423  ;;  %2441 = vrcp.f32 %v1724_v39  ;;  %v3844_v33 = vadd.f32 1.0, %v2422_v46 }
 0x36c   : > { %v1664_v43 = vmul.f32 %v2424_v61, %v1656_v36  ;;  %2443 = vrcp.f32 %v1792_v49 }
 0x36d   : > { %v2426_v53 = vpop.eup %2425  ;;  %2445 = vrcp.f32 %v3844_v33 }
 0x36e   : > { %v2428_v28 = vpop.eup %2427  ;;  %v1667_v38 = vmul.f32 %v2426_v53, %v1659_v17  ;;  %v1668_v7 = vsub.f32 2.0, %v1664_v43  ;;  %v1683_v17 = vsub.f32 1.0, %v1623_v37 }
 0x36f   : > { %v2430_v32 = vpop.eup %2429  ;;  %v1665_v45 = vmul.f32 %v2428_v28, %v1657_v54 }
 0x370   : > { %v2432_v41 = vpop.eup %2431  ;;  %v1666_v23 = vmul.f32 %v2430_v32, %v1658_v30  ;;  %v1671_v48 = vsub.f32 2.0, %v1667_v38  ;;  %v1672_v12 = vmul.f32 %v2424_v61, %v1668_v7 }
 0x371   : > { %v2434_v2 = vpop.eup %2433  ;;  %v1669_v8 = vsub.f32 2.0, %v1665_v45  ;;  %v1733_v35 = vmul.f32 %v2432_v41, %v1725_v63 }
 0x372   : > { %v2436_v34 = vpop.eup %2435  ;;  %v1670_v29 = vsub.f32 2.0, %v1666_v23  ;;  %v1675_v24 = vmul.f32 %v2426_v53, %v1671_v48  ;;  %v1734_v47 = vmul.f32 %v2434_v2, %v1726_v25  ;;  %v1676_v3 = vmul.f32 %v1672_v12, %v1620_v6 }
 0x373   : > { %v2438_v62 = vpop.eup %2437  ;;  %v1673_v56 = vmul.f32 %v2428_v28, %v1669_v8  ;;  %v1737_v36 = vsub.f32 2.0, %v1733_v35  ;;  %v1802_v25 = vmul.f32 %v2436_v34, %v3838_v4 }
 0x374   : > { %v2440_v42 = vpop.eup %2439  ;;  %v1801_v54 = vmul.f32 %v2438_v62, %v1793_v5  ;;  %v1679_v58 = vmul.f32 %v1675_v24, %v1623_v37  ;;  %v1674_v30 = vmul.f32 %v2430_v32, %v1670_v29  ;;  %v1684_v0 = vmul.f32 %v1680_v52, %v1676_v3 }
 0x375   : > { %v1677_v1 = vmul.f32 %v1673_v56, %v1621_v14  ;;  %v1735_v22 = vmul.f32 %v2440_v42, %v1727_v18  ;;  %v1738_v63 = vsub.f32 2.0, %v1734_v47  ;;  %v2442_v59 = vpop.eup %2441  ;;  %v1741_v26 = vmul.f32 %v2432_v41, %v1737_v36 }
 0x376   : > { %v1687_v57 = vmul.f32 %v1683_v17, %v1679_v58  ;;  %v1678_v27 = vmul.f32 %v1674_v30, %v1622_v11  ;;  %v2444_v9 = vpop.eup %2443  ;;  %v1688_v46 = vadd.f32 %v1684_v0, %v1620_v6  ;;  %v1732_v20 = vmul.f32 %v2442_v59, %v1724_v39 }
 0x377   : > { %v1685_v60 = vmul.f32 %v1681_v40, %v1677_v1  ;;  %v1739_v15 = vsub.f32 2.0, %v1735_v22  ;;  %v2446_v61 = vpop.eup %2445  ;;  %v1805_v5 = vsub.f32 2.0, %v1801_v54  ;;  %v1800_v13 = vmul.f32 %v2444_v9, %v1792_v49 }
 0x378   : > { %v1691_v10 = vadd.f32 %v1687_v57, %v1623_v37  ;;  %v1686_v53 = vmul.f32 %v1682_v55, %v1678_v27  ;;  %v1736_v28 = vsub.f32 2.0, %v1732_v20  ;;  %v1742_v38 = vmul.f32 %v2434_v2, %v1738_v63 }
 0x379   : > { %v1689_v43 = vadd.f32 %v1685_v60, %v1621_v14  ;;  %v1743_v18 = vmul.f32 %v2440_v42, %v1739_v15  ;;  %v1748_v32 = vsub.f32 1.0, %v1688_v46  ;;  %v1803_v7 = vmul.f32 %v2446_v61, %v3844_v33 }
 0x37a   : > { %v1751_v45 = vsub.f32 1.0, %v1691_v10  ;;  %v1690_v41 = vadd.f32 %v1686_v53, %v1622_v11  ;;  %v1740_v48 = vmul.f32 %v2442_v59, %v1736_v28  ;;  %v1804_v39 = vsub.f32 2.0, %v1800_v13 }
 0x37b   : > { %v1745_v4 = vmul.f32 %v1741_v26, %v1689_v43  ;;  %v1749_v23 = vsub.f32 1.0, %v1689_v43  ;;  %v1747_v6 = vmul.f32 %v1743_v18, %v1691_v10  ;;  %v1807_v8 = vsub.f32 2.0, %v1803_v7 }
 0x37c   : > { %v1746_v40 = vmul.f32 %v1742_v38, %v1690_v41  ;;  %v1750_v35 = vsub.f32 1.0, %v1690_v41  ;;  %v1744_v37 = vmul.f32 %v1740_v48, %v1688_v46  ;;  %v1806_v14 = vsub.f32 2.0, %v1802_v25 }
 0x37d   : > { %v1753_v49 = vmul.f32 %v1749_v23, %v1745_v4  ;;  %v1755_v12 = vmul.f32 %v1751_v45, %v1747_v6  ;;  %v1809_v29 = vmul.f32 %v2438_v62, %v1805_v5  ;;  %v1811_v56 = vmul.f32 %v2446_v61, %v1807_v8 }
 0x37e   : > { %v1754_v52 = vmul.f32 %v1750_v35, %v1746_v40  ;;  %v1752_v24 = vmul.f32 %v1748_v32, %v1744_v37  ;;  %v1808_v33 = vmul.f32 %v2444_v9, %v1804_v39  ;;  %v1810_v36 = vmul.f32 %v2436_v34, %v1806_v14 }
 0x37f   : > { %v1757_v2 = vadd.f32 %v1753_v49, %v1689_v43  ;;  %v1759_v47 = vadd.f32 %v1755_v12, %v1691_v10  ;;  %v1885_v15 = vstv %s3862_s3  ;;  %v1858_v61 = vstv %s2242_s9 }
 0x380   : > { %v1758_v11 = vadd.f32 %v1754_v52, %v1690_v41  ;;  %v1756_v42 = vadd.f32 %v1752_v24, %v1688_v46  ;;  %v1853_v46 = vstv %s2241_s26  ;;  %v1899_v53 = vstv %s2247_s25 }
 0x381   : > { %v1813_v3 = vmul.f32 %v1809_v29, %v1757_v2  ;;  %v1817_v17 = vsub.f32 1.0, %v1757_v2  ;;  %v1815_v54 = vmul.f32 %v1811_v56, %v1759_v47  ;;  %v1819_v58 = vsub.f32 1.0, %v1759_v47 }
 0x382   : > { %v1814_v30 = vmul.f32 %v1810_v36, %v1758_v11  ;;  %v1818_v55 = vsub.f32 1.0, %v1758_v11  ;;  %v1812_v0 = vmul.f32 %v1808_v33, %v1756_v42  ;;  %v1816_v22 = vsub.f32 1.0, %v1756_v42 }
 0x383   : > { %v1821_v1 = vmul.f32 %v1817_v17, %v1813_v3  ;;  %v1823_v63 = vmul.f32 %v1819_v58, %v1815_v54  ;;  %v1904_v43 = vstv %s2248_s6  ;;  %v1881_v18 = vstv %s3864_s22 }
 0x384   : > { %v1822_v62 = vmul.f32 %v1818_v55, %v1814_v30  ;;  %v1820_v26 = vmul.f32 %v1816_v22, %v1812_v0  ;;  %v1912_v23 = vstv %s2249_s11 }
 0x385   : > { %v1825_v59 = vadd.f32 %v1821_v1, %v1757_v2  ;;  %v1827_v57 = vadd.f32 %v1823_v63, %v1759_v47 }
 0x386   : > { %v3850_v27 = vadd.f32 %v1822_v62, %v1758_v11  ;;  %v1824_v34 = vadd.f32 %v1820_v26, %v1756_v42 }
 0x387   : > { %1830 = vrot.lane.b32.xlu1 %v1825_v59, %s2567_s7  ;;  %v1886_v38 = vmul.f32 %v1885_v15, %v1825_v59  ;;  %v1860_v7 = vmul.f32 %v1858_v61, %v1825_v59  ;;  %v1905_v39 = vmul.f32 %v1904_v43, %v1825_v59  ;;  %v1907_v8 = vmul.f32 %v1904_v43, %v1827_v57 }
 0x388   : > { %1828 = vrot.lane.b32.xlu0 %v1824_v34, %s2567_s7  ;;  %v1859_v35 = vmul.f32 %v1858_v61, %v1824_v34  ;;  %v1861_v12 = vmul.f32 %v1858_v61, %v3850_v27  ;;  %v1906_v58 = vmul.f32 %v1904_v43, %v3850_v27 }
 0x38b   : > { %1834 = vrot.lane.b32.xlu1 %v1827_v57, %s2567_s7 }
 0x38c   : > { %1832 = vrot.lane.b32.xlu0 %v3850_v27, %s2567_s7  ;;  %s2243_s7 = sld [smem:[#allocation8 + $0x4a]] }
 0x38f   : > { %1842 = vrot.lane.b32.xlu1 %v1825_v59, %s2568_s30 }
 0x390   : > { %1840 = vrot.lane.b32.xlu0 %v1824_v34, %s2568_s30 }
 0x392   : > { %v1866_v4 = vstv %s2243_s7 }
 0x393   : > { %1846 = vrot.lane.b32.xlu1 %v1827_v57, %s2568_s30 }
 0x394   : > { %1844 = vrot.lane.b32.xlu0 %v3850_v27, %s2568_s30  ;;  %s3868_s30 = sld [smem:[#allocation8 + $0x4d]] }
 0x39a   : > { %v1891_v56 = vstv %s3868_s30 }
 0x3f9   : > { %v1831_v25 = vpop.permute.xlu1 %1830 }
 0x3fa   : > { %v1829_v9 = vpop.permute.xlu0 %1828  ;;  %v1837_v60 = vmul.f32 %v1831_v25, %v2917_v44 }
 0x3fb   : > { %v1836_v5 = vmul.f32 %v1829_v9, %v2917_v44 }
 0x3fc   : > { %v1855_v10 = vmul.f32 %v1853_v46, %v1837_v60  ;;  %v1900_v6 = vmul.f32 %v1899_v53, %v1837_v60  ;;  %v1882_v24 = vmul.f32 %v1881_v18, %v1837_v60 }
 0x3fd   : > { %v1835_v20 = vpop.permute.xlu1 %1834  ;;  %v1854_v48 = vmul.f32 %v1853_v46, %v1836_v5 }
 0x3fe   : > { %v1833_v13 = vpop.permute.xlu0 %1832  ;;  %v1839_v28 = vmul.f32 %v1835_v20, %v2917_v44  ;;  %v1863_v49 = vadd.f32 %v1860_v7, %v1855_v10  ;;  %v1908_v36 = vadd.f32 %v1905_v39, %v1900_v6  ;;  %v1888_v34 = vadd.f32 %v1886_v38, %v1882_v24 }
 0x3ff   : > { %v1838_v32 = vmul.f32 %v1833_v13, %v2917_v44  ;;  %v1862_v11 = vadd.f32 %v1859_v35, %v1854_v48  ;;  %v2447_v35 = vld [vmem:[%s2788_s28 + $0x8] sm:$0xff] }
 0x400   : > { %v1902_v37 = vmul.f32 %v1899_v53, %v1839_v28 }
 0x401   : > { %v1843_v45 = vpop.permute.xlu1 %1842  ;;  %v1856_v14 = vmul.f32 %v1853_v46, %v1838_v32  ;;  %v1901_v47 = vmul.f32 %v1899_v53, %v1838_v32  ;;  %v1883_v25 = vmul.f32 %v1881_v18, %v1838_v32  ;;  %v1887_v46 = vmul.f32 %v1885_v15, %v3850_v27 }
 0x402   : > { %v1849_v41 = vmul.f32 %v1843_v45, %v3013_v19  ;;  %v1841_v40 = vpop.permute.xlu0 %1840  ;;  %v1910_v54 = vadd.f32 %v1907_v8, %v1902_v37 }
 0x403   : > { %v1848_v44 = vmul.f32 %v1841_v40, %v3013_v19  ;;  %v1864_v1 = vadd.f32 %v1861_v12, %v1856_v14  ;;  %v1909_v62 = vadd.f32 %v1906_v58, %v1901_v47  ;;  %v1889_v18 = vadd.f32 %v1887_v46, %v1883_v25  ;;  %v2449_v12 = vld [vmem:[%s2795_s20] sm:$0xff] }
 0x404   : > { %v1868_v29 = vmul.f32 %v1866_v4, %v1849_v41  ;;  %v1913_v52 = vmul.f32 %v1912_v23, %v1849_v41  ;;  %v1892_v0 = vmul.f32 %v1891_v56, %v1849_v41 }
 0x405   : > { %v1847_v2 = vpop.permute.xlu1 %1846  ;;  %v1867_v3 = vmul.f32 %v1866_v4, %v1848_v44 }
 0x406   : > { %v1851_v33 = vmul.f32 %v1847_v2, %v3013_v19  ;;  %v1871_v17 = vadd.f32 %v1868_v29, %v1863_v49  ;;  %v1845_v42 = vpop.permute.xlu0 %1844  ;;  %v1916_v63 = vadd.f32 %v1913_v52, %v1908_v36  ;;  %v1894_v5 = vadd.f32 %v1892_v0, %v1888_v34  ;;  %v2448_v49 = vld [vmem:[%s2788_s28 + $0x18] sm:$0xff] }
 0x407   : > { %v1850_v55 = vmul.f32 %v1845_v42, %v3013_v19  ;;  %v1870_v22 = vadd.f32 %v1867_v3, %v1862_v11 }
 0x408   : > { %v1915_v30 = vmul.f32 %v1912_v23, %v1851_v33  ;;  %v1874_v60 = vrot.slane %v1871_v17, 7  ;;  %v1919_v13 = vrot.slane %v1916_v63, 1 }
 0x409   : > { %v1869_v26 = vmul.f32 %v1866_v4, %v1850_v55  ;;  %v1914_v57 = vmul.f32 %v1912_v23, %v1850_v55  ;;  %v1873_v9 = vrot.slane %v1870_v22, 7  ;;  %v1893_v10 = vmul.f32 %v1891_v56, %v1850_v55 }
 0x40a   : > { %v1918_v59 = vadd.f32 %v1915_v30, %v1910_v54  ;;  %v1929_v4 = vstv %s3881_s23 }
 0x40b   : > { %v1872_v20 = vadd.f32 %v1869_v26, %v1864_v1  ;;  %v1917_v61 = vadd.f32 %v1914_v57, %v1909_v62  ;;  %v1877_v19 = vsel %vm528_vm2, %v1873_v9, %v1874_v60 }
 0x40c   : > { %v1878_v53 = vmul.f32 %v4087_v16, %v1877_v19  ;;  %v1921_v43 = vrot.slane %v1918_v59, 1  ;;  %v1895_v16 = vadd.f32 %v1893_v10, %v1889_v18 }
 0x40d   : > { %v1875_v28 = vrot.slane %v1872_v20, 7  ;;  %v1920_v45 = vrot.slane %v1917_v61, 1 }
 0x40e   : > { %v1896_v38 = vadd.f32 %v1894_v5, %v1878_v53 }
 0x40f   : > { %v1876_v27 = vsel %vm528_vm2, %v1874_v60, %v1875_v28  ;;  %v1922_v15 = vsel %vm681_vm5, %v1920_v45, %v1921_v43  ;;  %v1923_v32 = vsel %vm681_vm5, %v1919_v13, %v1920_v45 }
 0x410   : > { %v1879_v7 = vmul.f32 %v4089_v31, %v1876_v27  ;;  %v1924_v41 = vmul.f32 %v4093_v21, %v1923_v32  ;;  %v1925_v48 = vmul.f32 %v4094_v50, %v1922_v15  ;;  %v2450_v21 = vld [vmem:[%s2795_s20 + $0x10] sm:$0xff] }
 0x412   : > { %v1897_v23 = vadd.f32 %v1895_v16, %v1879_v7  ;;  %v1926_v6 = vadd.f32 %v1924_v41, %v1896_v38 }
 0x414   : > { %v1927_v39 = vadd.f32 %v1925_v48, %v1897_v23  ;;  %v1930_v8 = vadd.f32 %v1929_v4, %v1926_v6 }
 0x416   : > { %v1931_v40 = vadd.f32 %v1929_v4, %v1927_v39  ;;  %v1932_v51 = vadd.f32 %v2447_v35, %v1930_v8  ;;  %v1936_v37 = vadd.f32 %v2448_v49, %v1930_v8 }
 0x418   : > { %v1933_v31 = vadd.f32 %v2449_v12, %v1931_v40  ;;  %1934 = vst [vmem:[%s344_s8] sm:$0xff] %v1932_v51  ;;  %v1937_v14 = vadd.f32 %v2450_v21, %v1931_v40  ;;  %2251 = vst [vmem:[%s344_s8 + $0x10] sm:$0xff] %v1936_v37 }
 0x41a   : > { %1935 = vst [vmem:[%s344_s8 + $0x8] sm:$0xff] %v1933_v31  ;;  %2252 = vst [vmem:[%s344_s8 + $0x18] sm:$0xff] %v1937_v14 }
 0x41b   : > { %s2260_s28 = sshll.u32 %s2544_s21, 8  ;;  %s1973_s12 = sshll.u32 %s344_s8, 4  ;;  %s1974_s12 = int_to_ptr.vmem [resolvable:$true] %s1973_s12 }
 0x41c   : > { %s1956_s27 = scalar_lea.hbm %s3958_s4, %s2260_s28  ;;  %s2572_s20 = smov 256  }
 0x41d   : > { %p4099_p5 = scmp.ne.s32.totalorder %s4020_s14, 0  ;;  %s2573_s29 = smov 512  }
 0x41e   : > { %s2574_s10 = smov 2   ;;  %s2575_s5 = smov 128  }
 0x41f   : > { %2283 = sst [smem:[#allocation15]] (%p4099_p5), %s2572_s20  ;;  %s2576_s21 = smov 8  }
 0x420   : > { %2284 = sst [smem:[#allocation15 + $0x1]] (%p4099_p5), %s2573_s29  ;;  %s2577_s26 = smov [#allocation14]  }
 0x421   : > { %2285 = sst [smem:[#allocation15 + $0x2]] (%p4099_p5), %s2574_s10  ;;  %s2578_s3 = smov 0  }
 0x422   : > { %2286 = sst [smem:[#allocation15 + $0x3]] (%p4099_p5), %s2575_s5 }
 0x423   : > { %2287 = sst [smem:[#allocation15 + $0x4]] (%p4099_p5), %s2575_s5 }
 0x424   : > { %2288 = sst [smem:[#allocation15 + $0x5]] (%p4099_p5), %s2576_s21 }
 0x425   : > { %2289 = dma.general (%p4099_p5), %s1974_s12, 512, %s1956_s27, %s1942_s0, %s2577_s26, [#allocation15], %s2578_s3, 0  }
 0x426 PF: > { %s4100_s9 = sld [smem:[#allocation24_spill]]  ;;  %s2001_s25 = sand.u32 1, %s2532_s18  }
 0x427   : > { %p4101_p2 = scmp.ne.s32.totalorder %s4022_s15, 0  ;;  %s2002_s6 = scalar_lea.sflag [#allocation4], %s2001_s25 }
 0x429   : > { %p2296_p1 = pnand %p2116_p13, %p4101_p2 }
 0x42b   : > { %2515 = dma.done.wait (!%p2296_p1), %s2002_s6, 512  }
 0x42c   : > { %2517 = vsyncadd (!%p2296_p1), %s2002_s6, 4294966784  ;;  %s24_s23 = sadd.s32 1, %s4100_s9   ;;  %s4102_s22 = sld [smem:[#allocation27_spill]] }
 0x42d   : > { %p21_p9 = scmp.ge.s32.totalorder %s24_s23, 4   ;;  %s4103_s14 = sld [smem:[#allocation22_spill]] }
 0x42e   : > { %s4104_s20 = sld [smem:[#allocation26_spill]]  ;;  %s4105_s21 = sld [smem:[#allocation23_spill]] }
 0x42f   : > { %s4106_s7 = sld [smem:[#allocation25_spill]]  ;;  %s4107_s15 = smov %s2524_s16 }
 0x430   : > { %s4108_s16 = smov %s2528_s17  ;;  %s4110_s18 = smov %s2536_s19 }
 0x431   :  { %23 = sbr.rel (!%p21_p9) target bundleno = 14 (0xe), region = 117 }
 0x432   : > { %s4109_s17 = smov %s4102_s22 }
 0x433   : > { %s4111_s19 = smov %s4103_s14 }
 0x435   : > { %s4112_s22 = smov %s4106_s7 }
 0x438   :  { %2007 = vsyncpa [#allocation3], 1 }
 0x439   :  { %2009 = vsyncpa [#allocation3 + $0x1], 1 }
 0x43a   :  { %2010 = vsyncpa [#allocation7], 1 }
 0x43b   :  { %2012 = vsyncpa [#allocation7 + $0x1], 1 }
 0x43c   :  { %2013 = vsyncpa [#allocation4], 1 }
 0x43d   :  { %2015 = vsyncpa [#allocation4 + $0x1], 1 }
 0x43e   :  { %2016 = vsyncpa [#allocation5], 1 }
 0x43f   :  { %2018 = vsyncpa [#allocation5 + $0x1], 1 }

</bundles_post_ra>
